<compile_context>
chip_gen: v6e
topology: v6e:2x2x1
jax: 0.10.0
libtpu: 0.0.40
codegen_flags: <defaults>
</compile_context>

<pallas_src>
import jax
import jax.numpy as jnp
from jax.experimental import pallas as pl
from jax.experimental.pallas import tpu as pltpu


# ----------------------------- Pallas kernel ------------------------------- #

def _gru_kernel(x_ref, w_in_ref, b_in_ref, w_hh_ref, b_hn_ref, o_ref, h_ref):
    # grid = (direction d, N-tile j, time block i); d,j "parallel", i "arbitrary".
    #   x_ref:    (TW, TN, Cin)    raw time-major input rows (block already
    #                              time-reversed via index_map for d==1)
    #   w_in_ref: (1, 3, Cin, Hd)  conv-folded per-gate input weights (r,z,n)
    #   b_in_ref: (1, 3, 1, Hd)    folded biases (conv bias + b_ih [+ b_hh r,z])
    #   w_hh_ref: (1, 3, Hd, Hd)   per-gate recurrent weights
    #   b_hn_ref: (1, 1, Hd)       b_hh of the n gate
    #   o_ref:    (1, TW, TN, Hd)  hidden-state outputs for this block
    #   h_ref:    (TN, Hd) scratch hidden state, persists across time blocks
    @pl.when(pl.program_id(2) == 0)
    def _init():
        h_ref[...] = jnp.zeros_like(h_ref)

    tw = x_ref.shape[0]
    # Hoisted out of the serial loop: per-gate weights / biases (lane-dense,
    # no last-dim gate slicing anywhere in the loop).
    w_r, w_z, w_n = w_in_ref[0, 0], w_in_ref[0, 1], w_in_ref[0, 2]   # (Cin, Hd)
    b_r, b_z, b_n = b_in_ref[0, 0], b_in_ref[0, 1], b_in_ref[0, 2]   # (1, Hd)
    u_r, u_z, u_n = w_hh_ref[0, 0], w_hh_ref[0, 1], w_hh_ref[0, 2]   # (Hd, Hd)
    bhn = b_hn_ref[0]                                                # (1, Hd)

    def step(t):  # t is a static Python int -> static offsets for every access
        x_t = x_ref[t]                                               # (TN, Cin)
        h = h_ref[...]                                               # (TN, Hd)
        # Input projections (independent of h -> scheduler overlaps them with
        # the previous step's recurrence); recurrent projections per gate.
        gi_r = jnp.dot(x_t, w_r, preferred_element_type=jnp.float32) + b_r
        gi_z = jnp.dot(x_t, w_z, preferred_element_type=jnp.float32) + b_z
        gi_n = jnp.dot(x_t, w_n, preferred_element_type=jnp.float32) + b_n
        gh_r = jnp.dot(h, u_r, preferred_element_type=jnp.float32)
        gh_z = jnp.dot(h, u_z, preferred_element_type=jnp.float32)
        gh_n = jnp.dot(h, u_n, preferred_element_type=jnp.float32)
        r = jax.nn.sigmoid(gi_r + gh_r)
        z = jax.nn.sigmoid(gi_z + gh_z)
        n = jnp.tanh(gi_n + r * (gh_n + bhn))
        h_new = n + z * (h - n)          # == (1-z)*n + z*h, one fewer VPU op
        h_ref[...] = h_new
        o_ref[0, t] = h_new.astype(o_ref.dtype)

    # Statically-indexed unrolled bodies per direction (review item: removes
    # per-step scalar address math from the latency-critical serial loop).
    # NOTE: keep TW modest (<=8-16) and size TN so the per-step live set
    # (gi/gh/h/r/z/n) stays well under the 256 KiB vreg file.
    @pl.when(pl.program_id(0) == 0)
    def _fwd():
        for t in range(tw):
            step(t)

    @pl.when(pl.program_id(0) == 1)
    def _rev():
        for t in range(tw - 1, -1, -1):
            step(t)


# ------------------------------- Wrapper ----------------------------------- #

def _largest_divisor(n, cap, multiple_of=1):
    cap = max(1, min(cap, n))
    for t in range(cap, 0, -1):
        if n % t == 0 and (t % multiple_of == 0 or t == n):
            return t
    return n  # fallback: full dim is always a legal block


def gru_block_forward(x, params, *, tw=8, tn=None, vmem_limit_bytes=None):
    """x: (B, Cin, H, W) NCHW  ->  (B, Cout, H, W) NCHW (Cout = 2*hidden)."""
    B, Cin, H, W = x.shape
    Cout = params["conv_w"].shape[0]
    assert Cout % 2 == 0
    Hd = Cout // 2
    N = B * H
    f32 = jnp.float32

    # ---- trace-time weight folding (tiny, done once) -----------------------
    wc = params["conv_w"].astype(f32).T                      # (Cin, Cout)
    bc = params["conv_b"].astype(f32)                        # (Cout,)

    def fold(wih, whh, bih, bhh):
        wih_t = wih.astype(f32).T                            # (Cout, 3*Hd)
        wf = wc @ wih_t                                      # (Cin, 3*Hd): conv folded in
        bf = bc @ wih_t + bih.astype(f32)                    # conv bias + b_ih
        bf = bf.at[:2 * Hd].add(bhh[:2 * Hd].astype(f32))    # fold b_hh of r,z gates
        # per-gate (r, z, n) stacking -> no lane-dim gate slicing in the kernel
        w_g = jnp.stack([wf[:, :Hd], wf[:, Hd:2 * Hd], wf[:, 2 * Hd:]])        # (3, Cin, Hd)
        b_g = jnp.stack([bf[:Hd], bf[Hd:2 * Hd], bf[2 * Hd:]])[:, None, :]     # (3, 1, Hd)
        whh_t = whh.astype(f32).T                                              # (Hd, 3*Hd)
        u_g = jnp.stack([whh_t[:, :Hd], whh_t[:, Hd:2 * Hd], whh_t[:, 2 * Hd:]])  # (3, Hd, Hd)
        bhn = bhh[2 * Hd:].astype(f32)[None, :]                                # (1, Hd)
        return w_g, b_g, u_g, bhn

    w_gf, b_gf, u_gf, bhn_f = fold(params["w_ih_f"], params["w_hh_f"],
                                   params["b_ih_f"], params["b_hh_f"])
    w_gr, b_gr, u_gr, bhn_r = fold(params["w_ih_r"], params["w_hh_r"],
                                   params["b_ih_r"], params["b_hh_r"])
    w_in = jnp.stack([w_gf, w_gr])                           # (2, 3, Cin, Hd)
    b_in = jnp.stack([b_gf, b_gr])                           # (2, 3, 1, Hd)
    w_hh = jnp.stack([u_gf, u_gr])                           # (2, 3, Hd, Hd)
    b_hn = jnp.stack([bhn_f, bhn_r])                         # (2, 1, Hd)

    # ---- layout: NCHW -> time-major (W, N=B*H, Cin) -------------------------
    # (Cin is small; this transpose is far cheaper than the removed gi stream.)
    x_tm = jnp.transpose(x, (3, 0, 2, 1)).reshape(W, N, Cin).astype(f32)

    # ---- tiling --------------------------------------------------------------
    TW = _largest_divisor(W, tw)
    nb = W // TW
    if tn is None:
        tn = N
    TN = _largest_divisor(N, tn, multiple_of=8)              # (8,128) rule or TN==N
    nN = N // TN

    # ---- fused conv-projection + bidirectional recurrence over W ------------
    gru_out = pl.pallas_call(
        _gru_kernel,
        grid=(2, nN, nb),                                    # (direction, N-tile, time)
        in_specs=[
            pl.BlockSpec((TW, TN, Cin),
                         lambda d, j, i: (i + d * (nb - 1 - 2 * i), j, 0)),
            pl.BlockSpec((1, 3, Cin, Hd), lambda d, j, i: (d, 0, 0, 0)),
            pl.BlockSpec((1, 3, 1, Hd), lambda d, j, i: (d, 0, 0, 0)),
            pl.BlockSpec((1, 3, Hd, Hd), lambda d, j, i: (d, 0, 0, 0)),
            pl.BlockSpec((1, 1, Hd), lambda d, j, i: (d, 0, 0)),
        ],
        out_specs=pl.BlockSpec((1, TW, TN, Hd),
                               lambda d, j, i: (d, i + d * (nb - 1 - 2 * i), j, 0)),
        out_shape=jax.ShapeDtypeStruct((2, W, N, Hd), f32),
        scratch_shapes=[pltpu.VMEM((TN, Hd), f32)],
        compiler_params=pltpu.CompilerParams(
            dimension_semantics=("parallel", "parallel", "arbitrary"),
            vmem_limit_bytes=vmem_limit_bytes),
    )(x_tm, w_in, b_in, w_hh, b_hn)

    # ---- back to NCHW: channel index = dir*Hd + hd (PyTorch bidir concat) ---
    out = gru_out.reshape(2, W, B, H, Hd)
    out = jnp.transpose(out, (2, 0, 4, 3, 1)).reshape(B, Cout, H, W)
    return out
    # NB: PyTorch's self.gru.flatten_parameters() is a memory-layout no-op.


# -------------------------- pure-JAX reference ------------------------------ #

def gru_block_reference(x, params):
    B, Cin, H, W = x.shape
    Cout = params["conv_w"].shape[0]
    Hd = Cout // 2
    N = B * H
    y = jnp.einsum("bchw,dc->bhwd", x, params["conv_w"]) + params["conv_b"]
    y = y.reshape(N, W, Cout)

    def run_dir(wih, whh, bih, bhh, reverse):
        h = jnp.zeros((N, Hd), jnp.float32)
        outs = [None] * W
        ts = range(W - 1, -1, -1) if reverse else range(W)
        for t in ts:
            x_t = y[:, t, :]
            gi = x_t @ wih.T + bih                   # (N, 3*Hd), gates (r,z,n)
            gh = h @ whh.T + bhh
            r = jax.nn.sigmoid(gi[:, :Hd] + gh[:, :Hd])
            z = jax.nn.sigmoid(gi[:, Hd:2 * Hd] + gh[:, Hd:2 * Hd])
            n = jnp.tanh(gi[:, 2 * Hd:] + r * gh[:, 2 * Hd:])
            h = (1.0 - z) * n + z * h
            outs[t] = h
        return jnp.stack(outs, axis=1)               # (N, W, Hd)

    of = run_dir(params["w_ih_f"], params["w_hh_f"], params["b_ih_f"], params["b_hh_f"], False)
    orr = run_dir(params["w_ih_r"], params["w_hh_r"], params["b_ih_r"], params["b_hh_r"], True)
    out = jnp.concatenate([of, orr], axis=-1).reshape(B, H, W, Cout)
    return jnp.transpose(out, (0, 3, 1, 2))


# --------------------------------- main ------------------------------------- #

if __name__ == "__main__":
    B, Cin, H, W = 2, 4, 16, 16
    Cout = 32                       # out_channels (must be even)
    Hd = Cout // 2

    key = jax.random.PRNGKey(0)
    ks = jax.random.split(key, 11)
    s = 1.0 / (Hd ** 0.5)           # PyTorch-style uniform(-1/sqrt(H), 1/sqrt(H))

    params = {
        # nn.Conv2d(Cin, Cout, 1): weight (Cout, Cin[,1,1]) squeezed, bias (Cout,)
        "conv_w": jax.random.uniform(ks[0], (Cout, Cin), jnp.float32, -0.5, 0.5),
        "conv_b": jax.random.uniform(ks[1], (Cout,), jnp.float32, -0.5, 0.5),
        # nn.GRU params in PyTorch layout, gate order (r, z, n) stacked on dim 0.
        "w_ih_f": jax.random.uniform(ks[2], (3 * Hd, Cout), jnp.float32, -s, s),
        "w_hh_f": jax.random.uniform(ks[3], (3 * Hd, Hd), jnp.float32, -s, s),
        "b_ih_f": jax.random.uniform(ks[4], (3 * Hd,), jnp.float32, -s, s),
        "b_hh_f": jax.random.uniform(ks[5], (3 * Hd,), jnp.float32, -s, s),
        "w_ih_r": jax.random.uniform(ks[6], (3 * Hd, Cout), jnp.float32, -s, s),
        "w_hh_r": jax.random.uniform(ks[7], (3 * Hd, Hd), jnp.float32, -s, s),
        "b_ih_r": jax.random.uniform(ks[8], (3 * Hd,), jnp.float32, -s, s),
        "b_hh_r": jax.random.uniform(ks[9], (3 * Hd,), jnp.float32, -s, s),
    }

    x = jax.random.normal(ks[10], (B, Cin, H, W), jnp.float32)

    out = jax.block_until_ready(jax.jit(gru_block_forward)(x, params))
    ref = jax.block_until_ready(gru_block_reference(x, params))

    assert out.shape == (B, Cout, H, W), out.shape
    assert jnp.allclose(out, ref, atol=1e-4, rtol=1e-4), float(jnp.abs(out - ref).max())
    print("KERNEL_OK")
</pallas_src>

<mosaic_0001>
module attributes {stable_mosaic.version = 11 : i64} {
  func.func @_gru_kernel(%arg0: i32, %arg1: i32, %arg2: i32, %arg3: memref<8x32x4xf32, #tpu.memory_space<vmem>>, %arg4: memref<1x3x4x16xf32, #tpu.memory_space<vmem>>, %arg5: memref<1x3x1x16xf32, #tpu.memory_space<vmem>>, %arg6: memref<1x3x16x16xf32, #tpu.memory_space<vmem>>, %arg7: memref<1x1x16xf32, #tpu.memory_space<vmem>>, %arg8: memref<1x8x32x16xf32, #tpu.memory_space<vmem>>, %arg9: memref<32x16xf32, #tpu.memory_space<vmem>>) attributes {dimension_semantics = [#tpu.dimension_semantics<parallel>, #tpu.dimension_semantics<parallel>, #tpu.dimension_semantics<arbitrary>], iteration_bounds = array<i64: 2, 1, 2>, scalar_prefetch = 0 : i64, scratch_operands = 1 : i64, tpu.core_type = #tpu.core_type<tc>, window_params = [{transform_indices = @transform_0, window_bounds = array<i64: 8, 32, 4>}, {transform_indices = @transform_1, window_bounds = array<i64: 1, 3, 4, 16>}, {transform_indices = @transform_2, window_bounds = array<i64: 1, 3, 1, 16>}, {transform_indices = @transform_3, window_bounds = array<i64: 1, 3, 16, 16>}, {transform_indices = @transform_4, window_bounds = array<i64: 1, 1, 16>}, {transform_indices = @transform_5, window_bounds = array<i64: 1, 8, 32, 16>}]} {
    %c0_i32 = arith.constant 0 : i32
    %0 = arith.cmpi eq, %arg2, %c0_i32 : i32
    %1 = arith.extui %0 : i1 to i32
    %c0_i32_0 = arith.constant 0 : i32
    %2 = arith.cmpi ne, %1, %c0_i32_0 : i32
    scf.if %2 {
      %cst = arith.constant 0.000000e+00 : f32
      %29 = vector.broadcast %cst : f32 to vector<32x16xf32>
      %c0_40 = arith.constant 0 : index
      %c0_41 = arith.constant 0 : index
      %30 = vector.load %arg9[%c0_40, %c0_41] : memref<32x16xf32, #tpu.memory_space<vmem>>, vector<32x16xf32>
      tpu.vector_store %arg9[%c0_40, %c0_41], %29 {strides = array<i32>} : memref<32x16xf32, #tpu.memory_space<vmem>>, vector<32x16xf32>,
    } else {
    }
    %c0 = arith.constant 0 : index
    %c0_1 = arith.constant 0 : index
    %c0_2 = arith.constant 0 : index
    %c0_3 = arith.constant 0 : index
    %3 = vector.load %arg4[%c0, %c0_1, %c0_2, %c0_3] : memref<1x3x4x16xf32, #tpu.memory_space<vmem>>, vector<1x1x4x16xf32>
    %4 = vector.shape_cast %3 : vector<1x1x4x16xf32> to vector<4x16xf32>
    %c0_4 = arith.constant 0 : index
    %c1 = arith.constant 1 : index
    %c0_5 = arith.constant 0 : index
    %c0_6 = arith.constant 0 : index
    %5 = vector.load %arg4[%c0_4, %c1, %c0_5, %c0_6] : memref<1x3x4x16xf32, #tpu.memory_space<vmem>>, vector<1x1x4x16xf32>
    %6 = vector.shape_cast %5 : vector<1x1x4x16xf32> to vector<4x16xf32>
    %c0_7 = arith.constant 0 : index
    %c2 = arith.constant 2 : index
    %c0_8 = arith.constant 0 : index
    %c0_9 = arith.constant 0 : index
    %7 = vector.load %arg4[%c0_7, %c2, %c0_8, %c0_9] : memref<1x3x4x16xf32, #tpu.memory_space<vmem>>, vector<1x1x4x16xf32>
    %8 = vector.shape_cast %7 : vector<1x1x4x16xf32> to vector<4x16xf32>
    %c0_10 = arith.constant 0 : index
    %c0_11 = arith.constant 0 : index
    %c0_12 = arith.constant 0 : index
    %c0_13 = arith.constant 0 : index
    %9 = vector.load %arg5[%c0_10, %c0_11, %c0_12, %c0_13] : memref<1x3x1x16xf32, #tpu.memory_space<vmem>>, vector<1x1x1x16xf32>
    %10 = vector.shape_cast %9 : vector<1x1x1x16xf32> to vector<1x16xf32>
    %c0_14 = arith.constant 0 : index
    %c1_15 = arith.constant 1 : index
    %c0_16 = arith.constant 0 : index
    %c0_17 = arith.constant 0 : index
    %11 = vector.load %arg5[%c0_14, %c1_15, %c0_16, %c0_17] : memref<1x3x1x16xf32, #tpu.memory_space<vmem>>, vector<1x1x1x16xf32>
    %12 = vector.shape_cast %11 : vector<1x1x1x16xf32> to vector<1x16xf32>
    %c0_18 = arith.constant 0 : index
    %c2_19 = arith.constant 2 : index
    %c0_20 = arith.constant 0 : index
    %c0_21 = arith.constant 0 : index
    %13 = vector.load %arg5[%c0_18, %c2_19, %c0_20, %c0_21] : memref<1x3x1x16xf32, #tpu.memory_space<vmem>>, vector<1x1x1x16xf32>
    %14 = vector.shape_cast %13 : vector<1x1x1x16xf32> to vector<1x16xf32>
    %c0_22 = arith.constant 0 : index
    %c0_23 = arith.constant 0 : index
    %c0_24 = arith.constant 0 : index
    %c0_25 = arith.constant 0 : index
    %15 = vector.load %arg6[%c0_22, %c0_23, %c0_24, %c0_25] : memref<1x3x16x16xf32, #tpu.memory_space<vmem>>, vector<1x1x16x16xf32>
    %16 = vector.shape_cast %15 : vector<1x1x16x16xf32> to vector<16x16xf32>
    %c0_26 = arith.constant 0 : index
    %c1_27 = arith.constant 1 : index
    %c0_28 = arith.constant 0 : index
    %c0_29 = arith.constant 0 : index
    %17 = vector.load %arg6[%c0_26, %c1_27, %c0_28, %c0_29] : memref<1x3x16x16xf32, #tpu.memory_space<vmem>>, vector<1x1x16x16xf32>
    %18 = vector.shape_cast %17 : vector<1x1x16x16xf32> to vector<16x16xf32>
    %c0_30 = arith.constant 0 : index
    %c2_31 = arith.constant 2 : index
    %c0_32 = arith.constant 0 : index
    %c0_33 = arith.constant 0 : index
    %19 = vector.load %arg6[%c0_30, %c2_31, %c0_32, %c0_33] : memref<1x3x16x16xf32, #tpu.memory_space<vmem>>, vector<1x1x16x16xf32>
    %20 = vector.shape_cast %19 : vector<1x1x16x16xf32> to vector<16x16xf32>
    %c0_34 = arith.constant 0 : index
    %c0_35 = arith.constant 0 : index
    %c0_36 = arith.constant 0 : index
    %21 = vector.load %arg7[%c0_34, %c0_35, %c0_36] : memref<1x1x16xf32, #tpu.memory_space<vmem>>, vector<1x1x16xf32>
    %22 = vector.shape_cast %21 : vector<1x1x16xf32> to vector<1x16xf32>
    %c0_i32_37 = arith.constant 0 : i32
    %23 = arith.cmpi eq, %arg0, %c0_i32_37 : i32
    %24 = arith.extui %23 : i1 to i32
    %c0_i32_38 = arith.constant 0 : i32
    %25 = arith.cmpi ne, %24, %c0_i32_38 : i32
    scf.if %25 {
      %c0_40 = arith.constant 0 : index
      %c0_41 = arith.constant 0 : index
      %c0_42 = arith.constant 0 : index
      %29 = vector.load %arg3[%c0_40, %c0_41, %c0_42] : memref<8x32x4xf32, #tpu.memory_space<vmem>>, vector<1x32x4xf32>
      %30 = vector.shape_cast %29 : vector<1x32x4xf32> to vector<32x4xf32>
      %c0_43 = arith.constant 0 : index
      %c0_44 = arith.constant 0 : index
      %31 = vector.load %arg9[%c0_43, %c0_44] : memref<32x16xf32, #tpu.memory_space<vmem>>, vector<32x16xf32>
      %cst = arith.constant dense<0.000000e+00> : vector<32x16xf32>
      %32 = tpu.matmul %30, %4, %cst {dimension_numbers = #tpu.dot_dimension_numbers<[1], [0], [0], [1], [0, 0, 1, 1], [], []>} : vector<32x4xf32>, vector<4x16xf32>, vector<32x16xf32> -> vector<32x16xf32>
      %33 = vector.broadcast %10 : vector<1x16xf32> to vector<32x16xf32>
      %34 = arith.addf %32, %33 : vector<32x16xf32>
      %cst_45 = arith.constant dense<0.000000e+00> : vector<32x16xf32>
      %35 = tpu.matmul %30, %6, %cst_45 {dimension_numbers = #tpu.dot_dimension_numbers<[1], [0], [0], [1], [0, 0, 1, 1], [], []>} : vector<32x4xf32>, vector<4x16xf32>, vector<32x16xf32> -> vector<32x16xf32>
      %36 = vector.broadcast %12 : vector<1x16xf32> to vector<32x16xf32>
      %37 = arith.addf %35, %36 : vector<32x16xf32>
      %cst_46 = arith.constant dense<0.000000e+00> : vector<32x16xf32>
      %38 = tpu.matmul %30, %8, %cst_46 {dimension_numbers = #tpu.dot_dimension_numbers<[1], [0], [0], [1], [0, 0, 1, 1], [], []>} : vector<32x4xf32>, vector<4x16xf32>, vector<32x16xf32> -> vector<32x16xf32>
      %39 = vector.broadcast %14 : vector<1x16xf32> to vector<32x16xf32>
      %40 = arith.addf %38, %39 : vector<32x16xf32>
      %cst_47 = arith.constant dense<0.000000e+00> : vector<32x16xf32>
      %41 = tpu.matmul %31, %16, %cst_47 {dimension_numbers = #tpu.dot_dimension_numbers<[1], [0], [0], [1], [0, 0, 1, 1], [], []>} : vector<32x16xf32>, vector<16x16xf32>, vector<32x16xf32> -> vector<32x16xf32>
      %cst_48 = arith.constant dense<0.000000e+00> : vector<32x16xf32>
      %42 = tpu.matmul %31, %18, %cst_48 {dimension_numbers = #tpu.dot_dimension_numbers<[1], [0], [0], [1], [0, 0, 1, 1], [], []>} : vector<32x16xf32>, vector<16x16xf32>, vector<32x16xf32> -> vector<32x16xf32>
      %cst_49 = arith.constant dense<0.000000e+00> : vector<32x16xf32>
      %43 = tpu.matmul %31, %20, %cst_49 {dimension_numbers = #tpu.dot_dimension_numbers<[1], [0], [0], [1], [0, 0, 1, 1], [], []>} : vector<32x16xf32>, vector<16x16xf32>, vector<32x16xf32> -> vector<32x16xf32>
      %44 = arith.addf %34, %41 : vector<32x16xf32>
      %45 = arith.negf %44 : vector<32x16xf32>
      %46 = math.exp %45 : vector<32x16xf32>
      %cst_50 = arith.constant 1.000000e+00 : f32
      %47 = vector.broadcast %cst_50 : f32 to vector<32x16xf32>
      %48 = arith.addf %47, %46 : vector<32x16xf32>
      %49 = arith.divf %47, %48 : vector<32x16xf32>
      %50 = arith.addf %37, %42 : vector<32x16xf32>
      %51 = arith.negf %50 : vector<32x16xf32>
      %52 = math.exp %51 : vector<32x16xf32>
      %cst_51 = arith.constant 1.000000e+00 : f32
      %53 = vector.broadcast %cst_51 : f32 to vector<32x16xf32>
      %54 = arith.addf %53, %52 : vector<32x16xf32>
      %55 = arith.divf %53, %54 : vector<32x16xf32>
      %56 = vector.broadcast %22 : vector<1x16xf32> to vector<32x16xf32>
      %57 = arith.addf %43, %56 : vector<32x16xf32>
      %58 = arith.mulf %49, %57 : vector<32x16xf32>
      %59 = arith.addf %40, %58 : vector<32x16xf32>
      %60 = math.tanh %59 : vector<32x16xf32>
      %61 = arith.subf %31, %60 : vector<32x16xf32>
      %62 = arith.mulf %55, %61 : vector<32x16xf32>
      %63 = arith.addf %60, %62 : vector<32x16xf32>
      %c0_52 = arith.constant 0 : index
      %c0_53 = arith.constant 0 : index
      %64 = vector.load %arg9[%c0_52, %c0_53] : memref<32x16xf32, #tpu.memory_space<vmem>>, vector<32x16xf32>
      tpu.vector_store %arg9[%c0_52, %c0_53], %63 {strides = array<i32>} : memref<32x16xf32, #tpu.memory_space<vmem>>, vector<32x16xf32>,
      %c0_54 = arith.constant 0 : index
      %c0_55 = arith.constant 0 : index
      %c0_56 = arith.constant 0 : index
      %c0_57 = arith.constant 0 : index
      %65 = vector.load %arg8[%c0_54, %c0_55, %c0_56, %c0_57] : memref<1x8x32x16xf32, #tpu.memory_space<vmem>>, vector<1x1x32x16xf32>
      %66 = vector.shape_cast %65 : vector<1x1x32x16xf32> to vector<32x16xf32>
      %67 = vector.shape_cast %63 : vector<32x16xf32> to vector<1x1x32x16xf32>
      tpu.vector_store %arg8[%c0_54, %c0_55, %c0_56, %c0_57], %67 {strides = array<i32>} : memref<1x8x32x16xf32, #tpu.memory_space<vmem>>, vector<1x1x32x16xf32>,
      %c1_58 = arith.constant 1 : index
      %c0_59 = arith.constant 0 : index
      %c0_60 = arith.constant 0 : index
      %68 = vector.load %arg3[%c1_58, %c0_59, %c0_60] : memref<8x32x4xf32, #tpu.memory_space<vmem>>, vector<1x32x4xf32>
      %69 = vector.shape_cast %68 : vector<1x32x4xf32> to vector<32x4xf32>
      %c0_61 = arith.constant 0 : index
      %c0_62 = arith.constant 0 : index
      %70 = vector.load %arg9[%c0_61, %c0_62] : memref<32x16xf32, #tpu.memory_space<vmem>>, vector<32x16xf32>
      %cst_63 = arith.constant dense<0.000000e+00> : vector<32x16xf32>
      %71 = tpu.matmul %69, %4, %cst_63 {dimension_numbers = #tpu.dot_dimension_numbers<[1], [0], [0], [1], [0, 0, 1, 1], [], []>} : vector<32x4xf32>, vector<4x16xf32>, vector<32x16xf32> -> vector<32x16xf32>
      %72 = vector.broadcast %10 : vector<1x16xf32> to vector<32x16xf32>
      %73 = arith.addf %71, %72 : vector<32x16xf32>
      %cst_64 = arith.constant dense<0.000000e+00> : vector<32x16xf32>
      %74 = tpu.matmul %69, %6, %cst_64 {dimension_numbers = #tpu.dot_dimension_numbers<[1], [0], [0], [1], [0, 0, 1, 1], [], []>} : vector<32x4xf32>, vector<4x16xf32>, vector<32x16xf32> -> vector<32x16xf32>
      %75 = vector.broadcast %12 : vector<1x16xf32> to vector<32x16xf32>
      %76 = arith.addf %74, %75 : vector<32x16xf32>
      %cst_65 = arith.constant dense<0.000000e+00> : vector<32x16xf32>
      %77 = tpu.matmul %69, %8, %cst_65 {dimension_numbers = #tpu.dot_dimension_numbers<[1], [0], [0], [1], [0, 0, 1, 1], [], []>} : vector<32x4xf32>, vector<4x16xf32>, vector<32x16xf32> -> vector<32x16xf32>
      %78 = vector.broadcast %14 : vector<1x16xf32> to vector<32x16xf32>
      %79 = arith.addf %77, %78 : vector<32x16xf32>
      %cst_66 = arith.constant dense<0.000000e+00> : vector<32x16xf32>
      %80 = tpu.matmul %70, %16, %cst_66 {dimension_numbers = #tpu.dot_dimension_numbers<[1], [0], [0], [1], [0, 0, 1, 1], [], []>} : vector<32x16xf32>, vector<16x16xf32>, vector<32x16xf32> -> vector<32x16xf32>
      %cst_67 = arith.constant dense<0.000000e+00> : vector<32x16xf32>
      %81 = tpu.matmul %70, %18, %cst_67 {dimension_numbers = #tpu.dot_dimension_numbers<[1], [0], [0], [1], [0, 0, 1, 1], [], []>} : vector<32x16xf32>, vector<16x16xf32>, vector<32x16xf32> -> vector<32x16xf32>
      %cst_68 = arith.constant dense<0.000000e+00> : vector<32x16xf32>
      %82 = tpu.matmul %70, %20, %cst_68 {dimension_numbers = #tpu.dot_dimension_numbers<[1], [0], [0], [1], [0, 0, 1, 1], [], []>} : vector<32x16xf32>, vector<16x16xf32>, vector<32x16xf32> -> vector<32x16xf32>
      %83 = arith.addf %73, %80 : vector<32x16xf32>
      %84 = arith.negf %83 : vector<32x16xf32>
      %85 = math.exp %84 : vector<32x16xf32>
      %cst_69 = arith.constant 1.000000e+00 : f32
      %86 = vector.broadcast %cst_69 : f32 to vector<32x16xf32>
      %87 = arith.addf %86, %85 : vector<32x16xf32>
      %88 = arith.divf %86, %87 : vector<32x16xf32>
      %89 = arith.addf %76, %81 : vector<32x16xf32>
      %90 = arith.negf %89 : vector<32x16xf32>
      %91 = math.exp %90 : vector<32x16xf32>
      %cst_70 = arith.constant 1.000000e+00 : f32
      %92 = vector.broadcast %cst_70 : f32 to vector<32x16xf32>
      %93 = arith.addf %92, %91 : vector<32x16xf32>
      %94 = arith.divf %92, %93 : vector<32x16xf32>
      %95 = vector.broadcast %22 : vector<1x16xf32> to vector<32x16xf32>
      %96 = arith.addf %82, %95 : vector<32x16xf32>
      %97 = arith.mulf %88, %96 : vector<32x16xf32>
      %98 = arith.addf %79, %97 : vector<32x16xf32>
      %99 = math.tanh %98 : vector<32x16xf32>
      %100 = arith.subf %70, %99 : vector<32x16xf32>
      %101 = arith.mulf %94, %100 : vector<32x16xf32>
      %102 = arith.addf %99, %101 : vector<32x16xf32>
      %c0_71 = arith.constant 0 : index
      %c0_72 = arith.constant 0 : index
      %103 = vector.load %arg9[%c0_71, %c0_72] : memref<32x16xf32, #tpu.memory_space<vmem>>, vector<32x16xf32>
      tpu.vector_store %arg9[%c0_71, %c0_72], %102 {strides = array<i32>} : memref<32x16xf32, #tpu.memory_space<vmem>>, vector<32x16xf32>,
      %c0_73 = arith.constant 0 : index
      %c1_74 = arith.constant 1 : index
      %c0_75 = arith.constant 0 : index
      %c0_76 = arith.constant 0 : index
      %104 = vector.load %arg8[%c0_73, %c1_74, %c0_75, %c0_76] : memref<1x8x32x16xf32, #tpu.memory_space<vmem>>, vector<1x1x32x16xf32>
      %105 = vector.shape_cast %104 : vector<1x1x32x16xf32> to vector<32x16xf32>
      %106 = vector.shape_cast %102 : vector<32x16xf32> to vector<1x1x32x16xf32>
      tpu.vector_store %arg8[%c0_73, %c1_74, %c0_75, %c0_76], %106 {strides = array<i32>} : memref<1x8x32x16xf32, #tpu.memory_space<vmem>>, vector<1x1x32x16xf32>,
      %c2_77 = arith.constant 2 : index
      %c0_78 = arith.constant 0 : index
      %c0_79 = arith.constant 0 : index
      %107 = vector.load %arg3[%c2_77, %c0_78, %c0_79] : memref<8x32x4xf32, #tpu.memory_space<vmem>>, vector<1x32x4xf32>
      %108 = vector.shape_cast %107 : vector<1x32x4xf32> to vector<32x4xf32>
      %c0_80 = arith.constant 0 : index
      %c0_81 = arith.constant 0 : index
      %109 = vector.load %arg9[%c0_80, %c0_81] : memref<32x16xf32, #tpu.memory_space<vmem>>, vector<32x16xf32>
      %cst_82 = arith.constant dense<0.000000e+00> : vector<32x16xf32>
      %110 = tpu.matmul %108, %4, %cst_82 {dimension_numbers = #tpu.dot_dimension_numbers<[1], [0], [0], [1], [0, 0, 1, 1], [], []>} : vector<32x4xf32>, vector<4x16xf32>, vector<32x16xf32> -> vector<32x16xf32>
      %111 = vector.broadcast %10 : vector<1x16xf32> to vector<32x16xf32>
      %112 = arith.addf %110, %111 : vector<32x16xf32>
      %cst_83 = arith.constant dense<0.000000e+00> : vector<32x16xf32>
      %113 = tpu.matmul %108, %6, %cst_83 {dimension_numbers = #tpu.dot_dimension_numbers<[1], [0], [0], [1], [0, 0, 1, 1], [], []>} : vector<32x4xf32>, vector<4x16xf32>, vector<32x16xf32> -> vector<32x16xf32>
      %114 = vector.broadcast %12 : vector<1x16xf32> to vector<32x16xf32>
      %115 = arith.addf %113, %114 : vector<32x16xf32>
      %cst_84 = arith.constant dense<0.000000e+00> : vector<32x16xf32>
      %116 = tpu.matmul %108, %8, %cst_84 {dimension_numbers = #tpu.dot_dimension_numbers<[1], [0], [0], [1], [0, 0, 1, 1], [], []>} : vector<32x4xf32>, vector<4x16xf32>, vector<32x16xf32> -> vector<32x16xf32>
      %117 = vector.broadcast %14 : vector<1x16xf32> to vector<32x16xf32>
      %118 = arith.addf %116, %117 : vector<32x16xf32>
      %cst_85 = arith.constant dense<0.000000e+00> : vector<32x16xf32>
      %119 = tpu.matmul %109, %16, %cst_85 {dimension_numbers = #tpu.dot_dimension_numbers<[1], [0], [0], [1], [0, 0, 1, 1], [], []>} : vector<32x16xf32>, vector<16x16xf32>, vector<32x16xf32> -> vector<32x16xf32>
      %cst_86 = arith.constant dense<0.000000e+00> : vector<32x16xf32>
      %120 = tpu.matmul %109, %18, %cst_86 {dimension_numbers = #tpu.dot_dimension_numbers<[1], [0], [0], [1], [0, 0, 1, 1], [], []>} : vector<32x16xf32>, vector<16x16xf32>, vector<32x16xf32> -> vector<32x16xf32>
      %cst_87 = arith.constant dense<0.000000e+00> : vector<32x16xf32>
      %121 = tpu.matmul %109, %20, %cst_87 {dimension_numbers = #tpu.dot_dimension_numbers<[1], [0], [0], [1], [0, 0, 1, 1], [], []>} : vector<32x16xf32>, vector<16x16xf32>, vector<32x16xf32> -> vector<32x16xf32>
      %122 = arith.addf %112, %119 : vector<32x16xf32>
      %123 = arith.negf %122 : vector<32x16xf32>
      %124 = math.exp %123 : vector<32x16xf32>
      %cst_88 = arith.constant 1.000000e+00 : f32
      %125 = vector.broadcast %cst_88 : f32 to vector<32x16xf32>
      %126 = arith.addf %125, %124 : vector<32x16xf32>
      %127 = arith.divf %125, %126 : vector<32x16xf32>
      %128 = arith.addf %115, %120 : vector<32x16xf32>
      %129 = arith.negf %128 : vector<32x16xf32>
      %130 = math.exp %129 : vector<32x16xf32>
      %cst_89 = arith.constant 1.000000e+00 : f32
      %131 = vector.broadcast %cst_89 : f32 to vector<32x16xf32>
      %132 = arith.addf %131, %130 : vector<32x16xf32>
      %133 = arith.divf %131, %132 : vector<32x16xf32>
      %134 = vector.broadcast %22 : vector<1x16xf32> to vector<32x16xf32>
      %135 = arith.addf %121, %134 : vector<32x16xf32>
      %136 = arith.mulf %127, %135 : vector<32x16xf32>
      %137 = arith.addf %118, %136 : vector<32x16xf32>
      %138 = math.tanh %137 : vector<32x16xf32>
      %139 = arith.subf %109, %138 : vector<32x16xf32>
      %140 = arith.mulf %133, %139 : vector<32x16xf32>
      %141 = arith.addf %138, %140 : vector<32x16xf32>
      %c0_90 = arith.constant 0 : index
      %c0_91 = arith.constant 0 : index
      %142 = vector.load %arg9[%c0_90, %c0_91] : memref<32x16xf32, #tpu.memory_space<vmem>>, vector<32x16xf32>
      tpu.vector_store %arg9[%c0_90, %c0_91], %141 {strides = array<i32>} : memref<32x16xf32, #tpu.memory_space<vmem>>, vector<32x16xf32>,
      %c0_92 = arith.constant 0 : index
      %c2_93 = arith.constant 2 : index
      %c0_94 = arith.constant 0 : index
      %c0_95 = arith.constant 0 : index
      %143 = vector.load %arg8[%c0_92, %c2_93, %c0_94, %c0_95] : memref<1x8x32x16xf32, #tpu.memory_space<vmem>>, vector<1x1x32x16xf32>
      %144 = vector.shape_cast %143 : vector<1x1x32x16xf32> to vector<32x16xf32>
      %145 = vector.shape_cast %141 : vector<32x16xf32> to vector<1x1x32x16xf32>
      tpu.vector_store %arg8[%c0_92, %c2_93, %c0_94, %c0_95], %145 {strides = array<i32>} : memref<1x8x32x16xf32, #tpu.memory_space<vmem>>, vector<1x1x32x16xf32>,
      %c3 = arith.constant 3 : index
      %c0_96 = arith.constant 0 : index
      %c0_97 = arith.constant 0 : index
      %146 = vector.load %arg3[%c3, %c0_96, %c0_97] : memref<8x32x4xf32, #tpu.memory_space<vmem>>, vector<1x32x4xf32>
      %147 = vector.shape_cast %146 : vector<1x32x4xf32> to vector<32x4xf32>
      %c0_98 = arith.constant 0 : index
      %c0_99 = arith.constant 0 : index
      %148 = vector.load %arg9[%c0_98, %c0_99] : memref<32x16xf32, #tpu.memory_space<vmem>>, vector<32x16xf32>
      %cst_100 = arith.constant dense<0.000000e+00> : vector<32x16xf32>
      %149 = tpu.matmul %147, %4, %cst_100 {dimension_numbers = #tpu.dot_dimension_numbers<[1], [0], [0], [1], [0, 0, 1, 1], [], []>} : vector<32x4xf32>, vector<4x16xf32>, vector<32x16xf32> -> vector<32x16xf32>
      %150 = vector.broadcast %10 : vector<1x16xf32> to vector<32x16xf32>
      %151 = arith.addf %149, %150 : vector<32x16xf32>
      %cst_101 = arith.constant dense<0.000000e+00> : vector<32x16xf32>
      %152 = tpu.matmul %147, %6, %cst_101 {dimension_numbers = #tpu.dot_dimension_numbers<[1], [0], [0], [1], [0, 0, 1, 1], [], []>} : vector<32x4xf32>, vector<4x16xf32>, vector<32x16xf32> -> vector<32x16xf32>
      %153 = vector.broadcast %12 : vector<1x16xf32> to vector<32x16xf32>
      %154 = arith.addf %152, %153 : vector<32x16xf32>
      %cst_102 = arith.constant dense<0.000000e+00> : vector<32x16xf32>
      %155 = tpu.matmul %147, %8, %cst_102 {dimension_numbers = #tpu.dot_dimension_numbers<[1], [0], [0], [1], [0, 0, 1, 1], [], []>} : vector<32x4xf32>, vector<4x16xf32>, vector<32x16xf32> -> vector<32x16xf32>
      %156 = vector.broadcast %14 : vector<1x16xf32> to vector<32x16xf32>
      %157 = arith.addf %155, %156 : vector<32x16xf32>
      %cst_103 = arith.constant dense<0.000000e+00> : vector<32x16xf32>
      %158 = tpu.matmul %148, %16, %cst_103 {dimension_numbers = #tpu.dot_dimension_numbers<[1], [0], [0], [1], [0, 0, 1, 1], [], []>} : vector<32x16xf32>, vector<16x16xf32>, vector<32x16xf32> -> vector<32x16xf32>
      %cst_104 = arith.constant dense<0.000000e+00> : vector<32x16xf32>
      %159 = tpu.matmul %148, %18, %cst_104 {dimension_numbers = #tpu.dot_dimension_numbers<[1], [0], [0], [1], [0, 0, 1, 1], [], []>} : vector<32x16xf32>, vector<16x16xf32>, vector<32x16xf32> -> vector<32x16xf32>
      %cst_105 = arith.constant dense<0.000000e+00> : vector<32x16xf32>
      %160 = tpu.matmul %148, %20, %cst_105 {dimension_numbers = #tpu.dot_dimension_numbers<[1], [0], [0], [1], [0, 0, 1, 1], [], []>} : vector<32x16xf32>, vector<16x16xf32>, vector<32x16xf32> -> vector<32x16xf32>
      %161 = arith.addf %151, %158 : vector<32x16xf32>
      %162 = arith.negf %161 : vector<32x16xf32>
      %163 = math.exp %162 : vector<32x16xf32>
      %cst_106 = arith.constant 1.000000e+00 : f32
      %164 = vector.broadcast %cst_106 : f32 to vector<32x16xf32>
      %165 = arith.addf %164, %163 : vector<32x16xf32>
      %166 = arith.divf %164, %165 : vector<32x16xf32>
      %167 = arith.addf %154, %159 : vector<32x16xf32>
      %168 = arith.negf %167 : vector<32x16xf32>
      %169 = math.exp %168 : vector<32x16xf32>
      %cst_107 = arith.constant 1.000000e+00 : f32
      %170 = vector.broadcast %cst_107 : f32 to vector<32x16xf32>
      %171 = arith.addf %170, %169 : vector<32x16xf32>
      %172 = arith.divf %170, %171 : vector<32x16xf32>
      %173 = vector.broadcast %22 : vector<1x16xf32> to vector<32x16xf32>
      %174 = arith.addf %160, %173 : vector<32x16xf32>
      %175 = arith.mulf %166, %174 : vector<32x16xf32>
      %176 = arith.addf %157, %175 : vector<32x16xf32>
      %177 = math.tanh %176 : vector<32x16xf32>
      %178 = arith.subf %148, %177 : vector<32x16xf32>
      %179 = arith.mulf %172, %178 : vector<32x16xf32>
      %180 = arith.addf %177, %179 : vector<32x16xf32>
      %c0_108 = arith.constant 0 : index
      %c0_109 = arith.constant 0 : index
      %181 = vector.load %arg9[%c0_108, %c0_109] : memref<32x16xf32, #tpu.memory_space<vmem>>, vector<32x16xf32>
      tpu.vector_store %arg9[%c0_108, %c0_109], %180 {strides = array<i32>} : memref<32x16xf32, #tpu.memory_space<vmem>>, vector<32x16xf32>,
      %c0_110 = arith.constant 0 : index
      %c3_111 = arith.constant 3 : index
      %c0_112 = arith.constant 0 : index
      %c0_113 = arith.constant 0 : index
      %182 = vector.load %arg8[%c0_110, %c3_111, %c0_112, %c0_113] : memref<1x8x32x16xf32, #tpu.memory_space<vmem>>, vector<1x1x32x16xf32>
      %183 = vector.shape_cast %182 : vector<1x1x32x16xf32> to vector<32x16xf32>
      %184 = vector.shape_cast %180 : vector<32x16xf32> to vector<1x1x32x16xf32>
      tpu.vector_store %arg8[%c0_110, %c3_111, %c0_112, %c0_113], %184 {strides = array<i32>} : memref<1x8x32x16xf32, #tpu.memory_space<vmem>>, vector<1x1x32x16xf32>,
      %c4 = arith.constant 4 : index
      %c0_114 = arith.constant 0 : index
      %c0_115 = arith.constant 0 : index
      %185 = vector.load %arg3[%c4, %c0_114, %c0_115] : memref<8x32x4xf32, #tpu.memory_space<vmem>>, vector<1x32x4xf32>
      %186 = vector.shape_cast %185 : vector<1x32x4xf32> to vector<32x4xf32>
      %c0_116 = arith.constant 0 : index
      %c0_117 = arith.constant 0 : index
      %187 = vector.load %arg9[%c0_116, %c0_117] : memref<32x16xf32, #tpu.memory_space<vmem>>, vector<32x16xf32>
      %cst_118 = arith.constant dense<0.000000e+00> : vector<32x16xf32>
      %188 = tpu.matmul %186, %4, %cst_118 {dimension_numbers = #tpu.dot_dimension_numbers<[1], [0], [0], [1], [0, 0, 1, 1], [], []>} : vector<32x4xf32>, vector<4x16xf32>, vector<32x16xf32> -> vector<32x16xf32>
      %189 = vector.broadcast %10 : vector<1x16xf32> to vector<32x16xf32>
      %190 = arith.addf %188, %189 : vector<32x16xf32>
      %cst_119 = arith.constant dense<0.000000e+00> : vector<32x16xf32>
      %191 = tpu.matmul %186, %6, %cst_119 {dimension_numbers = #tpu.dot_dimension_numbers<[1], [0], [0], [1], [0, 0, 1, 1], [], []>} : vector<32x4xf32>, vector<4x16xf32>, vector<32x16xf32> -> vector<32x16xf32>
      %192 = vector.broadcast %12 : vector<1x16xf32> to vector<32x16xf32>
      %193 = arith.addf %191, %192 : vector<32x16xf32>
      %cst_120 = arith.constant dense<0.000000e+00> : vector<32x16xf32>
      %194 = tpu.matmul %186, %8, %cst_120 {dimension_numbers = #tpu.dot_dimension_numbers<[1], [0], [0], [1], [0, 0, 1, 1], [], []>} : vector<32x4xf32>, vector<4x16xf32>, vector<32x16xf32> -> vector<32x16xf32>
      %195 = vector.broadcast %14 : vector<1x16xf32> to vector<32x16xf32>
      %196 = arith.addf %194, %195 : vector<32x16xf32>
      %cst_121 = arith.constant dense<0.000000e+00> : vector<32x16xf32>
      %197 = tpu.matmul %187, %16, %cst_121 {dimension_numbers = #tpu.dot_dimension_numbers<[1], [0], [0], [1], [0, 0, 1, 1], [], []>} : vector<32x16xf32>, vector<16x16xf32>, vector<32x16xf32> -> vector<32x16xf32>
      %cst_122 = arith.constant dense<0.000000e+00> : vector<32x16xf32>
      %198 = tpu.matmul %187, %18, %cst_122 {dimension_numbers = #tpu.dot_dimension_numbers<[1], [0], [0], [1], [0, 0, 1, 1], [], []>} : vector<32x16xf32>, vector<16x16xf32>, vector<32x16xf32> -> vector<32x16xf32>
      %cst_123 = arith.constant dense<0.000000e+00> : vector<32x16xf32>
      %199 = tpu.matmul %187, %20, %cst_123 {dimension_numbers = #tpu.dot_dimension_numbers<[1], [0], [0], [1], [0, 0, 1, 1], [], []>} : vector<32x16xf32>, vector<16x16xf32>, vector<32x16xf32> -> vector<32x16xf32>
      %200 = arith.addf %190, %197 : vector<32x16xf32>
      %201 = arith.negf %200 : vector<32x16xf32>
      %202 = math.exp %201 : vector<32x16xf32>
      %cst_124 = arith.constant 1.000000e+00 : f32
      %203 = vector.broadcast %cst_124 : f32 to vector<32x16xf32>
      %204 = arith.addf %203, %202 : vector<32x16xf32>
      %205 = arith.divf %203, %204 : vector<32x16xf32>
      %206 = arith.addf %193, %198 : vector<32x16xf32>
      %207 = arith.negf %206 : vector<32x16xf32>
      %208 = math.exp %207 : vector<32x16xf32>
      %cst_125 = arith.constant 1.000000e+00 : f32
      %209 = vector.broadcast %cst_125 : f32 to vector<32x16xf32>
      %210 = arith.addf %209, %208 : vector<32x16xf32>
      %211 = arith.divf %209, %210 : vector<32x16xf32>
      %212 = vector.broadcast %22 : vector<1x16xf32> to vector<32x16xf32>
      %213 = arith.addf %199, %212 : vector<32x16xf32>
      %214 = arith.mulf %205, %213 : vector<32x16xf32>
      %215 = arith.addf %196, %214 : vector<32x16xf32>
      %216 = math.tanh %215 : vector<32x16xf32>
      %217 = arith.subf %187, %216 : vector<32x16xf32>
      %218 = arith.mulf %211, %217 : vector<32x16xf32>
      %219 = arith.addf %216, %218 : vector<32x16xf32>
      %c0_126 = arith.constant 0 : index
      %c0_127 = arith.constant 0 : index
      %220 = vector.load %arg9[%c0_126, %c0_127] : memref<32x16xf32, #tpu.memory_space<vmem>>, vector<32x16xf32>
      tpu.vector_store %arg9[%c0_126, %c0_127], %219 {strides = array<i32>} : memref<32x16xf32, #tpu.memory_space<vmem>>, vector<32x16xf32>,
      %c0_128 = arith.constant 0 : index
      %c4_129 = arith.constant 4 : index
      %c0_130 = arith.constant 0 : index
      %c0_131 = arith.constant 0 : index
      %221 = vector.load %arg8[%c0_128, %c4_129, %c0_130, %c0_131] : memref<1x8x32x16xf32, #tpu.memory_space<vmem>>, vector<1x1x32x16xf32>
      %222 = vector.shape_cast %221 : vector<1x1x32x16xf32> to vector<32x16xf32>
      %223 = vector.shape_cast %219 : vector<32x16xf32> to vector<1x1x32x16xf32>
      tpu.vector_store %arg8[%c0_128, %c4_129, %c0_130, %c0_131], %223 {strides = array<i32>} : memref<1x8x32x16xf32, #tpu.memory_space<vmem>>, vector<1x1x32x16xf32>,
      %c5 = arith.constant 5 : index
      %c0_132 = arith.constant 0 : index
      %c0_133 = arith.constant 0 : index
      %224 = vector.load %arg3[%c5, %c0_132, %c0_133] : memref<8x32x4xf32, #tpu.memory_space<vmem>>, vector<1x32x4xf32>
      %225 = vector.shape_cast %224 : vector<1x32x4xf32> to vector<32x4xf32>
      %c0_134 = arith.constant 0 : index
      %c0_135 = arith.constant 0 : index
      %226 = vector.load %arg9[%c0_134, %c0_135] : memref<32x16xf32, #tpu.memory_space<vmem>>, vector<32x16xf32>
      %cst_136 = arith.constant dense<0.000000e+00> : vector<32x16xf32>
      %227 = tpu.matmul %225, %4, %cst_136 {dimension_numbers = #tpu.dot_dimension_numbers<[1], [0], [0], [1], [0, 0, 1, 1], [], []>} : vector<32x4xf32>, vector<4x16xf32>, vector<32x16xf32> -> vector<32x16xf32>
      %228 = vector.broadcast %10 : vector<1x16xf32> to vector<32x16xf32>
      %229 = arith.addf %227, %228 : vector<32x16xf32>
      %cst_137 = arith.constant dense<0.000000e+00> : vector<32x16xf32>
      %230 = tpu.matmul %225, %6, %cst_137 {dimension_numbers = #tpu.dot_dimension_numbers<[1], [0], [0], [1], [0, 0, 1, 1], [], []>} : vector<32x4xf32>, vector<4x16xf32>, vector<32x16xf32> -> vector<32x16xf32>
      %231 = vector.broadcast %12 : vector<1x16xf32> to vector<32x16xf32>
      %232 = arith.addf %230, %231 : vector<32x16xf32>
      %cst_138 = arith.constant dense<0.000000e+00> : vector<32x16xf32>
      %233 = tpu.matmul %225, %8, %cst_138 {dimension_numbers = #tpu.dot_dimension_numbers<[1], [0], [0], [1], [0, 0, 1, 1], [], []>} : vector<32x4xf32>, vector<4x16xf32>, vector<32x16xf32> -> vector<32x16xf32>
      %234 = vector.broadcast %14 : vector<1x16xf32> to vector<32x16xf32>
      %235 = arith.addf %233, %234 : vector<32x16xf32>
      %cst_139 = arith.constant dense<0.000000e+00> : vector<32x16xf32>
      %236 = tpu.matmul %226, %16, %cst_139 {dimension_numbers = #tpu.dot_dimension_numbers<[1], [0], [0], [1], [0, 0, 1, 1], [], []>} : vector<32x16xf32>, vector<16x16xf32>, vector<32x16xf32> -> vector<32x16xf32>
      %cst_140 = arith.constant dense<0.000000e+00> : vector<32x16xf32>
      %237 = tpu.matmul %226, %18, %cst_140 {dimension_numbers = #tpu.dot_dimension_numbers<[1], [0], [0], [1], [0, 0, 1, 1], [], []>} : vector<32x16xf32>, vector<16x16xf32>, vector<32x16xf32> -> vector<32x16xf32>
      %cst_141 = arith.constant dense<0.000000e+00> : vector<32x16xf32>
      %238 = tpu.matmul %226, %20, %cst_141 {dimension_numbers = #tpu.dot_dimension_numbers<[1], [0], [0], [1], [0, 0, 1, 1], [], []>} : vector<32x16xf32>, vector<16x16xf32>, vector<32x16xf32> -> vector<32x16xf32>
      %239 = arith.addf %229, %236 : vector<32x16xf32>
      %240 = arith.negf %239 : vector<32x16xf32>
      %241 = math.exp %240 : vector<32x16xf32>
      %cst_142 = arith.constant 1.000000e+00 : f32
      %242 = vector.broadcast %cst_142 : f32 to vector<32x16xf32>
      %243 = arith.addf %242, %241 : vector<32x16xf32>
      %244 = arith.divf %242, %243 : vector<32x16xf32>
      %245 = arith.addf %232, %237 : vector<32x16xf32>
      %246 = arith.negf %245 : vector<32x16xf32>
      %247 = math.exp %246 : vector<32x16xf32>
      %cst_143 = arith.constant 1.000000e+00 : f32
      %248 = vector.broadcast %cst_143 : f32 to vector<32x16xf32>
      %249 = arith.addf %248, %247 : vector<32x16xf32>
      %250 = arith.divf %248, %249 : vector<32x16xf32>
      %251 = vector.broadcast %22 : vector<1x16xf32> to vector<32x16xf32>
      %252 = arith.addf %238, %251 : vector<32x16xf32>
      %253 = arith.mulf %244, %252 : vector<32x16xf32>
      %254 = arith.addf %235, %253 : vector<32x16xf32>
      %255 = math.tanh %254 : vector<32x16xf32>
      %256 = arith.subf %226, %255 : vector<32x16xf32>
      %257 = arith.mulf %250, %256 : vector<32x16xf32>
      %258 = arith.addf %255, %257 : vector<32x16xf32>
      %c0_144 = arith.constant 0 : index
      %c0_145 = arith.constant 0 : index
      %259 = vector.load %arg9[%c0_144, %c0_145] : memref<32x16xf32, #tpu.memory_space<vmem>>, vector<32x16xf32>
      tpu.vector_store %arg9[%c0_144, %c0_145], %258 {strides = array<i32>} : memref<32x16xf32, #tpu.memory_space<vmem>>, vector<32x16xf32>,
      %c0_146 = arith.constant 0 : index
      %c5_147 = arith.constant 5 : index
      %c0_148 = arith.constant 0 : index
      %c0_149 = arith.constant 0 : index
      %260 = vector.load %arg8[%c0_146, %c5_147, %c0_148, %c0_149] : memref<1x8x32x16xf32, #tpu.memory_space<vmem>>, vector<1x1x32x16xf32>
      %261 = vector.shape_cast %260 : vector<1x1x32x16xf32> to vector<32x16xf32>
      %262 = vector.shape_cast %258 : vector<32x16xf32> to vector<1x1x32x16xf32>
      tpu.vector_store %arg8[%c0_146, %c5_147, %c0_148, %c0_149], %262 {strides = array<i32>} : memref<1x8x32x16xf32, #tpu.memory_space<vmem>>, vector<1x1x32x16xf32>,
      %c6 = arith.constant 6 : index
      %c0_150 = arith.constant 0 : index
      %c0_151 = arith.constant 0 : index
      %263 = vector.load %arg3[%c6, %c0_150, %c0_151] : memref<8x32x4xf32, #tpu.memory_space<vmem>>, vector<1x32x4xf32>
      %264 = vector.shape_cast %263 : vector<1x32x4xf32> to vector<32x4xf32>
      %c0_152 = arith.constant 0 : index
      %c0_153 = arith.constant 0 : index
      %265 = vector.load %arg9[%c0_152, %c0_153] : memref<32x16xf32, #tpu.memory_space<vmem>>, vector<32x16xf32>
      %cst_154 = arith.constant dense<0.000000e+00> : vector<32x16xf32>
      %266 = tpu.matmul %264, %4, %cst_154 {dimension_numbers = #tpu.dot_dimension_numbers<[1], [0], [0], [1], [0, 0, 1, 1], [], []>} : vector<32x4xf32>, vector<4x16xf32>, vector<32x16xf32> -> vector<32x16xf32>
      %267 = vector.broadcast %10 : vector<1x16xf32> to vector<32x16xf32>
      %268 = arith.addf %266, %267 : vector<32x16xf32>
      %cst_155 = arith.constant dense<0.000000e+00> : vector<32x16xf32>
      %269 = tpu.matmul %264, %6, %cst_155 {dimension_numbers = #tpu.dot_dimension_numbers<[1], [0], [0], [1], [0, 0, 1, 1], [], []>} : vector<32x4xf32>, vector<4x16xf32>, vector<32x16xf32> -> vector<32x16xf32>
      %270 = vector.broadcast %12 : vector<1x16xf32> to vector<32x16xf32>
      %271 = arith.addf %269, %270 : vector<32x16xf32>
      %cst_156 = arith.constant dense<0.000000e+00> : vector<32x16xf32>
      %272 = tpu.matmul %264, %8, %cst_156 {dimension_numbers = #tpu.dot_dimension_numbers<[1], [0], [0], [1], [0, 0, 1, 1], [], []>} : vector<32x4xf32>, vector<4x16xf32>, vector<32x16xf32> -> vector<32x16xf32>
      %273 = vector.broadcast %14 : vector<1x16xf32> to vector<32x16xf32>
      %274 = arith.addf %272, %273 : vector<32x16xf32>
      %cst_157 = arith.constant dense<0.000000e+00> : vector<32x16xf32>
      %275 = tpu.matmul %265, %16, %cst_157 {dimension_numbers = #tpu.dot_dimension_numbers<[1], [0], [0], [1], [0, 0, 1, 1], [], []>} : vector<32x16xf32>, vector<16x16xf32>, vector<32x16xf32> -> vector<32x16xf32>
      %cst_158 = arith.constant dense<0.000000e+00> : vector<32x16xf32>
      %276 = tpu.matmul %265, %18, %cst_158 {dimension_numbers = #tpu.dot_dimension_numbers<[1], [0], [0], [1], [0, 0, 1, 1], [], []>} : vector<32x16xf32>, vector<16x16xf32>, vector<32x16xf32> -> vector<32x16xf32>
      %cst_159 = arith.constant dense<0.000000e+00> : vector<32x16xf32>
      %277 = tpu.matmul %265, %20, %cst_159 {dimension_numbers = #tpu.dot_dimension_numbers<[1], [0], [0], [1], [0, 0, 1, 1], [], []>} : vector<32x16xf32>, vector<16x16xf32>, vector<32x16xf32> -> vector<32x16xf32>
      %278 = arith.addf %268, %275 : vector<32x16xf32>
      %279 = arith.negf %278 : vector<32x16xf32>
      %280 = math.exp %279 : vector<32x16xf32>
      %cst_160 = arith.constant 1.000000e+00 : f32
      %281 = vector.broadcast %cst_160 : f32 to vector<32x16xf32>
      %282 = arith.addf %281, %280 : vector<32x16xf32>
      %283 = arith.divf %281, %282 : vector<32x16xf32>
      %284 = arith.addf %271, %276 : vector<32x16xf32>
      %285 = arith.negf %284 : vector<32x16xf32>
      %286 = math.exp %285 : vector<32x16xf32>
      %cst_161 = arith.constant 1.000000e+00 : f32
      %287 = vector.broadcast %cst_161 : f32 to vector<32x16xf32>
      %288 = arith.addf %287, %286 : vector<32x16xf32>
      %289 = arith.divf %287, %288 : vector<32x16xf32>
      %290 = vector.broadcast %22 : vector<1x16xf32> to vector<32x16xf32>
      %291 = arith.addf %277, %290 : vector<32x16xf32>
      %292 = arith.mulf %283, %291 : vector<32x16xf32>
      %293 = arith.addf %274, %292 : vector<32x16xf32>
      %294 = math.tanh %293 : vector<32x16xf32>
      %295 = arith.subf %265, %294 : vector<32x16xf32>
      %296 = arith.mulf %289, %295 : vector<32x16xf32>
      %297 = arith.addf %294, %296 : vector<32x16xf32>
      %c0_162 = arith.constant 0 : index
      %c0_163 = arith.constant 0 : index
      %298 = vector.load %arg9[%c0_162, %c0_163] : memref<32x16xf32, #tpu.memory_space<vmem>>, vector<32x16xf32>
      tpu.vector_store %arg9[%c0_162, %c0_163], %297 {strides = array<i32>} : memref<32x16xf32, #tpu.memory_space<vmem>>, vector<32x16xf32>,
      %c0_164 = arith.constant 0 : index
      %c6_165 = arith.constant 6 : index
      %c0_166 = arith.constant 0 : index
      %c0_167 = arith.constant 0 : index
      %299 = vector.load %arg8[%c0_164, %c6_165, %c0_166, %c0_167] : memref<1x8x32x16xf32, #tpu.memory_space<vmem>>, vector<1x1x32x16xf32>
      %300 = vector.shape_cast %299 : vector<1x1x32x16xf32> to vector<32x16xf32>
      %301 = vector.shape_cast %297 : vector<32x16xf32> to vector<1x1x32x16xf32>
      tpu.vector_store %arg8[%c0_164, %c6_165, %c0_166, %c0_167], %301 {strides = array<i32>} : memref<1x8x32x16xf32, #tpu.memory_space<vmem>>, vector<1x1x32x16xf32>,
      %c7 = arith.constant 7 : index
      %c0_168 = arith.constant 0 : index
      %c0_169 = arith.constant 0 : index
      %302 = vector.load %arg3[%c7, %c0_168, %c0_169] : memref<8x32x4xf32, #tpu.memory_space<vmem>>, vector<1x32x4xf32>
      %303 = vector.shape_cast %302 : vector<1x32x4xf32> to vector<32x4xf32>
      %c0_170 = arith.constant 0 : index
      %c0_171 = arith.constant 0 : index
      %304 = vector.load %arg9[%c0_170, %c0_171] : memref<32x16xf32, #tpu.memory_space<vmem>>, vector<32x16xf32>
      %cst_172 = arith.constant dense<0.000000e+00> : vector<32x16xf32>
      %305 = tpu.matmul %303, %4, %cst_172 {dimension_numbers = #tpu.dot_dimension_numbers<[1], [0], [0], [1], [0, 0, 1, 1], [], []>} : vector<32x4xf32>, vector<4x16xf32>, vector<32x16xf32> -> vector<32x16xf32>
      %306 = vector.broadcast %10 : vector<1x16xf32> to vector<32x16xf32>
      %307 = arith.addf %305, %306 : vector<32x16xf32>
      %cst_173 = arith.constant dense<0.000000e+00> : vector<32x16xf32>
      %308 = tpu.matmul %303, %6, %cst_173 {dimension_numbers = #tpu.dot_dimension_numbers<[1], [0], [0], [1], [0, 0, 1, 1], [], []>} : vector<32x4xf32>, vector<4x16xf32>, vector<32x16xf32> -> vector<32x16xf32>
      %309 = vector.broadcast %12 : vector<1x16xf32> to vector<32x16xf32>
      %310 = arith.addf %308, %309 : vector<32x16xf32>
      %cst_174 = arith.constant dense<0.000000e+00> : vector<32x16xf32>
      %311 = tpu.matmul %303, %8, %cst_174 {dimension_numbers = #tpu.dot_dimension_numbers<[1], [0], [0], [1], [0, 0, 1, 1], [], []>} : vector<32x4xf32>, vector<4x16xf32>, vector<32x16xf32> -> vector<32x16xf32>
      %312 = vector.broadcast %14 : vector<1x16xf32> to vector<32x16xf32>
      %313 = arith.addf %311, %312 : vector<32x16xf32>
      %cst_175 = arith.constant dense<0.000000e+00> : vector<32x16xf32>
      %314 = tpu.matmul %304, %16, %cst_175 {dimension_numbers = #tpu.dot_dimension_numbers<[1], [0], [0], [1], [0, 0, 1, 1], [], []>} : vector<32x16xf32>, vector<16x16xf32>, vector<32x16xf32> -> vector<32x16xf32>
      %cst_176 = arith.constant dense<0.000000e+00> : vector<32x16xf32>
      %315 = tpu.matmul %304, %18, %cst_176 {dimension_numbers = #tpu.dot_dimension_numbers<[1], [0], [0], [1], [0, 0, 1, 1], [], []>} : vector<32x16xf32>, vector<16x16xf32>, vector<32x16xf32> -> vector<32x16xf32>
      %cst_177 = arith.constant dense<0.000000e+00> : vector<32x16xf32>
      %316 = tpu.matmul %304, %20, %cst_177 {dimension_numbers = #tpu.dot_dimension_numbers<[1], [0], [0], [1], [0, 0, 1, 1], [], []>} : vector<32x16xf32>, vector<16x16xf32>, vector<32x16xf32> -> vector<32x16xf32>
      %317 = arith.addf %307, %314 : vector<32x16xf32>
      %318 = arith.negf %317 : vector<32x16xf32>
      %319 = math.exp %318 : vector<32x16xf32>
      %cst_178 = arith.constant 1.000000e+00 : f32
      %320 = vector.broadcast %cst_178 : f32 to vector<32x16xf32>
      %321 = arith.addf %320, %319 : vector<32x16xf32>
      %322 = arith.divf %320, %321 : vector<32x16xf32>
      %323 = arith.addf %310, %315 : vector<32x16xf32>
      %324 = arith.negf %323 : vector<32x16xf32>
      %325 = math.exp %324 : vector<32x16xf32>
      %cst_179 = arith.constant 1.000000e+00 : f32
      %326 = vector.broadcast %cst_179 : f32 to vector<32x16xf32>
      %327 = arith.addf %326, %325 : vector<32x16xf32>
      %328 = arith.divf %326, %327 : vector<32x16xf32>
      %329 = vector.broadcast %22 : vector<1x16xf32> to vector<32x16xf32>
      %330 = arith.addf %316, %329 : vector<32x16xf32>
      %331 = arith.mulf %322, %330 : vector<32x16xf32>
      %332 = arith.addf %313, %331 : vector<32x16xf32>
      %333 = math.tanh %332 : vector<32x16xf32>
      %334 = arith.subf %304, %333 : vector<32x16xf32>
      %335 = arith.mulf %328, %334 : vector<32x16xf32>
      %336 = arith.addf %333, %335 : vector<32x16xf32>
      %c0_180 = arith.constant 0 : index
      %c0_181 = arith.constant 0 : index
      %337 = vector.load %arg9[%c0_180, %c0_181] : memref<32x16xf32, #tpu.memory_space<vmem>>, vector<32x16xf32>
      tpu.vector_store %arg9[%c0_180, %c0_181], %336 {strides = array<i32>} : memref<32x16xf32, #tpu.memory_space<vmem>>, vector<32x16xf32>,
      %c0_182 = arith.constant 0 : index
      %c7_183 = arith.constant 7 : index
      %c0_184 = arith.constant 0 : index
      %c0_185 = arith.constant 0 : index
      %338 = vector.load %arg8[%c0_182, %c7_183, %c0_184, %c0_185] : memref<1x8x32x16xf32, #tpu.memory_space<vmem>>, vector<1x1x32x16xf32>
      %339 = vector.shape_cast %338 : vector<1x1x32x16xf32> to vector<32x16xf32>
      %340 = vector.shape_cast %336 : vector<32x16xf32> to vector<1x1x32x16xf32>
      tpu.vector_store %arg8[%c0_182, %c7_183, %c0_184, %c0_185], %340 {strides = array<i32>} : memref<1x8x32x16xf32, #tpu.memory_space<vmem>>, vector<1x1x32x16xf32>,
    } else {
    }
    %c1_i32 = arith.constant 1 : i32
    %26 = arith.cmpi eq, %arg0, %c1_i32 : i32
    %27 = arith.extui %26 : i1 to i32
    %c0_i32_39 = arith.constant 0 : i32
    %28 = arith.cmpi ne, %27, %c0_i32_39 : i32
    scf.if %28 {
      %c7 = arith.constant 7 : index
      %c0_40 = arith.constant 0 : index
      %c0_41 = arith.constant 0 : index
      %29 = vector.load %arg3[%c7, %c0_40, %c0_41] : memref<8x32x4xf32, #tpu.memory_space<vmem>>, vector<1x32x4xf32>
      %30 = vector.shape_cast %29 : vector<1x32x4xf32> to vector<32x4xf32>
      %c0_42 = arith.constant 0 : index
      %c0_43 = arith.constant 0 : index
      %31 = vector.load %arg9[%c0_42, %c0_43] : memref<32x16xf32, #tpu.memory_space<vmem>>, vector<32x16xf32>
      %cst = arith.constant dense<0.000000e+00> : vector<32x16xf32>
      %32 = tpu.matmul %30, %4, %cst {dimension_numbers = #tpu.dot_dimension_numbers<[1], [0], [0], [1], [0, 0, 1, 1], [], []>} : vector<32x4xf32>, vector<4x16xf32>, vector<32x16xf32> -> vector<32x16xf32>
      %33 = vector.broadcast %10 : vector<1x16xf32> to vector<32x16xf32>
      %34 = arith.addf %32, %33 : vector<32x16xf32>
      %cst_44 = arith.constant dense<0.000000e+00> : vector<32x16xf32>
      %35 = tpu.matmul %30, %6, %cst_44 {dimension_numbers = #tpu.dot_dimension_numbers<[1], [0], [0], [1], [0, 0, 1, 1], [], []>} : vector<32x4xf32>, vector<4x16xf32>, vector<32x16xf32> -> vector<32x16xf32>
      %36 = vector.broadcast %12 : vector<1x16xf32> to vector<32x16xf32>
      %37 = arith.addf %35, %36 : vector<32x16xf32>
      %cst_45 = arith.constant dense<0.000000e+00> : vector<32x16xf32>
      %38 = tpu.matmul %30, %8, %cst_45 {dimension_numbers = #tpu.dot_dimension_numbers<[1], [0], [0], [1], [0, 0, 1, 1], [], []>} : vector<32x4xf32>, vector<4x16xf32>, vector<32x16xf32> -> vector<32x16xf32>
      %39 = vector.broadcast %14 : vector<1x16xf32> to vector<32x16xf32>
      %40 = arith.addf %38, %39 : vector<32x16xf32>
      %cst_46 = arith.constant dense<0.000000e+00> : vector<32x16xf32>
      %41 = tpu.matmul %31, %16, %cst_46 {dimension_numbers = #tpu.dot_dimension_numbers<[1], [0], [0], [1], [0, 0, 1, 1], [], []>} : vector<32x16xf32>, vector<16x16xf32>, vector<32x16xf32> -> vector<32x16xf32>
      %cst_47 = arith.constant dense<0.000000e+00> : vector<32x16xf32>
      %42 = tpu.matmul %31, %18, %cst_47 {dimension_numbers = #tpu.dot_dimension_numbers<[1], [0], [0], [1], [0, 0, 1, 1], [], []>} : vector<32x16xf32>, vector<16x16xf32>, vector<32x16xf32> -> vector<32x16xf32>
      %cst_48 = arith.constant dense<0.000000e+00> : vector<32x16xf32>
      %43 = tpu.matmul %31, %20, %cst_48 {dimension_numbers = #tpu.dot_dimension_numbers<[1], [0], [0], [1], [0, 0, 1, 1], [], []>} : vector<32x16xf32>, vector<16x16xf32>, vector<32x16xf32> -> vector<32x16xf32>
      %44 = arith.addf %34, %41 : vector<32x16xf32>
      %45 = arith.negf %44 : vector<32x16xf32>
      %46 = math.exp %45 : vector<32x16xf32>
      %cst_49 = arith.constant 1.000000e+00 : f32
      %47 = vector.broadcast %cst_49 : f32 to vector<32x16xf32>
      %48 = arith.addf %47, %46 : vector<32x16xf32>
      %49 = arith.divf %47, %48 : vector<32x16xf32>
      %50 = arith.addf %37, %42 : vector<32x16xf32>
      %51 = arith.negf %50 : vector<32x16xf32>
      %52 = math.exp %51 : vector<32x16xf32>
      %cst_50 = arith.constant 1.000000e+00 : f32
      %53 = vector.broadcast %cst_50 : f32 to vector<32x16xf32>
      %54 = arith.addf %53, %52 : vector<32x16xf32>
      %55 = arith.divf %53, %54 : vector<32x16xf32>
      %56 = vector.broadcast %22 : vector<1x16xf32> to vector<32x16xf32>
      %57 = arith.addf %43, %56 : vector<32x16xf32>
      %58 = arith.mulf %49, %57 : vector<32x16xf32>
      %59 = arith.addf %40, %58 : vector<32x16xf32>
      %60 = math.tanh %59 : vector<32x16xf32>
      %61 = arith.subf %31, %60 : vector<32x16xf32>
      %62 = arith.mulf %55, %61 : vector<32x16xf32>
      %63 = arith.addf %60, %62 : vector<32x16xf32>
      %c0_51 = arith.constant 0 : index
      %c0_52 = arith.constant 0 : index
      %64 = vector.load %arg9[%c0_51, %c0_52] : memref<32x16xf32, #tpu.memory_space<vmem>>, vector<32x16xf32>
      tpu.vector_store %arg9[%c0_51, %c0_52], %63 {strides = array<i32>} : memref<32x16xf32, #tpu.memory_space<vmem>>, vector<32x16xf32>,
      %c0_53 = arith.constant 0 : index
      %c7_54 = arith.constant 7 : index
      %c0_55 = arith.constant 0 : index
      %c0_56 = arith.constant 0 : index
      %65 = vector.load %arg8[%c0_53, %c7_54, %c0_55, %c0_56] : memref<1x8x32x16xf32, #tpu.memory_space<vmem>>, vector<1x1x32x16xf32>
      %66 = vector.shape_cast %65 : vector<1x1x32x16xf32> to vector<32x16xf32>
      %67 = vector.shape_cast %63 : vector<32x16xf32> to vector<1x1x32x16xf32>
      tpu.vector_store %arg8[%c0_53, %c7_54, %c0_55, %c0_56], %67 {strides = array<i32>} : memref<1x8x32x16xf32, #tpu.memory_space<vmem>>, vector<1x1x32x16xf32>,
      %c6 = arith.constant 6 : index
      %c0_57 = arith.constant 0 : index
      %c0_58 = arith.constant 0 : index
      %68 = vector.load %arg3[%c6, %c0_57, %c0_58] : memref<8x32x4xf32, #tpu.memory_space<vmem>>, vector<1x32x4xf32>
      %69 = vector.shape_cast %68 : vector<1x32x4xf32> to vector<32x4xf32>
      %c0_59 = arith.constant 0 : index
      %c0_60 = arith.constant 0 : index
      %70 = vector.load %arg9[%c0_59, %c0_60] : memref<32x16xf32, #tpu.memory_space<vmem>>, vector<32x16xf32>
      %cst_61 = arith.constant dense<0.000000e+00> : vector<32x16xf32>
      %71 = tpu.matmul %69, %4, %cst_61 {dimension_numbers = #tpu.dot_dimension_numbers<[1], [0], [0], [1], [0, 0, 1, 1], [], []>} : vector<32x4xf32>, vector<4x16xf32>, vector<32x16xf32> -> vector<32x16xf32>
      %72 = vector.broadcast %10 : vector<1x16xf32> to vector<32x16xf32>
      %73 = arith.addf %71, %72 : vector<32x16xf32>
      %cst_62 = arith.constant dense<0.000000e+00> : vector<32x16xf32>
      %74 = tpu.matmul %69, %6, %cst_62 {dimension_numbers = #tpu.dot_dimension_numbers<[1], [0], [0], [1], [0, 0, 1, 1], [], []>} : vector<32x4xf32>, vector<4x16xf32>, vector<32x16xf32> -> vector<32x16xf32>
      %75 = vector.broadcast %12 : vector<1x16xf32> to vector<32x16xf32>
      %76 = arith.addf %74, %75 : vector<32x16xf32>
      %cst_63 = arith.constant dense<0.000000e+00> : vector<32x16xf32>
      %77 = tpu.matmul %69, %8, %cst_63 {dimension_numbers = #tpu.dot_dimension_numbers<[1], [0], [0], [1], [0, 0, 1, 1], [], []>} : vector<32x4xf32>, vector<4x16xf32>, vector<32x16xf32> -> vector<32x16xf32>
      %78 = vector.broadcast %14 : vector<1x16xf32> to vector<32x16xf32>
      %79 = arith.addf %77, %78 : vector<32x16xf32>
      %cst_64 = arith.constant dense<0.000000e+00> : vector<32x16xf32>
      %80 = tpu.matmul %70, %16, %cst_64 {dimension_numbers = #tpu.dot_dimension_numbers<[1], [0], [0], [1], [0, 0, 1, 1], [], []>} : vector<32x16xf32>, vector<16x16xf32>, vector<32x16xf32> -> vector<32x16xf32>
      %cst_65 = arith.constant dense<0.000000e+00> : vector<32x16xf32>
      %81 = tpu.matmul %70, %18, %cst_65 {dimension_numbers = #tpu.dot_dimension_numbers<[1], [0], [0], [1], [0, 0, 1, 1], [], []>} : vector<32x16xf32>, vector<16x16xf32>, vector<32x16xf32> -> vector<32x16xf32>
      %cst_66 = arith.constant dense<0.000000e+00> : vector<32x16xf32>
      %82 = tpu.matmul %70, %20, %cst_66 {dimension_numbers = #tpu.dot_dimension_numbers<[1], [0], [0], [1], [0, 0, 1, 1], [], []>} : vector<32x16xf32>, vector<16x16xf32>, vector<32x16xf32> -> vector<32x16xf32>
      %83 = arith.addf %73, %80 : vector<32x16xf32>
      %84 = arith.negf %83 : vector<32x16xf32>
      %85 = math.exp %84 : vector<32x16xf32>
      %cst_67 = arith.constant 1.000000e+00 : f32
      %86 = vector.broadcast %cst_67 : f32 to vector<32x16xf32>
      %87 = arith.addf %86, %85 : vector<32x16xf32>
      %88 = arith.divf %86, %87 : vector<32x16xf32>
      %89 = arith.addf %76, %81 : vector<32x16xf32>
      %90 = arith.negf %89 : vector<32x16xf32>
      %91 = math.exp %90 : vector<32x16xf32>
      %cst_68 = arith.constant 1.000000e+00 : f32
      %92 = vector.broadcast %cst_68 : f32 to vector<32x16xf32>
      %93 = arith.addf %92, %91 : vector<32x16xf32>
      %94 = arith.divf %92, %93 : vector<32x16xf32>
      %95 = vector.broadcast %22 : vector<1x16xf32> to vector<32x16xf32>
      %96 = arith.addf %82, %95 : vector<32x16xf32>
      %97 = arith.mulf %88, %96 : vector<32x16xf32>
      %98 = arith.addf %79, %97 : vector<32x16xf32>
      %99 = math.tanh %98 : vector<32x16xf32>
      %100 = arith.subf %70, %99 : vector<32x16xf32>
      %101 = arith.mulf %94, %100 : vector<32x16xf32>
      %102 = arith.addf %99, %101 : vector<32x16xf32>
      %c0_69 = arith.constant 0 : index
      %c0_70 = arith.constant 0 : index
      %103 = vector.load %arg9[%c0_69, %c0_70] : memref<32x16xf32, #tpu.memory_space<vmem>>, vector<32x16xf32>
      tpu.vector_store %arg9[%c0_69, %c0_70], %102 {strides = array<i32>} : memref<32x16xf32, #tpu.memory_space<vmem>>, vector<32x16xf32>,
      %c0_71 = arith.constant 0 : index
      %c6_72 = arith.constant 6 : index
      %c0_73 = arith.constant 0 : index
      %c0_74 = arith.constant 0 : index
      %104 = vector.load %arg8[%c0_71, %c6_72, %c0_73, %c0_74] : memref<1x8x32x16xf32, #tpu.memory_space<vmem>>, vector<1x1x32x16xf32>
      %105 = vector.shape_cast %104 : vector<1x1x32x16xf32> to vector<32x16xf32>
      %106 = vector.shape_cast %102 : vector<32x16xf32> to vector<1x1x32x16xf32>
      tpu.vector_store %arg8[%c0_71, %c6_72, %c0_73, %c0_74], %106 {strides = array<i32>} : memref<1x8x32x16xf32, #tpu.memory_space<vmem>>, vector<1x1x32x16xf32>,
      %c5 = arith.constant 5 : index
      %c0_75 = arith.constant 0 : index
      %c0_76 = arith.constant 0 : index
      %107 = vector.load %arg3[%c5, %c0_75, %c0_76] : memref<8x32x4xf32, #tpu.memory_space<vmem>>, vector<1x32x4xf32>
      %108 = vector.shape_cast %107 : vector<1x32x4xf32> to vector<32x4xf32>
      %c0_77 = arith.constant 0 : index
      %c0_78 = arith.constant 0 : index
      %109 = vector.load %arg9[%c0_77, %c0_78] : memref<32x16xf32, #tpu.memory_space<vmem>>, vector<32x16xf32>
      %cst_79 = arith.constant dense<0.000000e+00> : vector<32x16xf32>
      %110 = tpu.matmul %108, %4, %cst_79 {dimension_numbers = #tpu.dot_dimension_numbers<[1], [0], [0], [1], [0, 0, 1, 1], [], []>} : vector<32x4xf32>, vector<4x16xf32>, vector<32x16xf32> -> vector<32x16xf32>
      %111 = vector.broadcast %10 : vector<1x16xf32> to vector<32x16xf32>
      %112 = arith.addf %110, %111 : vector<32x16xf32>
      %cst_80 = arith.constant dense<0.000000e+00> : vector<32x16xf32>
      %113 = tpu.matmul %108, %6, %cst_80 {dimension_numbers = #tpu.dot_dimension_numbers<[1], [0], [0], [1], [0, 0, 1, 1], [], []>} : vector<32x4xf32>, vector<4x16xf32>, vector<32x16xf32> -> vector<32x16xf32>
      %114 = vector.broadcast %12 : vector<1x16xf32> to vector<32x16xf32>
      %115 = arith.addf %113, %114 : vector<32x16xf32>
      %cst_81 = arith.constant dense<0.000000e+00> : vector<32x16xf32>
      %116 = tpu.matmul %108, %8, %cst_81 {dimension_numbers = #tpu.dot_dimension_numbers<[1], [0], [0], [1], [0, 0, 1, 1], [], []>} : vector<32x4xf32>, vector<4x16xf32>, vector<32x16xf32> -> vector<32x16xf32>
      %117 = vector.broadcast %14 : vector<1x16xf32> to vector<32x16xf32>
      %118 = arith.addf %116, %117 : vector<32x16xf32>
      %cst_82 = arith.constant dense<0.000000e+00> : vector<32x16xf32>
      %119 = tpu.matmul %109, %16, %cst_82 {dimension_numbers = #tpu.dot_dimension_numbers<[1], [0], [0], [1], [0, 0, 1, 1], [], []>} : vector<32x16xf32>, vector<16x16xf32>, vector<32x16xf32> -> vector<32x16xf32>
      %cst_83 = arith.constant dense<0.000000e+00> : vector<32x16xf32>
      %120 = tpu.matmul %109, %18, %cst_83 {dimension_numbers = #tpu.dot_dimension_numbers<[1], [0], [0], [1], [0, 0, 1, 1], [], []>} : vector<32x16xf32>, vector<16x16xf32>, vector<32x16xf32> -> vector<32x16xf32>
      %cst_84 = arith.constant dense<0.000000e+00> : vector<32x16xf32>
      %121 = tpu.matmul %109, %20, %cst_84 {dimension_numbers = #tpu.dot_dimension_numbers<[1], [0], [0], [1], [0, 0, 1, 1], [], []>} : vector<32x16xf32>, vector<16x16xf32>, vector<32x16xf32> -> vector<32x16xf32>
      %122 = arith.addf %112, %119 : vector<32x16xf32>
      %123 = arith.negf %122 : vector<32x16xf32>
      %124 = math.exp %123 : vector<32x16xf32>
      %cst_85 = arith.constant 1.000000e+00 : f32
      %125 = vector.broadcast %cst_85 : f32 to vector<32x16xf32>
      %126 = arith.addf %125, %124 : vector<32x16xf32>
      %127 = arith.divf %125, %126 : vector<32x16xf32>
      %128 = arith.addf %115, %120 : vector<32x16xf32>
      %129 = arith.negf %128 : vector<32x16xf32>
      %130 = math.exp %129 : vector<32x16xf32>
      %cst_86 = arith.constant 1.000000e+00 : f32
      %131 = vector.broadcast %cst_86 : f32 to vector<32x16xf32>
      %132 = arith.addf %131, %130 : vector<32x16xf32>
      %133 = arith.divf %131, %132 : vector<32x16xf32>
      %134 = vector.broadcast %22 : vector<1x16xf32> to vector<32x16xf32>
      %135 = arith.addf %121, %134 : vector<32x16xf32>
      %136 = arith.mulf %127, %135 : vector<32x16xf32>
      %137 = arith.addf %118, %136 : vector<32x16xf32>
      %138 = math.tanh %137 : vector<32x16xf32>
      %139 = arith.subf %109, %138 : vector<32x16xf32>
      %140 = arith.mulf %133, %139 : vector<32x16xf32>
      %141 = arith.addf %138, %140 : vector<32x16xf32>
      %c0_87 = arith.constant 0 : index
      %c0_88 = arith.constant 0 : index
      %142 = vector.load %arg9[%c0_87, %c0_88] : memref<32x16xf32, #tpu.memory_space<vmem>>, vector<32x16xf32>
      tpu.vector_store %arg9[%c0_87, %c0_88], %141 {strides = array<i32>} : memref<32x16xf32, #tpu.memory_space<vmem>>, vector<32x16xf32>,
      %c0_89 = arith.constant 0 : index
      %c5_90 = arith.constant 5 : index
      %c0_91 = arith.constant 0 : index
      %c0_92 = arith.constant 0 : index
      %143 = vector.load %arg8[%c0_89, %c5_90, %c0_91, %c0_92] : memref<1x8x32x16xf32, #tpu.memory_space<vmem>>, vector<1x1x32x16xf32>
      %144 = vector.shape_cast %143 : vector<1x1x32x16xf32> to vector<32x16xf32>
      %145 = vector.shape_cast %141 : vector<32x16xf32> to vector<1x1x32x16xf32>
      tpu.vector_store %arg8[%c0_89, %c5_90, %c0_91, %c0_92], %145 {strides = array<i32>} : memref<1x8x32x16xf32, #tpu.memory_space<vmem>>, vector<1x1x32x16xf32>,
      %c4 = arith.constant 4 : index
      %c0_93 = arith.constant 0 : index
      %c0_94 = arith.constant 0 : index
      %146 = vector.load %arg3[%c4, %c0_93, %c0_94] : memref<8x32x4xf32, #tpu.memory_space<vmem>>, vector<1x32x4xf32>
      %147 = vector.shape_cast %146 : vector<1x32x4xf32> to vector<32x4xf32>
      %c0_95 = arith.constant 0 : index
      %c0_96 = arith.constant 0 : index
      %148 = vector.load %arg9[%c0_95, %c0_96] : memref<32x16xf32, #tpu.memory_space<vmem>>, vector<32x16xf32>
      %cst_97 = arith.constant dense<0.000000e+00> : vector<32x16xf32>
      %149 = tpu.matmul %147, %4, %cst_97 {dimension_numbers = #tpu.dot_dimension_numbers<[1], [0], [0], [1], [0, 0, 1, 1], [], []>} : vector<32x4xf32>, vector<4x16xf32>, vector<32x16xf32> -> vector<32x16xf32>
      %150 = vector.broadcast %10 : vector<1x16xf32> to vector<32x16xf32>
      %151 = arith.addf %149, %150 : vector<32x16xf32>
      %cst_98 = arith.constant dense<0.000000e+00> : vector<32x16xf32>
      %152 = tpu.matmul %147, %6, %cst_98 {dimension_numbers = #tpu.dot_dimension_numbers<[1], [0], [0], [1], [0, 0, 1, 1], [], []>} : vector<32x4xf32>, vector<4x16xf32>, vector<32x16xf32> -> vector<32x16xf32>
      %153 = vector.broadcast %12 : vector<1x16xf32> to vector<32x16xf32>
      %154 = arith.addf %152, %153 : vector<32x16xf32>
      %cst_99 = arith.constant dense<0.000000e+00> : vector<32x16xf32>
      %155 = tpu.matmul %147, %8, %cst_99 {dimension_numbers = #tpu.dot_dimension_numbers<[1], [0], [0], [1], [0, 0, 1, 1], [], []>} : vector<32x4xf32>, vector<4x16xf32>, vector<32x16xf32> -> vector<32x16xf32>
      %156 = vector.broadcast %14 : vector<1x16xf32> to vector<32x16xf32>
      %157 = arith.addf %155, %156 : vector<32x16xf32>
      %cst_100 = arith.constant dense<0.000000e+00> : vector<32x16xf32>
      %158 = tpu.matmul %148, %16, %cst_100 {dimension_numbers = #tpu.dot_dimension_numbers<[1], [0], [0], [1], [0, 0, 1, 1], [], []>} : vector<32x16xf32>, vector<16x16xf32>, vector<32x16xf32> -> vector<32x16xf32>
      %cst_101 = arith.constant dense<0.000000e+00> : vector<32x16xf32>
      %159 = tpu.matmul %148, %18, %cst_101 {dimension_numbers = #tpu.dot_dimension_numbers<[1], [0], [0], [1], [0, 0, 1, 1], [], []>} : vector<32x16xf32>, vector<16x16xf32>, vector<32x16xf32> -> vector<32x16xf32>
      %cst_102 = arith.constant dense<0.000000e+00> : vector<32x16xf32>
      %160 = tpu.matmul %148, %20, %cst_102 {dimension_numbers = #tpu.dot_dimension_numbers<[1], [0], [0], [1], [0, 0, 1, 1], [], []>} : vector<32x16xf32>, vector<16x16xf32>, vector<32x16xf32> -> vector<32x16xf32>
      %161 = arith.addf %151, %158 : vector<32x16xf32>
      %162 = arith.negf %161 : vector<32x16xf32>
      %163 = math.exp %162 : vector<32x16xf32>
      %cst_103 = arith.constant 1.000000e+00 : f32
      %164 = vector.broadcast %cst_103 : f32 to vector<32x16xf32>
      %165 = arith.addf %164, %163 : vector<32x16xf32>
      %166 = arith.divf %164, %165 : vector<32x16xf32>
      %167 = arith.addf %154, %159 : vector<32x16xf32>
      %168 = arith.negf %167 : vector<32x16xf32>
      %169 = math.exp %168 : vector<32x16xf32>
      %cst_104 = arith.constant 1.000000e+00 : f32
      %170 = vector.broadcast %cst_104 : f32 to vector<32x16xf32>
      %171 = arith.addf %170, %169 : vector<32x16xf32>
      %172 = arith.divf %170, %171 : vector<32x16xf32>
      %173 = vector.broadcast %22 : vector<1x16xf32> to vector<32x16xf32>
      %174 = arith.addf %160, %173 : vector<32x16xf32>
      %175 = arith.mulf %166, %174 : vector<32x16xf32>
      %176 = arith.addf %157, %175 : vector<32x16xf32>
      %177 = math.tanh %176 : vector<32x16xf32>
      %178 = arith.subf %148, %177 : vector<32x16xf32>
      %179 = arith.mulf %172, %178 : vector<32x16xf32>
      %180 = arith.addf %177, %179 : vector<32x16xf32>
      %c0_105 = arith.constant 0 : index
      %c0_106 = arith.constant 0 : index
      %181 = vector.load %arg9[%c0_105, %c0_106] : memref<32x16xf32, #tpu.memory_space<vmem>>, vector<32x16xf32>
      tpu.vector_store %arg9[%c0_105, %c0_106], %180 {strides = array<i32>} : memref<32x16xf32, #tpu.memory_space<vmem>>, vector<32x16xf32>,
      %c0_107 = arith.constant 0 : index
      %c4_108 = arith.constant 4 : index
      %c0_109 = arith.constant 0 : index
      %c0_110 = arith.constant 0 : index
      %182 = vector.load %arg8[%c0_107, %c4_108, %c0_109, %c0_110] : memref<1x8x32x16xf32, #tpu.memory_space<vmem>>, vector<1x1x32x16xf32>
      %183 = vector.shape_cast %182 : vector<1x1x32x16xf32> to vector<32x16xf32>
      %184 = vector.shape_cast %180 : vector<32x16xf32> to vector<1x1x32x16xf32>
      tpu.vector_store %arg8[%c0_107, %c4_108, %c0_109, %c0_110], %184 {strides = array<i32>} : memref<1x8x32x16xf32, #tpu.memory_space<vmem>>, vector<1x1x32x16xf32>,
      %c3 = arith.constant 3 : index
      %c0_111 = arith.constant 0 : index
      %c0_112 = arith.constant 0 : index
      %185 = vector.load %arg3[%c3, %c0_111, %c0_112] : memref<8x32x4xf32, #tpu.memory_space<vmem>>, vector<1x32x4xf32>
      %186 = vector.shape_cast %185 : vector<1x32x4xf32> to vector<32x4xf32>
      %c0_113 = arith.constant 0 : index
      %c0_114 = arith.constant 0 : index
      %187 = vector.load %arg9[%c0_113, %c0_114] : memref<32x16xf32, #tpu.memory_space<vmem>>, vector<32x16xf32>
      %cst_115 = arith.constant dense<0.000000e+00> : vector<32x16xf32>
      %188 = tpu.matmul %186, %4, %cst_115 {dimension_numbers = #tpu.dot_dimension_numbers<[1], [0], [0], [1], [0, 0, 1, 1], [], []>} : vector<32x4xf32>, vector<4x16xf32>, vector<32x16xf32> -> vector<32x16xf32>
      %189 = vector.broadcast %10 : vector<1x16xf32> to vector<32x16xf32>
      %190 = arith.addf %188, %189 : vector<32x16xf32>
      %cst_116 = arith.constant dense<0.000000e+00> : vector<32x16xf32>
      %191 = tpu.matmul %186, %6, %cst_116 {dimension_numbers = #tpu.dot_dimension_numbers<[1], [0], [0], [1], [0, 0, 1, 1], [], []>} : vector<32x4xf32>, vector<4x16xf32>, vector<32x16xf32> -> vector<32x16xf32>
      %192 = vector.broadcast %12 : vector<1x16xf32> to vector<32x16xf32>
      %193 = arith.addf %191, %192 : vector<32x16xf32>
      %cst_117 = arith.constant dense<0.000000e+00> : vector<32x16xf32>
      %194 = tpu.matmul %186, %8, %cst_117 {dimension_numbers = #tpu.dot_dimension_numbers<[1], [0], [0], [1], [0, 0, 1, 1], [], []>} : vector<32x4xf32>, vector<4x16xf32>, vector<32x16xf32> -> vector<32x16xf32>
      %195 = vector.broadcast %14 : vector<1x16xf32> to vector<32x16xf32>
      %196 = arith.addf %194, %195 : vector<32x16xf32>
      %cst_118 = arith.constant dense<0.000000e+00> : vector<32x16xf32>
      %197 = tpu.matmul %187, %16, %cst_118 {dimension_numbers = #tpu.dot_dimension_numbers<[1], [0], [0], [1], [0, 0, 1, 1], [], []>} : vector<32x16xf32>, vector<16x16xf32>, vector<32x16xf32> -> vector<32x16xf32>
      %cst_119 = arith.constant dense<0.000000e+00> : vector<32x16xf32>
      %198 = tpu.matmul %187, %18, %cst_119 {dimension_numbers = #tpu.dot_dimension_numbers<[1], [0], [0], [1], [0, 0, 1, 1], [], []>} : vector<32x16xf32>, vector<16x16xf32>, vector<32x16xf32> -> vector<32x16xf32>
      %cst_120 = arith.constant dense<0.000000e+00> : vector<32x16xf32>
      %199 = tpu.matmul %187, %20, %cst_120 {dimension_numbers = #tpu.dot_dimension_numbers<[1], [0], [0], [1], [0, 0, 1, 1], [], []>} : vector<32x16xf32>, vector<16x16xf32>, vector<32x16xf32> -> vector<32x16xf32>
      %200 = arith.addf %190, %197 : vector<32x16xf32>
      %201 = arith.negf %200 : vector<32x16xf32>
      %202 = math.exp %201 : vector<32x16xf32>
      %cst_121 = arith.constant 1.000000e+00 : f32
      %203 = vector.broadcast %cst_121 : f32 to vector<32x16xf32>
      %204 = arith.addf %203, %202 : vector<32x16xf32>
      %205 = arith.divf %203, %204 : vector<32x16xf32>
      %206 = arith.addf %193, %198 : vector<32x16xf32>
      %207 = arith.negf %206 : vector<32x16xf32>
      %208 = math.exp %207 : vector<32x16xf32>
      %cst_122 = arith.constant 1.000000e+00 : f32
      %209 = vector.broadcast %cst_122 : f32 to vector<32x16xf32>
      %210 = arith.addf %209, %208 : vector<32x16xf32>
      %211 = arith.divf %209, %210 : vector<32x16xf32>
      %212 = vector.broadcast %22 : vector<1x16xf32> to vector<32x16xf32>
      %213 = arith.addf %199, %212 : vector<32x16xf32>
      %214 = arith.mulf %205, %213 : vector<32x16xf32>
      %215 = arith.addf %196, %214 : vector<32x16xf32>
      %216 = math.tanh %215 : vector<32x16xf32>
      %217 = arith.subf %187, %216 : vector<32x16xf32>
      %218 = arith.mulf %211, %217 : vector<32x16xf32>
      %219 = arith.addf %216, %218 : vector<32x16xf32>
      %c0_123 = arith.constant 0 : index
      %c0_124 = arith.constant 0 : index
      %220 = vector.load %arg9[%c0_123, %c0_124] : memref<32x16xf32, #tpu.memory_space<vmem>>, vector<32x16xf32>
      tpu.vector_store %arg9[%c0_123, %c0_124], %219 {strides = array<i32>} : memref<32x16xf32, #tpu.memory_space<vmem>>, vector<32x16xf32>,
      %c0_125 = arith.constant 0 : index
      %c3_126 = arith.constant 3 : index
      %c0_127 = arith.constant 0 : index
      %c0_128 = arith.constant 0 : index
      %221 = vector.load %arg8[%c0_125, %c3_126, %c0_127, %c0_128] : memref<1x8x32x16xf32, #tpu.memory_space<vmem>>, vector<1x1x32x16xf32>
      %222 = vector.shape_cast %221 : vector<1x1x32x16xf32> to vector<32x16xf32>
      %223 = vector.shape_cast %219 : vector<32x16xf32> to vector<1x1x32x16xf32>
      tpu.vector_store %arg8[%c0_125, %c3_126, %c0_127, %c0_128], %223 {strides = array<i32>} : memref<1x8x32x16xf32, #tpu.memory_space<vmem>>, vector<1x1x32x16xf32>,
      %c2_129 = arith.constant 2 : index
      %c0_130 = arith.constant 0 : index
      %c0_131 = arith.constant 0 : index
      %224 = vector.load %arg3[%c2_129, %c0_130, %c0_131] : memref<8x32x4xf32, #tpu.memory_space<vmem>>, vector<1x32x4xf32>
      %225 = vector.shape_cast %224 : vector<1x32x4xf32> to vector<32x4xf32>
      %c0_132 = arith.constant 0 : index
      %c0_133 = arith.constant 0 : index
      %226 = vector.load %arg9[%c0_132, %c0_133] : memref<32x16xf32, #tpu.memory_space<vmem>>, vector<32x16xf32>
      %cst_134 = arith.constant dense<0.000000e+00> : vector<32x16xf32>
      %227 = tpu.matmul %225, %4, %cst_134 {dimension_numbers = #tpu.dot_dimension_numbers<[1], [0], [0], [1], [0, 0, 1, 1], [], []>} : vector<32x4xf32>, vector<4x16xf32>, vector<32x16xf32> -> vector<32x16xf32>
      %228 = vector.broadcast %10 : vector<1x16xf32> to vector<32x16xf32>
      %229 = arith.addf %227, %228 : vector<32x16xf32>
      %cst_135 = arith.constant dense<0.000000e+00> : vector<32x16xf32>
      %230 = tpu.matmul %225, %6, %cst_135 {dimension_numbers = #tpu.dot_dimension_numbers<[1], [0], [0], [1], [0, 0, 1, 1], [], []>} : vector<32x4xf32>, vector<4x16xf32>, vector<32x16xf32> -> vector<32x16xf32>
      %231 = vector.broadcast %12 : vector<1x16xf32> to vector<32x16xf32>
      %232 = arith.addf %230, %231 : vector<32x16xf32>
      %cst_136 = arith.constant dense<0.000000e+00> : vector<32x16xf32>
      %233 = tpu.matmul %225, %8, %cst_136 {dimension_numbers = #tpu.dot_dimension_numbers<[1], [0], [0], [1], [0, 0, 1, 1], [], []>} : vector<32x4xf32>, vector<4x16xf32>, vector<32x16xf32> -> vector<32x16xf32>
      %234 = vector.broadcast %14 : vector<1x16xf32> to vector<32x16xf32>
      %235 = arith.addf %233, %234 : vector<32x16xf32>
      %cst_137 = arith.constant dense<0.000000e+00> : vector<32x16xf32>
      %236 = tpu.matmul %226, %16, %cst_137 {dimension_numbers = #tpu.dot_dimension_numbers<[1], [0], [0], [1], [0, 0, 1, 1], [], []>} : vector<32x16xf32>, vector<16x16xf32>, vector<32x16xf32> -> vector<32x16xf32>
      %cst_138 = arith.constant dense<0.000000e+00> : vector<32x16xf32>
      %237 = tpu.matmul %226, %18, %cst_138 {dimension_numbers = #tpu.dot_dimension_numbers<[1], [0], [0], [1], [0, 0, 1, 1], [], []>} : vector<32x16xf32>, vector<16x16xf32>, vector<32x16xf32> -> vector<32x16xf32>
      %cst_139 = arith.constant dense<0.000000e+00> : vector<32x16xf32>
      %238 = tpu.matmul %226, %20, %cst_139 {dimension_numbers = #tpu.dot_dimension_numbers<[1], [0], [0], [1], [0, 0, 1, 1], [], []>} : vector<32x16xf32>, vector<16x16xf32>, vector<32x16xf32> -> vector<32x16xf32>
      %239 = arith.addf %229, %236 : vector<32x16xf32>
      %240 = arith.negf %239 : vector<32x16xf32>
      %241 = math.exp %240 : vector<32x16xf32>
      %cst_140 = arith.constant 1.000000e+00 : f32
      %242 = vector.broadcast %cst_140 : f32 to vector<32x16xf32>
      %243 = arith.addf %242, %241 : vector<32x16xf32>
      %244 = arith.divf %242, %243 : vector<32x16xf32>
      %245 = arith.addf %232, %237 : vector<32x16xf32>
      %246 = arith.negf %245 : vector<32x16xf32>
      %247 = math.exp %246 : vector<32x16xf32>
      %cst_141 = arith.constant 1.000000e+00 : f32
      %248 = vector.broadcast %cst_141 : f32 to vector<32x16xf32>
      %249 = arith.addf %248, %247 : vector<32x16xf32>
      %250 = arith.divf %248, %249 : vector<32x16xf32>
      %251 = vector.broadcast %22 : vector<1x16xf32> to vector<32x16xf32>
      %252 = arith.addf %238, %251 : vector<32x16xf32>
      %253 = arith.mulf %244, %252 : vector<32x16xf32>
      %254 = arith.addf %235, %253 : vector<32x16xf32>
      %255 = math.tanh %254 : vector<32x16xf32>
      %256 = arith.subf %226, %255 : vector<32x16xf32>
      %257 = arith.mulf %250, %256 : vector<32x16xf32>
      %258 = arith.addf %255, %257 : vector<32x16xf32>
      %c0_142 = arith.constant 0 : index
      %c0_143 = arith.constant 0 : index
      %259 = vector.load %arg9[%c0_142, %c0_143] : memref<32x16xf32, #tpu.memory_space<vmem>>, vector<32x16xf32>
      tpu.vector_store %arg9[%c0_142, %c0_143], %258 {strides = array<i32>} : memref<32x16xf32, #tpu.memory_space<vmem>>, vector<32x16xf32>,
      %c0_144 = arith.constant 0 : index
      %c2_145 = arith.constant 2 : index
      %c0_146 = arith.constant 0 : index
      %c0_147 = arith.constant 0 : index
      %260 = vector.load %arg8[%c0_144, %c2_145, %c0_146, %c0_147] : memref<1x8x32x16xf32, #tpu.memory_space<vmem>>, vector<1x1x32x16xf32>
      %261 = vector.shape_cast %260 : vector<1x1x32x16xf32> to vector<32x16xf32>
      %262 = vector.shape_cast %258 : vector<32x16xf32> to vector<1x1x32x16xf32>
      tpu.vector_store %arg8[%c0_144, %c2_145, %c0_146, %c0_147], %262 {strides = array<i32>} : memref<1x8x32x16xf32, #tpu.memory_space<vmem>>, vector<1x1x32x16xf32>,
      %c1_148 = arith.constant 1 : index
      %c0_149 = arith.constant 0 : index
      %c0_150 = arith.constant 0 : index
      %263 = vector.load %arg3[%c1_148, %c0_149, %c0_150] : memref<8x32x4xf32, #tpu.memory_space<vmem>>, vector<1x32x4xf32>
      %264 = vector.shape_cast %263 : vector<1x32x4xf32> to vector<32x4xf32>
      %c0_151 = arith.constant 0 : index
      %c0_152 = arith.constant 0 : index
      %265 = vector.load %arg9[%c0_151, %c0_152] : memref<32x16xf32, #tpu.memory_space<vmem>>, vector<32x16xf32>
      %cst_153 = arith.constant dense<0.000000e+00> : vector<32x16xf32>
      %266 = tpu.matmul %264, %4, %cst_153 {dimension_numbers = #tpu.dot_dimension_numbers<[1], [0], [0], [1], [0, 0, 1, 1], [], []>} : vector<32x4xf32>, vector<4x16xf32>, vector<32x16xf32> -> vector<32x16xf32>
      %267 = vector.broadcast %10 : vector<1x16xf32> to vector<32x16xf32>
      %268 = arith.addf %266, %267 : vector<32x16xf32>
      %cst_154 = arith.constant dense<0.000000e+00> : vector<32x16xf32>
      %269 = tpu.matmul %264, %6, %cst_154 {dimension_numbers = #tpu.dot_dimension_numbers<[1], [0], [0], [1], [0, 0, 1, 1], [], []>} : vector<32x4xf32>, vector<4x16xf32>, vector<32x16xf32> -> vector<32x16xf32>
      %270 = vector.broadcast %12 : vector<1x16xf32> to vector<32x16xf32>
      %271 = arith.addf %269, %270 : vector<32x16xf32>
      %cst_155 = arith.constant dense<0.000000e+00> : vector<32x16xf32>
      %272 = tpu.matmul %264, %8, %cst_155 {dimension_numbers = #tpu.dot_dimension_numbers<[1], [0], [0], [1], [0, 0, 1, 1], [], []>} : vector<32x4xf32>, vector<4x16xf32>, vector<32x16xf32> -> vector<32x16xf32>
      %273 = vector.broadcast %14 : vector<1x16xf32> to vector<32x16xf32>
      %274 = arith.addf %272, %273 : vector<32x16xf32>
      %cst_156 = arith.constant dense<0.000000e+00> : vector<32x16xf32>
      %275 = tpu.matmul %265, %16, %cst_156 {dimension_numbers = #tpu.dot_dimension_numbers<[1], [0], [0], [1], [0, 0, 1, 1], [], []>} : vector<32x16xf32>, vector<16x16xf32>, vector<32x16xf32> -> vector<32x16xf32>
      %cst_157 = arith.constant dense<0.000000e+00> : vector<32x16xf32>
      %276 = tpu.matmul %265, %18, %cst_157 {dimension_numbers = #tpu.dot_dimension_numbers<[1], [0], [0], [1], [0, 0, 1, 1], [], []>} : vector<32x16xf32>, vector<16x16xf32>, vector<32x16xf32> -> vector<32x16xf32>
      %cst_158 = arith.constant dense<0.000000e+00> : vector<32x16xf32>
      %277 = tpu.matmul %265, %20, %cst_158 {dimension_numbers = #tpu.dot_dimension_numbers<[1], [0], [0], [1], [0, 0, 1, 1], [], []>} : vector<32x16xf32>, vector<16x16xf32>, vector<32x16xf32> -> vector<32x16xf32>
      %278 = arith.addf %268, %275 : vector<32x16xf32>
      %279 = arith.negf %278 : vector<32x16xf32>
      %280 = math.exp %279 : vector<32x16xf32>
      %cst_159 = arith.constant 1.000000e+00 : f32
      %281 = vector.broadcast %cst_159 : f32 to vector<32x16xf32>
      %282 = arith.addf %281, %280 : vector<32x16xf32>
      %283 = arith.divf %281, %282 : vector<32x16xf32>
      %284 = arith.addf %271, %276 : vector<32x16xf32>
      %285 = arith.negf %284 : vector<32x16xf32>
      %286 = math.exp %285 : vector<32x16xf32>
      %cst_160 = arith.constant 1.000000e+00 : f32
      %287 = vector.broadcast %cst_160 : f32 to vector<32x16xf32>
      %288 = arith.addf %287, %286 : vector<32x16xf32>
      %289 = arith.divf %287, %288 : vector<32x16xf32>
      %290 = vector.broadcast %22 : vector<1x16xf32> to vector<32x16xf32>
      %291 = arith.addf %277, %290 : vector<32x16xf32>
      %292 = arith.mulf %283, %291 : vector<32x16xf32>
      %293 = arith.addf %274, %292 : vector<32x16xf32>
      %294 = math.tanh %293 : vector<32x16xf32>
      %295 = arith.subf %265, %294 : vector<32x16xf32>
      %296 = arith.mulf %289, %295 : vector<32x16xf32>
      %297 = arith.addf %294, %296 : vector<32x16xf32>
      %c0_161 = arith.constant 0 : index
      %c0_162 = arith.constant 0 : index
      %298 = vector.load %arg9[%c0_161, %c0_162] : memref<32x16xf32, #tpu.memory_space<vmem>>, vector<32x16xf32>
      tpu.vector_store %arg9[%c0_161, %c0_162], %297 {strides = array<i32>} : memref<32x16xf32, #tpu.memory_space<vmem>>, vector<32x16xf32>,
      %c0_163 = arith.constant 0 : index
      %c1_164 = arith.constant 1 : index
      %c0_165 = arith.constant 0 : index
      %c0_166 = arith.constant 0 : index
      %299 = vector.load %arg8[%c0_163, %c1_164, %c0_165, %c0_166] : memref<1x8x32x16xf32, #tpu.memory_space<vmem>>, vector<1x1x32x16xf32>
      %300 = vector.shape_cast %299 : vector<1x1x32x16xf32> to vector<32x16xf32>
      %301 = vector.shape_cast %297 : vector<32x16xf32> to vector<1x1x32x16xf32>
      tpu.vector_store %arg8[%c0_163, %c1_164, %c0_165, %c0_166], %301 {strides = array<i32>} : memref<1x8x32x16xf32, #tpu.memory_space<vmem>>, vector<1x1x32x16xf32>,
      %c0_167 = arith.constant 0 : index
      %c0_168 = arith.constant 0 : index
      %c0_169 = arith.constant 0 : index
      %302 = vector.load %arg3[%c0_167, %c0_168, %c0_169] : memref<8x32x4xf32, #tpu.memory_space<vmem>>, vector<1x32x4xf32>
      %303 = vector.shape_cast %302 : vector<1x32x4xf32> to vector<32x4xf32>
      %c0_170 = arith.constant 0 : index
      %c0_171 = arith.constant 0 : index
      %304 = vector.load %arg9[%c0_170, %c0_171] : memref<32x16xf32, #tpu.memory_space<vmem>>, vector<32x16xf32>
      %cst_172 = arith.constant dense<0.000000e+00> : vector<32x16xf32>
      %305 = tpu.matmul %303, %4, %cst_172 {dimension_numbers = #tpu.dot_dimension_numbers<[1], [0], [0], [1], [0, 0, 1, 1], [], []>} : vector<32x4xf32>, vector<4x16xf32>, vector<32x16xf32> -> vector<32x16xf32>
      %306 = vector.broadcast %10 : vector<1x16xf32> to vector<32x16xf32>
      %307 = arith.addf %305, %306 : vector<32x16xf32>
      %cst_173 = arith.constant dense<0.000000e+00> : vector<32x16xf32>
      %308 = tpu.matmul %303, %6, %cst_173 {dimension_numbers = #tpu.dot_dimension_numbers<[1], [0], [0], [1], [0, 0, 1, 1], [], []>} : vector<32x4xf32>, vector<4x16xf32>, vector<32x16xf32> -> vector<32x16xf32>
      %309 = vector.broadcast %12 : vector<1x16xf32> to vector<32x16xf32>
      %310 = arith.addf %308, %309 : vector<32x16xf32>
      %cst_174 = arith.constant dense<0.000000e+00> : vector<32x16xf32>
      %311 = tpu.matmul %303, %8, %cst_174 {dimension_numbers = #tpu.dot_dimension_numbers<[1], [0], [0], [1], [0, 0, 1, 1], [], []>} : vector<32x4xf32>, vector<4x16xf32>, vector<32x16xf32> -> vector<32x16xf32>
      %312 = vector.broadcast %14 : vector<1x16xf32> to vector<32x16xf32>
      %313 = arith.addf %311, %312 : vector<32x16xf32>
      %cst_175 = arith.constant dense<0.000000e+00> : vector<32x16xf32>
      %314 = tpu.matmul %304, %16, %cst_175 {dimension_numbers = #tpu.dot_dimension_numbers<[1], [0], [0], [1], [0, 0, 1, 1], [], []>} : vector<32x16xf32>, vector<16x16xf32>, vector<32x16xf32> -> vector<32x16xf32>
      %cst_176 = arith.constant dense<0.000000e+00> : vector<32x16xf32>
      %315 = tpu.matmul %304, %18, %cst_176 {dimension_numbers = #tpu.dot_dimension_numbers<[1], [0], [0], [1], [0, 0, 1, 1], [], []>} : vector<32x16xf32>, vector<16x16xf32>, vector<32x16xf32> -> vector<32x16xf32>
      %cst_177 = arith.constant dense<0.000000e+00> : vector<32x16xf32>
      %316 = tpu.matmul %304, %20, %cst_177 {dimension_numbers = #tpu.dot_dimension_numbers<[1], [0], [0], [1], [0, 0, 1, 1], [], []>} : vector<32x16xf32>, vector<16x16xf32>, vector<32x16xf32> -> vector<32x16xf32>
      %317 = arith.addf %307, %314 : vector<32x16xf32>
      %318 = arith.negf %317 : vector<32x16xf32>
      %319 = math.exp %318 : vector<32x16xf32>
      %cst_178 = arith.constant 1.000000e+00 : f32
      %320 = vector.broadcast %cst_178 : f32 to vector<32x16xf32>
      %321 = arith.addf %320, %319 : vector<32x16xf32>
      %322 = arith.divf %320, %321 : vector<32x16xf32>
      %323 = arith.addf %310, %315 : vector<32x16xf32>
      %324 = arith.negf %323 : vector<32x16xf32>
      %325 = math.exp %324 : vector<32x16xf32>
      %cst_179 = arith.constant 1.000000e+00 : f32
      %326 = vector.broadcast %cst_179 : f32 to vector<32x16xf32>
      %327 = arith.addf %326, %325 : vector<32x16xf32>
      %328 = arith.divf %326, %327 : vector<32x16xf32>
      %329 = vector.broadcast %22 : vector<1x16xf32> to vector<32x16xf32>
      %330 = arith.addf %316, %329 : vector<32x16xf32>
      %331 = arith.mulf %322, %330 : vector<32x16xf32>
      %332 = arith.addf %313, %331 : vector<32x16xf32>
      %333 = math.tanh %332 : vector<32x16xf32>
      %334 = arith.subf %304, %333 : vector<32x16xf32>
      %335 = arith.mulf %328, %334 : vector<32x16xf32>
      %336 = arith.addf %333, %335 : vector<32x16xf32>
      %c0_180 = arith.constant 0 : index
      %c0_181 = arith.constant 0 : index
      %337 = vector.load %arg9[%c0_180, %c0_181] : memref<32x16xf32, #tpu.memory_space<vmem>>, vector<32x16xf32>
      tpu.vector_store %arg9[%c0_180, %c0_181], %336 {strides = array<i32>} : memref<32x16xf32, #tpu.memory_space<vmem>>, vector<32x16xf32>,
      %c0_182 = arith.constant 0 : index
      %c0_183 = arith.constant 0 : index
      %c0_184 = arith.constant 0 : index
      %c0_185 = arith.constant 0 : index
      %338 = vector.load %arg8[%c0_182, %c0_183, %c0_184, %c0_185] : memref<1x8x32x16xf32, #tpu.memory_space<vmem>>, vector<1x1x32x16xf32>
      %339 = vector.shape_cast %338 : vector<1x1x32x16xf32> to vector<32x16xf32>
      %340 = vector.shape_cast %336 : vector<32x16xf32> to vector<1x1x32x16xf32>
      tpu.vector_store %arg8[%c0_182, %c0_183, %c0_184, %c0_185], %340 {strides = array<i32>} : memref<1x8x32x16xf32, #tpu.memory_space<vmem>>, vector<1x1x32x16xf32>,
    } else {
    }
    return
  }
  func.func @transform_0(%arg0: i32, %arg1: i32, %arg2: i32) -> (i32, i32, i32) {
    %c2_i32 = arith.constant 2 : i32
    %0 = arith.muli %c2_i32, %arg2 : i32
    %c1_i32 = arith.constant 1 : i32
    %1 = arith.subi %c1_i32, %0 : i32
    %2 = arith.muli %arg0, %1 : i32
    %3 = arith.addi %arg2, %2 : i32
    %c0_i32 = arith.constant 0 : i32
    %c0_i32_0 = arith.constant 0 : i32
    return %3, %arg1, %c0_i32 : i32, i32, i32
  }
  func.func @transform_1(%arg0: i32, %arg1: i32, %arg2: i32) -> (i32, i32, i32, i32) {
    %c0_i32 = arith.constant 0 : i32
    %c0_i32_0 = arith.constant 0 : i32
    %c0_i32_1 = arith.constant 0 : i32
    %c0_i32_2 = arith.constant 0 : i32
    return %arg0, %c0_i32, %c0_i32_0, %c0_i32_1 : i32, i32, i32, i32
  }
  func.func @transform_2(%arg0: i32, %arg1: i32, %arg2: i32) -> (i32, i32, i32, i32) {
    %c0_i32 = arith.constant 0 : i32
    %c0_i32_0 = arith.constant 0 : i32
    %c0_i32_1 = arith.constant 0 : i32
    %c0_i32_2 = arith.constant 0 : i32
    return %arg0, %c0_i32, %c0_i32_0, %c0_i32_1 : i32, i32, i32, i32
  }
  func.func @transform_3(%arg0: i32, %arg1: i32, %arg2: i32) -> (i32, i32, i32, i32) {
    %c0_i32 = arith.constant 0 : i32
    %c0_i32_0 = arith.constant 0 : i32
    %c0_i32_1 = arith.constant 0 : i32
    %c0_i32_2 = arith.constant 0 : i32
    return %arg0, %c0_i32, %c0_i32_0, %c0_i32_1 : i32, i32, i32, i32
  }
  func.func @transform_4(%arg0: i32, %arg1: i32, %arg2: i32) -> (i32, i32, i32) {
    %c0_i32 = arith.constant 0 : i32
    %c0_i32_0 = arith.constant 0 : i32
    %c0_i32_1 = arith.constant 0 : i32
    return %arg0, %c0_i32, %c0_i32_0 : i32, i32, i32
  }
  func.func @transform_5(%arg0: i32, %arg1: i32, %arg2: i32) -> (i32, i32, i32, i32) {
    %c2_i32 = arith.constant 2 : i32
    %0 = arith.muli %c2_i32, %arg2 : i32
    %c1_i32 = arith.constant 1 : i32
    %1 = arith.subi %c1_i32, %0 : i32
    %2 = arith.muli %arg0, %1 : i32
    %3 = arith.addi %arg2, %2 : i32
    %c0_i32 = arith.constant 0 : i32
    %c0_i32_0 = arith.constant 0 : i32
    return %arg0, %3, %arg1, %c0_i32 : i32, i32, i32, i32
  }
}

</mosaic_0001>

<bundles_post_ra>
// kernel: gru_block_forward.1
= control target key start
LH: loop header
LB: loop body
LE: loop exit
PB: predicated region body
PF: predicated region fallthrough
CT: control target
= control target key end

     0   :  { %s13646_s18 = smov 0   ;;  %s13648_s19 = smov 0   ;;  %s15650_s0 = inlined_call_operand.vmem [shape: f32[16,32,4], index: 0, kind: input, shape index: {}]   ;;  %s15651_s1 = inlined_call_operand.vmem [shape: f32[2,3,4,16], index: 1, kind: input, shape index: {}]   ;;  %s15652_s2 = inlined_call_operand.vmem [shape: f32[2,3,1,16], index: 2, kind: input, shape index: {}]   ;;  %s15653_s3 = inlined_call_operand.vmem [shape: f32[2,3,16,16], index: 3, kind: input, shape index: {}]   ;;  %s15654_s4 = inlined_call_operand.vmem [shape: f32[2,1,16], index: 4, kind: input, shape index: {}]   ;;  %s15655_s5 = inlined_call_operand.vmem [shape: f32[2,16,32,16], index: 5, kind: output, shape index: {}]  }
   0x1   :  { %15657 = sst [smem:[#allocation6_spill]] %s15651_s1  ;;  %s13650_s20 = smov 0  }
   0x2   :  { %s13652_s21 = smov 0   ;;  %s13654_s22 = smov 0  }
   0x3 LB: > { %15658 = sst [smem:[#allocation3_spill]] %s13609_s21  ;;  %s27_s23 = sadd.s32 1, %s13605_s20  ;;  %s13613_s22 = sphi %s13654_s22, %s15_s22   ;;  %s13609_s21 = sphi %s13652_s21, %s15664_s21   ;;  %s13605_s20 = sphi %s13650_s20, %s15666_s20   ;;  %s13601_s19 = sphi %s13648_s19, %s15662_s19   ;;  %s13597_s18 = sphi %s13646_s18, %s15665_s18  }
   0x4   : > { %s34_s24 = sadd.s32 1, %s13609_s21  ;;  %p28_p0 = scmp.ge.s32.totalorder %s27_s23, 2 }
   0x5   : > { %p10801_p1 = scmp.ge.s32.totalorder %s13613_s22, 1  ;;  %p280_p2 = scmp.lt.s32.totalorder %s13613_s22, 5 }
   0x6   : > { %s15668_s23 = smov (%p28_p0, %s27_s23), 0  ;;  %s15670_s24 = smov (!%p28_p0, %s34_s24), %s13609_s21 }
   0x7   : > { %15659 = sst [smem:[#allocation4_spill]] %s15668_s23  ;;  %p281_p3 = pnand %p10801_p1, %p280_p2 }
   0x8   : > { %p36_p4 = scmp.ge.s32.totalorder %s15670_s24, 2  ;;  %s10802_s25 = sshll.u32 (!%p281_p3), %s13597_s18, 1 }
   0x9   : > { %284 = sbr.rel (%p281_p3) target bundleno = 4254 (0x109e), region = 40  ;;  %p367_p5 = scmp.lt.s32.totalorder (!%p281_p3), %s13601_s19, 1 }
   0xa   : > { %s15672_s24 = smov (%p36_p4, %s15670_s24), 0  ;;  %s348_s26 = ssub.s32 (!%p281_p3), 1, %s10802_s25 }
   0xb   : > { %15660 = sst [smem:[#allocation5_spill]] %s15672_s24  ;;  %s349_s27 = smul.u32 (!%p281_p3), %s13601_s19, %s348_s26 }
   0xc   : > { %s15661_s1 = sld [smem:[#allocation6_spill]] (!%p281_p3)  ;;  %p10813_p7 = scmp.ne.s32.totalorder (!%p281_p3), %s13597_s18, 0 }
   0xd   : > { %s350_s29 = sadd.s32 (!%p281_p3), %s13597_s18, %s349_s27 }
   0xe   : > { %s13684_s28 = scalar_select %p367_p5, %s13601_s19, 1 }
   0xf   : > { %s10803_s30 = sshll.u32 %s350_s29, 3 }
  0x10   : > { %s12891_s6 = smul.u32 12, %s13684_s28  ;;  %p353_p6 = scmp.lt.s32.totalorder %s10803_s30, 15 }
  0x11   : > { %s12892_s7 = smul.u32 3, %s13684_s28  ;;  %s383_s29 = scalar_lea.vmem %s15654_s4, %s13684_s28 }
  0x12   : > { %s371_s10 = scalar_lea.vmem %s15661_s1, %s12891_s6  ;;  %s12893_s11 = smul.u32 48, %s13684_s28 }
  0x13   : > { %s15674_s30 = smov (!%p353_p6, %s10803_s30), 15  ;;  %s375_s14 = scalar_lea.vmem %s15652_s2, %s12892_s7 }
  0x14   : > { %s380_s17 = scalar_lea.vmem %s15653_s3, %s12893_s11  ;;  %s11498_s25 = sshll.u32 %s15674_s30, 5 }
  0x15   : > { %s13706_s8 = scalar_lea.vmem %s15650_s0, %s11498_s25  ;;  %s10810_s6 = sshll.u32 %s15674_s30, 2 }
  0x16   : > { %s10811_s9 = sshll.u32 %s13684_s28, 6  ;;  %411 = sbr.rel (%p10813_p7) target bundleno = 30 (0x1e), region = 44 }
  0x17   : > { %s399_s1 = sadd.s32 %s10811_s9, %s10810_s6 }
  0x18   : > { %s10812_s21 = sshll.u32 %s399_s1, 3 }
  0x19   : > { %s13712_s13 = scalar_lea.vmem %s15655_s5, %s10812_s21 }
  0x1b   : > { %vm412_vm0 = vcmask 130048   ;;  %v13615_v0 = vmov 0.0  }
  0x1c   : > { %413 = vst.msk [vmem:[#allocation2] sm:$0xff] %vm412_vm0, %v13615_v0  ;;  %414 = vst.msk [vmem:[#allocation2 + $0x8] sm:$0xff] %vm412_vm0, %v13615_v0 }
  0x1d   : > { %415 = vst.msk [vmem:[#allocation2 + $0x10] sm:$0xff] %vm412_vm0, %v13615_v0  ;;  %416 = vst.msk [vmem:[#allocation2 + $0x18] sm:$0xff] %vm412_vm0, %v13615_v0 }
  0x1e PF: > { %v13715_v1 = vld [vmem:[%s371_s10] sm:$0xf]  ;;  %v13717_v2 = vld [vmem:[%s371_s10 + $0x4] sm:$0xf]  ;;  %v13719_v3 = vld [vmem:[%s371_s10 + $0x8] sm:$0xf] }
  0x1f   : > { %v13721_v4 = vld [vmem:[%s375_s14] sm:$0x1]  ;;  %v13723_v5 = vld [vmem:[%s375_s14 + $0x1] sm:$0x1]  ;;  %v13725_v6 = vld [vmem:[%s375_s14 + $0x2] sm:$0x1] }
  0x20   : > { %v13727_v7 = vld [vmem:[%s380_s17] sm:$0xff]  ;;  %v13729_v8 = vld [vmem:[%s380_s17 + $0x8] sm:$0xff]  ;;  %v13731_v9 = vld [vmem:[%s380_s17 + $0x10] sm:$0xff]  ;;  %p10822_p8 = scmp.ne.s32.totalorder %s13601_s19, 0 }
  0x21   : > { %v13733_v10 = vld [vmem:[%s380_s17 + $0x18] sm:$0xff]  ;;  %v13735_v11 = vld [vmem:[%s380_s17 + $0x20] sm:$0xff]  ;;  %v13737_v12 = vld [vmem:[%s380_s17 + $0x28] sm:$0xff] }
  0x22   : > { %v13739_v13 = vld [vmem:[%s383_s29] sm:$0x1]  ;;  %439 = sbr.rel (%p10822_p8) target bundleno = 2143 (0x85f), region = 48 }
  0x27   : > { %vm467_vm1 = vcmask 1043456   ;;  %v440_v14 = vld [vmem:[%s13706_s8] sm:$0xff]  ;;  %vm454_vm2 = vcmask 31744   ;;  %v441_v15 = vld [vmem:[%s13706_s8 + $0x8] sm:$0xff]  ;;  %v442_v16 = vld [vmem:[%s13706_s8 + $0x10] sm:$0xff]  ;;  %vm744_vm3 = vcmask 130048   ;;  %v449_v26 = vlaneseq }
  0x28   : > { %12027 = vmatprep.subr.msk.mxu0 %vm467_vm1, %v13715_v1  ;;  %12035 = vmatprep.subr.msk.mxu1 %vm467_vm1, %v13717_v2  ;;  %v443_v17 = vld [vmem:[%s13706_s8 + $0x18] sm:$0xff]  ;;  %v13765_v18 = vld [vmem:[#allocation2] sm:$0xff]  ;;  %v13772_v19 = vld [vmem:[#allocation2 + $0x8] sm:$0xff] }
  0x29   : > { %12028 = vmatpush3.msk.msra.mxu0 %vm467_vm1, %v13715_v1  ;;  %12029 = vmatprep.mubr.msk.f32.mxu0 %vm454_vm2, %v440_v14  ;;  %v13777_v20 = vld [vmem:[#allocation2 + $0x10] sm:$0xff]  ;;  %v13787_v21 = vld [vmem:[#allocation2 + $0x18] sm:$0xff]  ;;  %v10858_v22 = vld [vmem:[%s13706_s8 + $0x20] sm:$0xff]  ;;  %v450_v27 = vshrl.u32 %v449_v26, 7 }
  0x2a   : > { %12036 = vmatpush3.msk.msra.mxu1 %vm467_vm1, %v13717_v2  ;;  %12037 = vmatprep.mubr.msk.f32.mxu1 %vm454_vm2, %v440_v14  ;;  %v10859_v23 = vld [vmem:[%s13706_s8 + $0x28] sm:$0xff]  ;;  %v10860_v24 = vld [vmem:[%s13706_s8 + $0x30] sm:$0xff]  ;;  %v10861_v25 = vld [vmem:[%s13706_s8 + $0x38] sm:$0xff] }
  0x2b   : > { %12030 = vmatmul.mubr.msk.f32.vlgmr.msra.gmra.mxu0 %vm454_vm2, %v441_v15  ;;  %12038 = vmatmul.mubr.msk.f32.vlgmr.msra.gmra.mxu1 %vm454_vm2, %v441_v15  ;;  %v13853_v28 = vsub.s32 0, %v450_v27 }
  0x2c   : > { %12051 = vmatprep.subr.mxu1 %v13729_v8  ;;  %12032 = vmatprep.mubr.msk.f32.mxu0 %vm454_vm2, %v442_v16 }
  0x2d   : > { %12052 = vmatpush3.msra.mxu1 %v13729_v8  ;;  %12040 = vmatprep.mubr.msk.f32.mxu1 %vm454_vm2, %v442_v16  ;;  %v13857_v31 = vrot.slane %v13721_v4, %v13853_v28  ;;  %v13871_v53 = vrot.slane %v13723_v5, %v13853_v28 }
  0x2e   : > { %12053 = vmatprep.subr.mxu1 %v13727_v7  ;;  %12043 = vmatprep.subr.msk.mxu0 %vm467_vm1, %v13719_v3 }
  0x2f   : > { %12033 = vmatmul.mubr.msk.f32.gmra.mxu0 %vm454_vm2, %v443_v17  ;;  %12041 = vmatmul.mubr.msk.f32.gmra.mxu1 %vm454_vm2, %v443_v17 }
  0x30   : > { %12054 = vmatpush3.msra.mxu1 %v13727_v7  ;;  %12044 = vmatpush3.msk.msra.mxu0 %vm467_vm1, %v13719_v3 }
  0x31   : > { %12045 = vmatprep.mubr.msk.f32.mxu0 %vm454_vm2, %v440_v14  ;;  %12055 = vmatprep.mubr.msk.f32.mxu1 %vm744_vm3, %v13765_v18 }
  0x32   : > { %12061 = vmatprep.subr.mxu0 %v13733_v10  ;;  %12071 = vmatprep.subr.mxu1 %v13737_v12 }
  0x33   : > { %12046 = vmatmul.mubr.msk.f32.vlgmr.msra.gmra.mxu0 %vm454_vm2, %v441_v15  ;;  %12056 = vmatmul.mubr.msk.f32.vlgmr.msra.gmra.mxu1 %vm744_vm3, %v13772_v19 }
  0x34   : > { %12048 = vmatprep.mubr.msk.f32.mxu0 %vm454_vm2, %v442_v16  ;;  %12058 = vmatprep.mubr.msk.f32.mxu1 %vm744_vm3, %v13777_v20 }
  0x35   : > { %12062 = vmatpush3.msra.mxu0 %v13733_v10  ;;  %12072 = vmatpush3.msra.mxu1 %v13737_v12 }
  0x36   : > { %12063 = vmatprep.subr.mxu0 %v13731_v9  ;;  %12073 = vmatprep.subr.mxu1 %v13735_v11 }
  0x37   : > { %12049 = vmatmul.mubr.msk.f32.gmra.mxu0 %vm454_vm2, %v443_v17  ;;  %12059 = vmatmul.mubr.msk.f32.gmra.mxu1 %vm744_vm3, %v13787_v21 }
  0x38   : > { %12064 = vmatpush3.msra.mxu0 %v13731_v9  ;;  %12065 = vmatprep.mubr.msk.f32.mxu0 %vm744_vm3, %v13765_v18 }
  0x39   : > { %12074 = vmatpush3.msra.mxu1 %v13735_v11  ;;  %12075 = vmatprep.mubr.msk.f32.mxu1 %vm744_vm3, %v13765_v18 }
  0x3a   : > { %12081 = vmatprep.subr.msk.mxu0 %vm467_vm1, %v13715_v1  ;;  %12089 = vmatprep.subr.msk.mxu1 %vm467_vm1, %v13717_v2 }
  0x3b   : > { %12066 = vmatmul.mubr.msk.f32.vlgmr.msra.gmra.mxu0 %vm744_vm3, %v13772_v19  ;;  %12076 = vmatmul.mubr.msk.f32.vlgmr.msra.gmra.mxu1 %vm744_vm3, %v13772_v19 }
  0x3c   : > { %12068 = vmatprep.mubr.msk.f32.mxu0 %vm744_vm3, %v13777_v20  ;;  %12078 = vmatprep.mubr.msk.f32.mxu1 %vm744_vm3, %v13777_v20 }
  0x3d   : > { %12082 = vmatpush3.msk.msra.mxu0 %vm467_vm1, %v13715_v1  ;;  %12090 = vmatpush3.msk.msra.mxu1 %vm467_vm1, %v13717_v2 }
  0x3e   : > { %12097 = vmatprep.subr.msk.mxu0 %vm467_vm1, %v13719_v3  ;;  %12105 = vmatprep.subr.mxu1 %v13729_v8 }
  0x3f   : > { %12069 = vmatmul.mubr.msk.f32.gmra.mxu0 %vm744_vm3, %v13787_v21  ;;  %12079 = vmatmul.mubr.msk.f32.gmra.mxu1 %vm744_vm3, %v13787_v21 }
  0x40   : > { %12083 = vmatprep.mubr.msk.f32.mxu0 %vm454_vm2, %v10858_v22  ;;  %12091 = vmatprep.mubr.msk.f32.mxu1 %vm454_vm2, %v10858_v22 }
  0x43   : > { %12084 = vmatmul.mubr.msk.f32.vlgmr.msra.gmra.mxu0 %vm454_vm2, %v10859_v23  ;;  %12092 = vmatmul.mubr.msk.f32.vlgmr.msra.gmra.mxu1 %vm454_vm2, %v10859_v23 }
  0x44   : > { %12098 = vmatpush3.msk.msra.mxu0 %vm467_vm1, %v13719_v3  ;;  %12106 = vmatpush3.msra.mxu1 %v13729_v8 }
  0x45   : > { %12107 = vmatprep.subr.mxu1 %v13727_v7  ;;  %12115 = vmatprep.subr.mxu0 %v13733_v10 }
  0x46   : > { %12086 = vmatprep.mubr.msk.f32.mxu0 %vm454_vm2, %v10860_v24  ;;  %12094 = vmatprep.mubr.msk.f32.mxu1 %vm454_vm2, %v10860_v24 }
  0x47   : > { %12087 = vmatmul.mubr.msk.f32.gmra.mxu0 %vm454_vm2, %v10861_v25  ;;  %12095 = vmatmul.mubr.msk.f32.gmra.mxu1 %vm454_vm2, %v10861_v25 }
  0x48   : > { %12099 = vmatprep.mubr.msk.f32.mxu0 %vm454_vm2, %v10858_v22  ;;  %12108 = vmatpush3.msra.mxu1 %v13727_v7 }
  0x49   : > { %12125 = vmatprep.subr.mxu1 %v13737_v12 }
  0x4b   : > { %12100 = vmatmul.mubr.msk.f32.vlgmr.msra.gmra.mxu0 %vm454_vm2, %v10859_v23 }
  0x4c   : > { %12102 = vmatprep.mubr.msk.f32.mxu0 %vm454_vm2, %v10860_v24  ;;  %12116 = vmatpush3.msra.mxu0 %v13733_v10 }
  0x4d   : > { %12117 = vmatprep.subr.mxu0 %v13731_v9 }
  0x4e   : > { %12118 = vmatpush3.msra.mxu0 %v13731_v9 }
  0x4f   : > { %12103 = vmatmul.mubr.msk.f32.gmra.mxu0 %vm454_vm2, %v10861_v25  ;;  %12135 = vmatprep.subr.msk.mxu0 %vm467_vm1, %v13715_v1 }
  0xeb   : > { %v12031_v29 = vpop.f32.mrf.mxu0  ;;  %v12039_v30 = vpop.f32.mrf.mxu1 }
  0xec   : > { %v543_v36 = vadd.f32 %v12031_v29, %v13857_v31  ;;  %v637_v60 = vadd.f32 %v12039_v30, %v13871_v53 }
  0xed   : > { %v537_v32 = vpop.f32.mrf.mxu0  ;;  %v631_v33 = vpop.f32.mrf.mxu1 }
  0xee   : > { %v538_v41 = vadd.f32 %v537_v32, %v13857_v31  ;;  %v632_v62 = vadd.f32 %v631_v33, %v13871_v53 }
  0xef   : > { %v12034_v34 = vpop.f32.mrf.mxu0  ;;  %v12042_v35 = vpop.f32.mrf.mxu1 }
  0xf0   : > { %v553_v42 = vadd.f32 %v12034_v34, %v13857_v31  ;;  %v647_v14 = vadd.f32 %v12042_v35, %v13871_v53 }
  0xf1   : > { %v547_v37 = vpop.f32.mrf.mxu0  ;;  %v641_v38 = vpop.f32.mrf.mxu1 }
  0xf2   : > { %v548_v50 = vadd.f32 %v547_v37, %v13857_v31  ;;  %v642_v17 = vadd.f32 %v641_v38, %v13871_v53 }
  0xf3   : > { %v13860_v39 = vpop.f32.mrf.mxu0  ;;  %v12057_v40 = vpop.f32.mrf.mxu1 }
  0xf4   : > { %v928_v43 = vadd.f32 %v12057_v40, %v543_v36  ;;  %v13881_v40 = vrot.slane %v13739_v13, %v13853_v28 }
  0xf5   : > { %v13864_v44 = vpop.f32.mrf.mxu0  ;;  %v823_v45 = vpop.f32.mrf.mxu1 }
  0xf6   : > { %v10847_v46 = vmul.f32 -1.442695, %v928_v43  ;;  %v927_v47 = vadd.f32 %v823_v45, %v538_v41 }
  0xf7   : > { %v13866_v48 = vpop.f32.mrf.mxu0  ;;  %v12060_v49 = vpop.f32.mrf.mxu1 }
  0xf8   : > { %12935 = vpow2.f32 %v10847_v46  ;;  %v10846_v51 = vmul.f32 -1.442695, %v927_v47  ;;  %v930_v52 = vadd.f32 %v12060_v49, %v553_v42  ;;  %v13885_v42 = vrot.slane %v13725_v6, %v13853_v28 }
  0xf9   : > { %v13873_v54 = vpop.f32.mrf.mxu0  ;;  %v833_v55 = vpop.f32.mrf.mxu1 }
  0xfa   : > { %12937 = vpow2.f32 %v10846_v51  ;;  %v10849_v56 = vmul.f32 -1.442695, %v930_v52  ;;  %v929_v57 = vadd.f32 %v833_v55, %v548_v50  ;;  %v731_v50 = vadd.f32 %v13860_v39, %v13885_v42 }
  0xfb   : > { %v12067_v58 = vpop.f32.mrf.mxu0  ;;  %v12077_v37 = vpop.f32.mrf.mxu1  ;;  %v726_v28 = vadd.f32 %v13864_v44, %v13885_v42 }
  0xfc   : > { %12939 = vpow2.f32 %v10849_v56  ;;  %v10848_v59 = vmul.f32 -1.442695, %v929_v57  ;;  %v956_v63 = vadd.f32 %v12067_v58, %v637_v60  ;;  %v1061_v43 = vadd.f32 %v12077_v37, %v13881_v40 }
  0xfd   : > { %v908_v61 = vpop.f32.mrf.mxu0  ;;  %v1055_v41 = vpop.f32.mrf.mxu1 }
  0xfe   : > { %12941 = vpow2.f32 %v10848_v59  ;;  %v955_v15 = vadd.f32 %v908_v61, %v632_v62  ;;  %v10851_v22 = vmul.f32 -1.442695, %v956_v63  ;;  %v1056_v52 = vadd.f32 %v1055_v41, %v13881_v40 }
  0xff   : > { %v12070_v0 = vpop.f32.mrf.mxu0  ;;  %v12080_v45 = vpop.f32.mrf.mxu1  ;;  %v741_v63 = vadd.f32 %v13866_v48, %v13885_v42 }
 0x100   : > { %v958_v23 = vadd.f32 %v12070_v0, %v647_v14  ;;  %v10850_v25 = vmul.f32 -1.442695, %v955_v15  ;;  %12943 = vpow2.f32 %v10851_v22  ;;  %v1071_v55 = vadd.f32 %v12080_v45, %v13881_v40 }
 0x101   : > { %v918_v16 = vpop.f32.mrf.mxu0  ;;  %v1065_v58 = vpop.f32.mrf.mxu1 }
 0x102   : > { %v957_v26 = vadd.f32 %v918_v16, %v642_v17  ;;  %v10853_v30 = vmul.f32 -1.442695, %v958_v23  ;;  %v1066_v16 = vadd.f32 %v1065_v58, %v13881_v40  ;;  %v736_v23 = vadd.f32 %v13873_v54, %v13885_v42 }
 0x103   : > { %v12085_v58 = vpop.f32.mrf.mxu0 }
 0x104   : > { %v10852_v34 = vmul.f32 -1.442695, %v957_v26 }
 0x105   : > { %v12936_v24 = vpop.eup %12935 }
 0x106   : > { %v944_v27 = vadd.f32 1.0, %v12936_v24 }
 0x107   : > { %v12938_v29 = vpop.eup %12937 }
 0x108   : > { %12945 = vrcp.f32 %v944_v27  ;;  %v943_v32 = vadd.f32 1.0, %v12938_v29 }
 0x109   : > { %v12940_v33 = vpop.eup %12939  ;;  %12947 = vpow2.f32 %v10850_v25 }
 0x10a   : > { %12949 = vrcp.f32 %v943_v32  ;;  %v946_v35 = vadd.f32 1.0, %v12940_v33 }
 0x10b   : > { %v12942_v36 = vpop.eup %12941  ;;  %12951 = vpow2.f32 %v10853_v30 }
 0x10c   : > { %12953 = vrcp.f32 %v946_v35  ;;  %v945_v38 = vadd.f32 1.0, %v12942_v36 }
 0x10d   : > { %12955 = vpow2.f32 %v10852_v34  ;;  %v12944_v46 = vpop.eup %12943 }
 0x10e   : > { %12957 = vrcp.f32 %v945_v38  ;;  %v972_v57 = vadd.f32 1.0, %v12944_v46 }
 0x115   : > { %v12946_v47 = vpop.eup %12945 }
 0x116   : > { %v12948_v49 = vpop.eup %12947  ;;  %v1075_v51 = vmul.f32 %v12946_v47, %v1061_v43 }
 0x117   : > { %v12950_v56 = vpop.eup %12949  ;;  %v971_v0 = vadd.f32 1.0, %v12948_v49 }
 0x118   : > { %v12952_v59 = vpop.eup %12951  ;;  %v1079_v60 = vadd.f32 %v1075_v51, %v731_v50  ;;  %v1074_v61 = vmul.f32 %v12950_v56, %v1056_v52  ;;  %v10901_v52 = vld [vmem:[%s13706_s8 + $0x40] sm:$0xff]  ;;  %v10903_v56 = vld [vmem:[%s13706_s8 + $0x50] sm:$0xff] }
 0x119   : > { %v12954_v62 = vpop.eup %12953  ;;  %v974_v22 = vadd.f32 1.0, %v12952_v59  ;;  %v1193_v59 = vpop.f32.mrf.mxu0 }
 0x11a   : > { %v12956_v39 = vpop.eup %12955  ;;  %12959 = vtanh.f32 %v1079_v60  ;;  %v1078_v14 = vadd.f32 %v1074_v61, %v726_v28  ;;  %v1077_v15 = vmul.f32 %v12954_v62, %v1071_v55  ;;  %v10902_v55 = vld [vmem:[%s13706_s8 + $0x48] sm:$0xff]  ;;  %v12093_v61 = vpop.f32.mrf.mxu1 }
 0x11b   : > { %v12958_v17 = vpop.eup %12957  ;;  %12961 = vrcp.f32 %v972_v57  ;;  %v973_v25 = vadd.f32 1.0, %v12956_v39  ;;  %v10904_v57 = vld [vmem:[%s13706_s8 + $0x58] sm:$0xff]  ;;  %v12088_v28 = vpop.f32.mrf.mxu0 }
 0x11c   : > { %12963 = vtanh.f32 %v1078_v14  ;;  %v1081_v44 = vadd.f32 %v1077_v15, %v741_v63  ;;  %v1076_v24 = vmul.f32 %v12958_v17, %v1066_v16  ;;  %v1278_v63 = vpop.f32.mrf.mxu1  ;;  %v1199_v15 = vadd.f32 %v12085_v58, %v13857_v31 }
 0x11d   : > { %12965 = vrcp.f32 %v971_v0  ;;  %v1203_v60 = vpop.f32.mrf.mxu0 }
 0x11e   : > { %12967 = vtanh.f32 %v1081_v44  ;;  %v1080_v48 = vadd.f32 %v1076_v24, %v736_v23  ;;  %v12096_v39 = vpop.f32.mrf.mxu1  ;;  %v1194_v23 = vadd.f32 %v1193_v59, %v13857_v31  ;;  %v1209_v44 = vadd.f32 %v12088_v28, %v13857_v31 }
 0x11f   : > { %12969 = vrcp.f32 %v974_v22  ;;  %v13987_v62 = vpop.f32.mrf.mxu0 }
 0x120   : > { %12971 = vtanh.f32 %v1080_v48  ;;  %v1288_v16 = vpop.f32.mrf.mxu1 }
 0x121   : > { %12973 = vrcp.f32 %v973_v25  ;;  %v13989_v0 = vpop.f32.mrf.mxu0 }
 0x123   : > { %v13991_v14 = vpop.f32.mrf.mxu0 }
 0x125   : > { %v13994_v17 = vpop.f32.mrf.mxu0 }
 0x127   : > { %v12960_v26 = vpop.eup %12959 }
 0x128   : > { %v12962_v27 = vpop.eup %12961  ;;  %v1087_v29 = vsub.f32 %v13772_v19, %v12960_v26 }
 0x129   : > { %v12964_v30 = vpop.eup %12963 }
 0x12a   : > { %v12966_v32 = vpop.eup %12965  ;;  %v1091_v33 = vmul.f32 %v12962_v27, %v1087_v29  ;;  %v1086_v54 = vsub.f32 %v13765_v18, %v12964_v30 }
 0x12b   : > { %v12968_v34 = vpop.eup %12967 }
 0x12c   : > { %v12970_v35 = vpop.eup %12969  ;;  %v1095_v36 = vadd.f32 %v12960_v26, %v1091_v33  ;;  %v1090_v37 = vmul.f32 %v12966_v32, %v1086_v54  ;;  %v1089_v38 = vsub.f32 %v13787_v21, %v12968_v34 }
 0x12d   : > { %v12972_v41 = vpop.eup %12971 }
 0x12e   : > { %1099 = vst.msk [vmem:[#allocation2 + $0x8] sm:$0xff] %vm744_vm3, %v1095_v36  ;;  %1103 = vst.msk [vmem:[%s13712_s13 + $0x8] sm:$0xff] %vm744_vm3, %v1095_v36  ;;  %v1094_v19 = vadd.f32 %v12964_v30, %v1090_v37  ;;  %v1093_v43 = vmul.f32 %v12970_v35, %v1089_v38  ;;  %v1088_v45 = vsub.f32 %v13777_v20, %v12972_v41  ;;  %v12974_v46 = vpop.eup %12973 }
 0x12f   : > { %v1204_v30 = vadd.f32 %v1203_v60, %v13857_v31  ;;  %v1284_v38 = vadd.f32 %v12093_v61, %v13871_v53 }
 0x130   : > { %1098 = vst.msk [vmem:[#allocation2] sm:$0xff] %vm744_vm3, %v1094_v19  ;;  %1102 = vst.msk [vmem:[%s13712_s13] sm:$0xff] %vm744_vm3, %v1094_v19  ;;  %v1097_v18 = vadd.f32 %v12968_v34, %v1093_v43  ;;  %v1092_v47 = vmul.f32 %v12974_v46, %v1088_v45  ;;  %v1279_v19 = vadd.f32 %v1278_v63, %v13871_v53 }
 0x131   : > { %v1294_v45 = vadd.f32 %v12096_v39, %v13871_v53 }
 0x132   : > { %1101 = vst.msk [vmem:[#allocation2 + $0x18] sm:$0xff] %vm744_vm3, %v1097_v18  ;;  %1105 = vst.msk [vmem:[%s13712_s13 + $0x18] sm:$0xff] %vm744_vm3, %v1097_v18  ;;  %v1096_v21 = vadd.f32 %v12972_v41, %v1092_v47  ;;  %v1289_v47 = vadd.f32 %v1288_v16, %v13871_v53 }
 0x134   : > { %1100 = vst.msk [vmem:[#allocation2 + $0x10] sm:$0xff] %vm744_vm3, %v1096_v21  ;;  %1104 = vst.msk [vmem:[%s13712_s13 + $0x10] sm:$0xff] %vm744_vm3, %v1096_v21 }
 0x135   : > { %v13921_v20 = vld [vmem:[#allocation2 + $0x8] sm:$0xff] }
 0x137   : > { %v13915_v49 = vld [vmem:[#allocation2] sm:$0xff] }
 0x138   : > { %12109 = vmatprep.mubr.msk.f32.mxu1 %vm744_vm3, %v13915_v49  ;;  %12119 = vmatprep.mubr.msk.f32.mxu0 %vm744_vm3, %v13915_v49 }
 0x139   : > { %12110 = vmatmul.mubr.msk.f32.vlgmr.msra.gmra.mxu1 %vm744_vm3, %v13921_v20  ;;  %12120 = vmatmul.mubr.msk.f32.vlgmr.msra.gmra.mxu0 %vm744_vm3, %v13921_v20  ;;  %v13939_v51 = vld [vmem:[#allocation2 + $0x18] sm:$0xff] }
 0x13a   : > { %12126 = vmatpush3.msra.mxu1 %v13737_v12  ;;  %12136 = vmatpush3.msk.msra.mxu0 %vm467_vm1, %v13715_v1 }
 0x13b   : > { %v13930_v50 = vld [vmem:[#allocation2 + $0x10] sm:$0xff]  ;;  %12127 = vmatprep.subr.mxu1 %v13735_v11  ;;  %12151 = vmatprep.subr.msk.mxu0 %vm467_vm1, %v13719_v3 }
 0x13c   : > { %12112 = vmatprep.mubr.msk.f32.mxu1 %vm744_vm3, %v13930_v50  ;;  %12122 = vmatprep.mubr.msk.f32.mxu0 %vm744_vm3, %v13930_v50 }
 0x13d   : > { %12113 = vmatmul.mubr.msk.f32.gmra.mxu1 %vm744_vm3, %v13939_v51  ;;  %12123 = vmatmul.mubr.msk.f32.gmra.mxu0 %vm744_vm3, %v13939_v51 }
 0x13e   : > { %12129 = vmatprep.mubr.msk.f32.mxu1 %vm744_vm3, %v13915_v49  ;;  %12128 = vmatpush3.msra.mxu1 %v13735_v11 }
 0x13f   : > { %12143 = vmatprep.subr.msk.mxu1 %vm467_vm1, %v13717_v2  ;;  %12137 = vmatprep.mubr.msk.f32.mxu0 %vm454_vm2, %v10901_v52 }
 0x141   : > { %12130 = vmatmul.mubr.msk.f32.vlgmr.msra.gmra.mxu1 %vm744_vm3, %v13921_v20  ;;  %12138 = vmatmul.mubr.msk.f32.vlgmr.msra.gmra.mxu0 %vm454_vm2, %v10902_v55 }
 0x142   : > { %12132 = vmatprep.mubr.msk.f32.mxu1 %vm744_vm3, %v13930_v50  ;;  %12144 = vmatpush3.msk.msra.mxu1 %vm467_vm1, %v13717_v2 }
 0x143   : > { %12159 = vmatprep.subr.mxu1 %v13729_v8  ;;  %12152 = vmatpush3.msk.msra.mxu0 %vm467_vm1, %v13719_v3 }
 0x144   : > { %12169 = vmatprep.subr.mxu0 %v13733_v10  ;;  %12140 = vmatprep.mubr.msk.f32.mxu0 %vm454_vm2, %v10903_v56 }
 0x145   : > { %12133 = vmatmul.mubr.msk.f32.gmra.mxu1 %vm744_vm3, %v13939_v51  ;;  %12141 = vmatmul.mubr.msk.f32.gmra.mxu0 %vm454_vm2, %v10904_v57 }
 0x146   : > { %12145 = vmatprep.mubr.msk.f32.mxu1 %vm454_vm2, %v10901_v52  ;;  %12153 = vmatprep.mubr.msk.f32.mxu0 %vm454_vm2, %v10901_v52 }
 0x149   : > { %12146 = vmatmul.mubr.msk.f32.vlgmr.msra.gmra.mxu1 %vm454_vm2, %v10902_v55  ;;  %12154 = vmatmul.mubr.msk.f32.vlgmr.msra.gmra.mxu0 %vm454_vm2, %v10902_v55 }
 0x14a   : > { %12160 = vmatpush3.msra.mxu1 %v13729_v8  ;;  %12148 = vmatprep.mubr.msk.f32.mxu1 %vm454_vm2, %v10903_v56 }
 0x14b   : > { %12161 = vmatprep.subr.mxu1 %v13727_v7  ;;  %12156 = vmatprep.mubr.msk.f32.mxu0 %vm454_vm2, %v10903_v56 }
 0x14c   : > { %12162 = vmatpush3.msra.mxu1 %v13727_v7  ;;  %12170 = vmatpush3.msra.mxu0 %v13733_v10 }
 0x14d   : > { %12149 = vmatmul.mubr.msk.f32.gmra.mxu1 %vm454_vm2, %v10904_v57  ;;  %12179 = vmatprep.subr.mxu1 %v13737_v12 }
 0x14e   : > { %12171 = vmatprep.subr.mxu0 %v13731_v9  ;;  %12157 = vmatmul.mubr.msk.f32.gmra.mxu0 %vm454_vm2, %v10904_v57 }
 0x14f   : > { %12172 = vmatpush3.msra.mxu0 %v13731_v9 }
 0x150   : > { %12189 = vmatprep.subr.msk.mxu0 %vm467_vm1, %v13715_v1 }
 0x1f9   : > { %v12111_v22 = vpop.f32.mrf.mxu1  ;;  %v12121_v26 = vpop.f32.mrf.mxu0 }
 0x1fa   : > { %v1565_v24 = vadd.f32 %v12111_v22, %v1199_v15  ;;  %v1593_v43 = vadd.f32 %v12121_v26, %v1284_v38 }
 0x1fb   : > { %v1460_v25 = vpop.f32.mrf.mxu1  ;;  %v1545_v34 = vpop.f32.mrf.mxu0 }
 0x1fc   : > { %v10886_v48 = vmul.f32 -1.442695, %v1565_v24  ;;  %v1564_v27 = vadd.f32 %v1460_v25, %v1194_v23  ;;  %v1592_v46 = vadd.f32 %v1545_v34, %v1279_v19  ;;  %v10890_v21 = vmul.f32 -1.442695, %v1593_v43 }
 0x1fd   : > { %v12114_v29 = vpop.f32.mrf.mxu1  ;;  %v12124_v41 = vpop.f32.mrf.mxu0  ;;  %v1379_v19 = vadd.f32 %v13991_v14, %v13885_v42 }
 0x1fe   : > { %12975 = vpow2.f32 %v10886_v48  ;;  %v10885_v32 = vmul.f32 -1.442695, %v1564_v27  ;;  %v1567_v33 = vadd.f32 %v12114_v29, %v1209_v44  ;;  %v1595_v52 = vadd.f32 %v12124_v41, %v1294_v45 }
 0x1ff   : > { %v1470_v54 = vpop.f32.mrf.mxu1  ;;  %v1555_v18 = vpop.f32.mrf.mxu0  ;;  %v10889_v56 = vmul.f32 -1.442695, %v1592_v46  ;;  %v1369_v27 = vadd.f32 %v13987_v62, %v13885_v42 }
 0x200   : > { %12977 = vpow2.f32 %v10885_v32  ;;  %v10888_v35 = vmul.f32 -1.442695, %v1567_v33  ;;  %v1566_v36 = vadd.f32 %v1470_v54, %v1204_v30  ;;  %v1594_v57 = vadd.f32 %v1555_v18, %v1289_v47 }
 0x201   : > { %v10892_v28 = vmul.f32 -1.442695, %v1595_v52  ;;  %v12131_v22 = vpop.f32.mrf.mxu1 }
 0x202   : > { %12979 = vpow2.f32 %v10888_v35  ;;  %v10887_v37 = vmul.f32 -1.442695, %v1566_v36  ;;  %v10891_v63 = vmul.f32 -1.442695, %v1594_v57  ;;  %v1692_v25 = vadd.f32 %v12131_v22, %v13881_v40 }
 0x203   : > { %v1686_v23 = vpop.f32.mrf.mxu1  ;;  %v1364_v35 = vadd.f32 %v13989_v0, %v13885_v42  ;;  %v1374_v0 = vadd.f32 %v13994_v17, %v13885_v42 }
 0x204   : > { %12981 = vpow2.f32 %v10887_v37  ;;  %v1687_v30 = vadd.f32 %v1686_v23, %v13881_v40 }
 0x205   : > { %12983 = vpow2.f32 %v10890_v21  ;;  %v12134_v44 = vpop.f32.mrf.mxu1 }
 0x206   : > { %v1702_v38 = vadd.f32 %v12134_v44, %v13881_v40 }
 0x207   : > { %v1696_v54 = vpop.f32.mrf.mxu1 }
 0x208   : > { %v1697_v18 = vadd.f32 %v1696_v54, %v13881_v40  ;;  %v10947_v54 = vld [vmem:[%s13706_s8 + $0x78] sm:$0xff] }
 0x20b   : > { %v12976_v55 = vpop.eup %12975 }
 0x20c   : > { %v1581_v58 = vadd.f32 1.0, %v12976_v55 }
 0x20d   : > { %v12978_v59 = vpop.eup %12977 }
 0x20e   : > { %12985 = vrcp.f32 %v1581_v58  ;;  %v1580_v60 = vadd.f32 1.0, %v12978_v59 }
 0x20f   : > { %v12980_v61 = vpop.eup %12979  ;;  %12987 = vpow2.f32 %v10889_v56 }
 0x210   : > { %12989 = vrcp.f32 %v1580_v60  ;;  %v1583_v39 = vadd.f32 1.0, %v12980_v61 }
 0x211   : > { %v12982_v15 = vpop.eup %12981  ;;  %12991 = vpow2.f32 %v10892_v28 }
 0x212   : > { %12993 = vrcp.f32 %v1583_v39  ;;  %v1582_v16 = vadd.f32 1.0, %v12982_v15  ;;  %v12984_v24 = vpop.eup %12983 }
 0x213   : > { %12995 = vpow2.f32 %v10891_v63  ;;  %v1609_v33 = vadd.f32 1.0, %v12984_v24 }
 0x214   : > { %12997 = vrcp.f32 %v1582_v16 }
 0x21b   : > { %v12986_v48 = vpop.eup %12985 }
 0x21c   : > { %v12988_v26 = vpop.eup %12987  ;;  %v1706_v29 = vmul.f32 %v12986_v48, %v1692_v25 }
 0x21d   : > { %v12990_v32 = vpop.eup %12989  ;;  %v1608_v43 = vadd.f32 1.0, %v12988_v26 }
 0x21e   : > { %v12992_v34 = vpop.eup %12991  ;;  %v1710_v36 = vadd.f32 %v1706_v29, %v1369_v27  ;;  %v1705_v37 = vmul.f32 %v12990_v32, %v1687_v30  ;;  %v10944_v30 = vld [vmem:[%s13706_s8 + $0x60] sm:$0xff]  ;;  %v10945_v32 = vld [vmem:[%s13706_s8 + $0x68] sm:$0xff] }
 0x21f   : > { %v12994_v41 = vpop.eup %12993  ;;  %v1611_v21 = vadd.f32 1.0, %v12992_v34  ;;  %v12139_v34 = vpop.f32.mrf.mxu0 }
 0x220   : > { %v12996_v62 = vpop.eup %12995  ;;  %12999 = vtanh.f32 %v1710_v36  ;;  %v1709_v45 = vadd.f32 %v1705_v37, %v1364_v35  ;;  %v1708_v46 = vmul.f32 %v12994_v41, %v1702_v38  ;;  %v12147_v38 = vpop.f32.mrf.mxu1 }
 0x221   : > { %v12998_v47 = vpop.eup %12997  ;;  %13001 = vrcp.f32 %v1609_v33  ;;  %v1610_v56 = vadd.f32 1.0, %v12996_v62  ;;  %v10946_v33 = vld [vmem:[%s13706_s8 + $0x70] sm:$0xff]  ;;  %v1825_v35 = vpop.f32.mrf.mxu0 }
 0x222   : > { %13003 = vtanh.f32 %v1709_v45  ;;  %v1712_v52 = vadd.f32 %v1708_v46, %v1379_v19  ;;  %v1707_v55 = vmul.f32 %v12998_v47, %v1697_v18  ;;  %v1910_v19 = vpop.f32.mrf.mxu1  ;;  %v1831_v46 = vadd.f32 %v12139_v34, %v13857_v31 }
 0x223   : > { %13005 = vrcp.f32 %v1608_v43  ;;  %v12142_v36 = vpop.f32.mrf.mxu0 }
 0x224   : > { %13007 = vtanh.f32 %v1712_v52  ;;  %v1711_v14 = vadd.f32 %v1707_v55, %v1374_v0  ;;  %v12150_v62 = vpop.f32.mrf.mxu1  ;;  %v1826_v0 = vadd.f32 %v1825_v35, %v13857_v31  ;;  %v1841_v52 = vadd.f32 %v12142_v36, %v13857_v31 }
 0x225   : > { %13009 = vrcp.f32 %v1611_v21  ;;  %v1835_v37 = vpop.f32.mrf.mxu0 }
 0x226   : > { %13011 = vtanh.f32 %v1711_v14  ;;  %v1920_v18 = vpop.f32.mrf.mxu1 }
 0x227   : > { %13013 = vrcp.f32 %v1610_v56  ;;  %v14103_v41 = vpop.f32.mrf.mxu0 }
 0x229   : > { %v14105_v43 = vpop.f32.mrf.mxu0 }
 0x22b   : > { %v14107_v45 = vpop.f32.mrf.mxu0 }
 0x22d   : > { %v13000_v57 = vpop.eup %12999  ;;  %v14110_v47 = vpop.f32.mrf.mxu0 }
 0x22e   : > { %v13002_v58 = vpop.eup %13001  ;;  %v1718_v59 = vsub.f32 %v13921_v20, %v13000_v57 }
 0x22f   : > { %v13004_v28 = vpop.eup %13003 }
 0x230   : > { %v13006_v60 = vpop.eup %13005  ;;  %v1722_v61 = vmul.f32 %v13002_v58, %v1718_v59  ;;  %v1717_v17 = vsub.f32 %v13915_v49, %v13004_v28 }
 0x231   : > { %v13008_v63 = vpop.eup %13007 }
 0x232   : > { %v13010_v39 = vpop.eup %13009  ;;  %v1726_v15 = vadd.f32 %v13000_v57, %v1722_v61  ;;  %v1721_v22 = vmul.f32 %v13006_v60, %v1717_v17  ;;  %v1720_v16 = vsub.f32 %v13939_v51, %v13008_v63 }
 0x233   : > { %v13012_v23 = vpop.eup %13011 }
 0x234   : > { %1730 = vst.msk [vmem:[#allocation2 + $0x8] sm:$0xff] %vm744_vm3, %v1726_v15  ;;  %10898 = vst.msk [vmem:[%s13712_s13 + $0x28] sm:$0xff] %vm744_vm3, %v1726_v15  ;;  %v1725_v20 = vadd.f32 %v13004_v28, %v1721_v22  ;;  %v1724_v44 = vmul.f32 %v13010_v39, %v1720_v16  ;;  %v1719_v24 = vsub.f32 %v13930_v50, %v13012_v23  ;;  %v13014_v25 = vpop.eup %13013 }
 0x235   : > { %v1836_v28 = vadd.f32 %v1835_v37, %v13857_v31  ;;  %v1916_v16 = vadd.f32 %v12147_v38, %v13871_v53 }
 0x236   : > { %1729 = vst.msk [vmem:[#allocation2] sm:$0xff] %vm744_vm3, %v1725_v20  ;;  %10897 = vst.msk [vmem:[%s13712_s13 + $0x20] sm:$0xff] %vm744_vm3, %v1725_v20  ;;  %v1728_v49 = vadd.f32 %v13008_v63, %v1724_v44  ;;  %v1723_v48 = vmul.f32 %v13014_v25, %v1719_v24  ;;  %v1911_v20 = vadd.f32 %v1910_v19, %v13871_v53 }
 0x237   : > { %v1926_v24 = vadd.f32 %v12150_v62, %v13871_v53 }
 0x238   : > { %1732 = vst.msk [vmem:[#allocation2 + $0x18] sm:$0xff] %vm744_vm3, %v1728_v49  ;;  %10900 = vst.msk [vmem:[%s13712_s13 + $0x38] sm:$0xff] %vm744_vm3, %v1728_v49  ;;  %v1727_v51 = vadd.f32 %v13012_v23, %v1723_v48  ;;  %v1921_v48 = vadd.f32 %v1920_v18, %v13871_v53 }
 0x23a   : > { %1731 = vst.msk [vmem:[#allocation2 + $0x10] sm:$0xff] %vm744_vm3, %v1727_v51  ;;  %10899 = vst.msk [vmem:[%s13712_s13 + $0x30] sm:$0xff] %vm744_vm3, %v1727_v51 }
 0x23b   : > { %v14037_v50 = vld [vmem:[#allocation2 + $0x8] sm:$0xff] }
 0x23d   : > { %v14031_v26 = vld [vmem:[#allocation2] sm:$0xff] }
 0x23e   : > { %12163 = vmatprep.mubr.msk.f32.mxu1 %vm744_vm3, %v14031_v26  ;;  %12173 = vmatprep.mubr.msk.f32.mxu0 %vm744_vm3, %v14031_v26 }
 0x23f   : > { %12164 = vmatmul.mubr.msk.f32.vlgmr.msra.gmra.mxu1 %vm744_vm3, %v14037_v50  ;;  %12174 = vmatmul.mubr.msk.f32.vlgmr.msra.gmra.mxu0 %vm744_vm3, %v14037_v50  ;;  %v14055_v29 = vld [vmem:[#allocation2 + $0x18] sm:$0xff] }
 0x240   : > { %12180 = vmatpush3.msra.mxu1 %v13737_v12  ;;  %12190 = vmatpush3.msk.msra.mxu0 %vm467_vm1, %v13715_v1 }
 0x241   : > { %v14046_v27 = vld [vmem:[#allocation2 + $0x10] sm:$0xff]  ;;  %12181 = vmatprep.subr.mxu1 %v13735_v11  ;;  %12205 = vmatprep.subr.msk.mxu0 %vm467_vm1, %v13719_v3 }
 0x242   : > { %12166 = vmatprep.mubr.msk.f32.mxu1 %vm744_vm3, %v14046_v27  ;;  %12176 = vmatprep.mubr.msk.f32.mxu0 %vm744_vm3, %v14046_v27 }
 0x243   : > { %12167 = vmatmul.mubr.msk.f32.gmra.mxu1 %vm744_vm3, %v14055_v29  ;;  %12177 = vmatmul.mubr.msk.f32.gmra.mxu0 %vm744_vm3, %v14055_v29 }
 0x244   : > { %12183 = vmatprep.mubr.msk.f32.mxu1 %vm744_vm3, %v14031_v26  ;;  %12182 = vmatpush3.msra.mxu1 %v13735_v11 }
 0x245   : > { %12197 = vmatprep.subr.msk.mxu1 %vm467_vm1, %v13717_v2  ;;  %12191 = vmatprep.mubr.msk.f32.mxu0 %vm454_vm2, %v10944_v30 }
 0x247   : > { %12184 = vmatmul.mubr.msk.f32.vlgmr.msra.gmra.mxu1 %vm744_vm3, %v14037_v50  ;;  %12192 = vmatmul.mubr.msk.f32.vlgmr.msra.gmra.mxu0 %vm454_vm2, %v10945_v32 }
 0x248   : > { %12186 = vmatprep.mubr.msk.f32.mxu1 %vm744_vm3, %v14046_v27  ;;  %12198 = vmatpush3.msk.msra.mxu1 %vm467_vm1, %v13717_v2 }
 0x249   : > { %12213 = vmatprep.subr.mxu1 %v13729_v8  ;;  %12206 = vmatpush3.msk.msra.mxu0 %vm467_vm1, %v13719_v3 }
 0x24a   : > { %12223 = vmatprep.subr.mxu0 %v13733_v10  ;;  %12194 = vmatprep.mubr.msk.f32.mxu0 %vm454_vm2, %v10946_v33 }
 0x24b   : > { %12187 = vmatmul.mubr.msk.f32.gmra.mxu1 %vm744_vm3, %v14055_v29  ;;  %12195 = vmatmul.mubr.msk.f32.gmra.mxu0 %vm454_vm2, %v10947_v54 }
 0x24c   : > { %12199 = vmatprep.mubr.msk.f32.mxu1 %vm454_vm2, %v10944_v30  ;;  %12207 = vmatprep.mubr.msk.f32.mxu0 %vm454_vm2, %v10944_v30 }
 0x24f   : > { %12200 = vmatmul.mubr.msk.f32.vlgmr.msra.gmra.mxu1 %vm454_vm2, %v10945_v32  ;;  %12208 = vmatmul.mubr.msk.f32.vlgmr.msra.gmra.mxu0 %vm454_vm2, %v10945_v32 }
 0x250   : > { %12214 = vmatpush3.msra.mxu1 %v13729_v8  ;;  %12202 = vmatprep.mubr.msk.f32.mxu1 %vm454_vm2, %v10946_v33 }
 0x251   : > { %12215 = vmatprep.subr.mxu1 %v13727_v7  ;;  %12210 = vmatprep.mubr.msk.f32.mxu0 %vm454_vm2, %v10946_v33 }
 0x252   : > { %12216 = vmatpush3.msra.mxu1 %v13727_v7  ;;  %12224 = vmatpush3.msra.mxu0 %v13733_v10 }
 0x253   : > { %12203 = vmatmul.mubr.msk.f32.gmra.mxu1 %vm454_vm2, %v10947_v54  ;;  %12233 = vmatprep.subr.mxu1 %v13737_v12 }
 0x254   : > { %12225 = vmatprep.subr.mxu0 %v13731_v9  ;;  %12211 = vmatmul.mubr.msk.f32.gmra.mxu0 %vm454_vm2, %v10947_v54 }
 0x255   : > { %12226 = vmatpush3.msra.mxu0 %v13731_v9 }
 0x256   : > { %12243 = vmatprep.subr.msk.mxu0 %vm467_vm1, %v13715_v1 }
 0x2ff   : > { %v12165_v21 = vpop.f32.mrf.mxu1  ;;  %v12175_v57 = vpop.f32.mrf.mxu0 }
 0x300   : > { %v2197_v55 = vadd.f32 %v12165_v21, %v1831_v46  ;;  %v2225_v44 = vadd.f32 %v12175_v57, %v1916_v16 }
 0x301   : > { %v2092_v56 = vpop.f32.mrf.mxu1  ;;  %v2177_v63 = vpop.f32.mrf.mxu0 }
 0x302   : > { %v10929_v14 = vmul.f32 -1.442695, %v2197_v55  ;;  %v2196_v58 = vadd.f32 %v2092_v56, %v1826_v0  ;;  %v2224_v25 = vadd.f32 %v2177_v63, %v1911_v20  ;;  %v10933_v51 = vmul.f32 -1.442695, %v2225_v44 }
 0x303   : > { %v12168_v59 = vpop.f32.mrf.mxu1  ;;  %v12178_v23 = vpop.f32.mrf.mxu0  ;;  %v2011_v20 = vadd.f32 %v14107_v45, %v13885_v42 }
 0x304   : > { %13015 = vpow2.f32 %v10929_v14  ;;  %v10928_v60 = vmul.f32 -1.442695, %v2196_v58  ;;  %v2199_v61 = vadd.f32 %v12168_v59, %v1841_v52  ;;  %v2227_v30 = vadd.f32 %v12178_v23, %v1926_v24 }
 0x305   : > { %v2102_v17 = vpop.f32.mrf.mxu1  ;;  %v2187_v49 = vpop.f32.mrf.mxu0  ;;  %v10932_v33 = vmul.f32 -1.442695, %v2224_v25  ;;  %v2001_v58 = vadd.f32 %v14103_v41, %v13885_v42 }
 0x306   : > { %13017 = vpow2.f32 %v10928_v60  ;;  %v10931_v39 = vmul.f32 -1.442695, %v2199_v61  ;;  %v2198_v15 = vadd.f32 %v2102_v17, %v1836_v28  ;;  %v2226_v54 = vadd.f32 %v2187_v49, %v1921_v48 }
 0x307   : > { %v10935_v36 = vmul.f32 -1.442695, %v2227_v30  ;;  %v12185_v21 = vpop.f32.mrf.mxu1 }
 0x308   : > { %13019 = vpow2.f32 %v10931_v39  ;;  %v10930_v22 = vmul.f32 -1.442695, %v2198_v15  ;;  %v10934_v19 = vmul.f32 -1.442695, %v2226_v54  ;;  %v2324_v56 = vadd.f32 %v12185_v21, %v13881_v40 }
 0x309   : > { %v2318_v0 = vpop.f32.mrf.mxu1  ;;  %v1996_v39 = vadd.f32 %v14105_v43, %v13885_v42  ;;  %v2006_v43 = vadd.f32 %v14110_v47, %v13885_v42 }
 0x30a   : > { %13021 = vpow2.f32 %v10930_v22  ;;  %v2319_v28 = vadd.f32 %v2318_v0, %v13881_v40 }
 0x30b   : > { %13023 = vpow2.f32 %v10933_v51  ;;  %v12188_v52 = vpop.f32.mrf.mxu1 }
 0x30c   : > { %v2334_v16 = vadd.f32 %v12188_v52, %v13881_v40 }
 0x30d   : > { %v2328_v17 = vpop.f32.mrf.mxu1 }
 0x30e   : > { %v2329_v49 = vadd.f32 %v2328_v17, %v13881_v40  ;;  %v10990_v17 = vld [vmem:[%s13706_s8 + $0x98] sm:$0xff] }
 0x311   : > { %v13016_v32 = vpop.eup %13015 }
 0x312   : > { %v2213_v34 = vadd.f32 1.0, %v13016_v32 }
 0x313   : > { %v13018_v35 = vpop.eup %13017 }
 0x314   : > { %13025 = vrcp.f32 %v2213_v34  ;;  %v2212_v37 = vadd.f32 1.0, %v13018_v35 }
 0x315   : > { %v13020_v38 = vpop.eup %13019  ;;  %13027 = vpow2.f32 %v10932_v33 }
 0x316   : > { %13029 = vrcp.f32 %v2212_v37  ;;  %v2215_v62 = vadd.f32 1.0, %v13020_v38 }
 0x317   : > { %v13022_v46 = vpop.eup %13021  ;;  %13031 = vpow2.f32 %v10935_v36 }
 0x318   : > { %13033 = vrcp.f32 %v2215_v62  ;;  %v2214_v18 = vadd.f32 1.0, %v13022_v46  ;;  %v13024_v55 = vpop.eup %13023 }
 0x319   : > { %13035 = vpow2.f32 %v10934_v19  ;;  %v2241_v61 = vadd.f32 1.0, %v13024_v55 }
 0x31a   : > { %13037 = vrcp.f32 %v2214_v18 }
 0x321   : > { %v13026_v14 = vpop.eup %13025 }
 0x322   : > { %v13028_v57 = vpop.eup %13027  ;;  %v2338_v59 = vmul.f32 %v13026_v14, %v2324_v56 }
 0x323   : > { %v13030_v60 = vpop.eup %13029  ;;  %v2240_v44 = vadd.f32 1.0, %v13028_v57 }
 0x324   : > { %v13032_v63 = vpop.eup %13031  ;;  %v2342_v15 = vadd.f32 %v2338_v59, %v2001_v58  ;;  %v2337_v22 = vmul.f32 %v13030_v60, %v2319_v28  ;;  %v10987_v28 = vld [vmem:[%s13706_s8 + $0x80] sm:$0xff]  ;;  %v10988_v60 = vld [vmem:[%s13706_s8 + $0x88] sm:$0xff] }
 0x325   : > { %v13034_v23 = vpop.eup %13033  ;;  %v2243_v51 = vadd.f32 1.0, %v13032_v63  ;;  %v12193_v63 = vpop.f32.mrf.mxu0 }
 0x326   : > { %v13036_v41 = vpop.eup %13035  ;;  %13039 = vtanh.f32 %v2342_v15  ;;  %v2341_v24 = vadd.f32 %v2337_v22, %v1996_v39  ;;  %v2340_v25 = vmul.f32 %v13034_v23, %v2334_v16  ;;  %v12201_v16 = vpop.f32.mrf.mxu1 }
 0x327   : > { %v13038_v48 = vpop.eup %13037  ;;  %13041 = vrcp.f32 %v2241_v61  ;;  %v2242_v33 = vadd.f32 1.0, %v13036_v41  ;;  %v10989_v61 = vld [vmem:[%s13706_s8 + $0x90] sm:$0xff]  ;;  %v2457_v39 = vpop.f32.mrf.mxu0 }
 0x328   : > { %13043 = vtanh.f32 %v2341_v24  ;;  %v2344_v30 = vadd.f32 %v2340_v25, %v2011_v20  ;;  %v2339_v32 = vmul.f32 %v13038_v48, %v2329_v49  ;;  %v2542_v20 = vpop.f32.mrf.mxu1  ;;  %v2463_v25 = vadd.f32 %v12193_v63, %v13857_v31 }
 0x329   : > { %13045 = vrcp.f32 %v2240_v44  ;;  %v12196_v15 = vpop.f32.mrf.mxu0 }
 0x32a   : > { %13047 = vtanh.f32 %v2344_v30  ;;  %v2343_v45 = vadd.f32 %v2339_v32, %v2006_v43  ;;  %v12204_v41 = vpop.f32.mrf.mxu1  ;;  %v2458_v43 = vadd.f32 %v2457_v39, %v13857_v31  ;;  %v2473_v30 = vadd.f32 %v12196_v15, %v13857_v31 }
 0x32b   : > { %13049 = vrcp.f32 %v2243_v51  ;;  %v2467_v22 = vpop.f32.mrf.mxu0 }
 0x32c   : > { %13051 = vtanh.f32 %v2343_v45  ;;  %v2552_v49 = vpop.f32.mrf.mxu1 }
 0x32d   : > { %13053 = vrcp.f32 %v2242_v33  ;;  %v14219_v23 = vpop.f32.mrf.mxu0 }
 0x32f   : > { %v14221_v44 = vpop.f32.mrf.mxu0 }
 0x331   : > { %v14223_v24 = vpop.f32.mrf.mxu0 }
 0x333   : > { %v13040_v54 = vpop.eup %13039  ;;  %v14226_v48 = vpop.f32.mrf.mxu0 }
 0x334   : > { %v13042_v34 = vpop.eup %13041  ;;  %v2350_v35 = vsub.f32 %v14037_v50, %v13040_v54 }
 0x335   : > { %v13044_v36 = vpop.eup %13043 }
 0x336   : > { %v13046_v37 = vpop.eup %13045  ;;  %v2354_v38 = vmul.f32 %v13042_v34, %v2350_v35  ;;  %v2349_v47 = vsub.f32 %v14031_v26, %v13044_v36 }
 0x337   : > { %v13048_v19 = vpop.eup %13047 }
 0x338   : > { %v13050_v62 = vpop.eup %13049  ;;  %v2358_v46 = vadd.f32 %v13040_v54, %v2354_v38  ;;  %v2353_v21 = vmul.f32 %v13046_v37, %v2349_v47  ;;  %v2352_v18 = vsub.f32 %v14055_v29, %v13048_v19 }
 0x339   : > { %v13052_v0 = vpop.eup %13051 }
 0x33a   : > { %2362 = vst.msk [vmem:[#allocation2 + $0x8] sm:$0xff] %vm744_vm3, %v2358_v46  ;;  %10941 = vst.msk [vmem:[%s13712_s13 + $0x48] sm:$0xff] %vm744_vm3, %v2358_v46  ;;  %v2357_v50 = vadd.f32 %v13044_v36, %v2353_v21  ;;  %v2356_v52 = vmul.f32 %v13050_v62, %v2352_v18  ;;  %v2351_v55 = vsub.f32 %v14046_v27, %v13052_v0  ;;  %v13054_v56 = vpop.eup %13053 }
 0x33b   : > { %v2468_v36 = vadd.f32 %v2467_v22, %v13857_v31  ;;  %v2548_v18 = vadd.f32 %v12201_v16, %v13871_v53 }
 0x33c   : > { %2361 = vst.msk [vmem:[#allocation2] sm:$0xff] %vm744_vm3, %v2357_v50  ;;  %10940 = vst.msk [vmem:[%s13712_s13 + $0x40] sm:$0xff] %vm744_vm3, %v2357_v50  ;;  %v2360_v26 = vadd.f32 %v13048_v19, %v2356_v52  ;;  %v2355_v14 = vmul.f32 %v13054_v56, %v2351_v55  ;;  %v2543_v50 = vadd.f32 %v2542_v20, %v13871_v53 }
 0x33d   : > { %v2558_v55 = vadd.f32 %v12204_v41, %v13871_v53 }
 0x33e   : > { %2364 = vst.msk [vmem:[#allocation2 + $0x18] sm:$0xff] %vm744_vm3, %v2360_v26  ;;  %10943 = vst.msk [vmem:[%s13712_s13 + $0x58] sm:$0xff] %vm744_vm3, %v2360_v26  ;;  %v2359_v29 = vadd.f32 %v13052_v0, %v2355_v14  ;;  %v2553_v14 = vadd.f32 %v2552_v49, %v13871_v53 }
 0x340   : > { %2363 = vst.msk [vmem:[#allocation2 + $0x10] sm:$0xff] %vm744_vm3, %v2359_v29  ;;  %10942 = vst.msk [vmem:[%s13712_s13 + $0x50] sm:$0xff] %vm744_vm3, %v2359_v29 }
 0x341   : > { %v14153_v27 = vld [vmem:[#allocation2 + $0x8] sm:$0xff] }
 0x343   : > { %v14147_v57 = vld [vmem:[#allocation2] sm:$0xff] }
 0x344   : > { %12217 = vmatprep.mubr.msk.f32.mxu1 %vm744_vm3, %v14147_v57  ;;  %12227 = vmatprep.mubr.msk.f32.mxu0 %vm744_vm3, %v14147_v57 }
 0x345   : > { %12218 = vmatmul.mubr.msk.f32.vlgmr.msra.gmra.mxu1 %vm744_vm3, %v14153_v27  ;;  %12228 = vmatmul.mubr.msk.f32.vlgmr.msra.gmra.mxu0 %vm744_vm3, %v14153_v27  ;;  %v14171_v59 = vld [vmem:[#allocation2 + $0x18] sm:$0xff] }
 0x346   : > { %12234 = vmatpush3.msra.mxu1 %v13737_v12  ;;  %12244 = vmatpush3.msk.msra.mxu0 %vm467_vm1, %v13715_v1 }
 0x347   : > { %v14162_v58 = vld [vmem:[#allocation2 + $0x10] sm:$0xff]  ;;  %12235 = vmatprep.subr.mxu1 %v13735_v11  ;;  %12259 = vmatprep.subr.msk.mxu0 %vm467_vm1, %v13719_v3 }
 0x348   : > { %12220 = vmatprep.mubr.msk.f32.mxu1 %vm744_vm3, %v14162_v58  ;;  %12230 = vmatprep.mubr.msk.f32.mxu0 %vm744_vm3, %v14162_v58 }
 0x349   : > { %12221 = vmatmul.mubr.msk.f32.gmra.mxu1 %vm744_vm3, %v14171_v59  ;;  %12231 = vmatmul.mubr.msk.f32.gmra.mxu0 %vm744_vm3, %v14171_v59 }
 0x34a   : > { %12237 = vmatprep.mubr.msk.f32.mxu1 %vm744_vm3, %v14147_v57  ;;  %12236 = vmatpush3.msra.mxu1 %v13735_v11 }
 0x34b   : > { %12251 = vmatprep.subr.msk.mxu1 %vm467_vm1, %v13717_v2  ;;  %12245 = vmatprep.mubr.msk.f32.mxu0 %vm454_vm2, %v10987_v28 }
 0x34d   : > { %12238 = vmatmul.mubr.msk.f32.vlgmr.msra.gmra.mxu1 %vm744_vm3, %v14153_v27  ;;  %12246 = vmatmul.mubr.msk.f32.vlgmr.msra.gmra.mxu0 %vm454_vm2, %v10988_v60 }
 0x34e   : > { %12240 = vmatprep.mubr.msk.f32.mxu1 %vm744_vm3, %v14162_v58  ;;  %12252 = vmatpush3.msk.msra.mxu1 %vm467_vm1, %v13717_v2 }
 0x34f   : > { %12267 = vmatprep.subr.mxu1 %v13729_v8  ;;  %12260 = vmatpush3.msk.msra.mxu0 %vm467_vm1, %v13719_v3 }
 0x350   : > { %12277 = vmatprep.subr.mxu0 %v13733_v10  ;;  %12248 = vmatprep.mubr.msk.f32.mxu0 %vm454_vm2, %v10989_v61 }
 0x351   : > { %12241 = vmatmul.mubr.msk.f32.gmra.mxu1 %vm744_vm3, %v14171_v59  ;;  %12249 = vmatmul.mubr.msk.f32.gmra.mxu0 %vm454_vm2, %v10990_v17 }
 0x352   : > { %12253 = vmatprep.mubr.msk.f32.mxu1 %vm454_vm2, %v10987_v28  ;;  %12261 = vmatprep.mubr.msk.f32.mxu0 %vm454_vm2, %v10987_v28 }
 0x355   : > { %12254 = vmatmul.mubr.msk.f32.vlgmr.msra.gmra.mxu1 %vm454_vm2, %v10988_v60  ;;  %12262 = vmatmul.mubr.msk.f32.vlgmr.msra.gmra.mxu0 %vm454_vm2, %v10988_v60 }
 0x356   : > { %12268 = vmatpush3.msra.mxu1 %v13729_v8  ;;  %12256 = vmatprep.mubr.msk.f32.mxu1 %vm454_vm2, %v10989_v61 }
 0x357   : > { %12269 = vmatprep.subr.mxu1 %v13727_v7  ;;  %12264 = vmatprep.mubr.msk.f32.mxu0 %vm454_vm2, %v10989_v61 }
 0x358   : > { %12270 = vmatpush3.msra.mxu1 %v13727_v7  ;;  %12278 = vmatpush3.msra.mxu0 %v13733_v10 }
 0x359   : > { %12257 = vmatmul.mubr.msk.f32.gmra.mxu1 %vm454_vm2, %v10990_v17  ;;  %12287 = vmatprep.subr.mxu1 %v13737_v12 }
 0x35a   : > { %12279 = vmatprep.subr.mxu0 %v13731_v9  ;;  %12265 = vmatmul.mubr.msk.f32.gmra.mxu0 %vm454_vm2, %v10990_v17 }
 0x35b   : > { %12280 = vmatpush3.msra.mxu0 %v13731_v9 }
 0x35c   : > { %12297 = vmatprep.subr.msk.mxu0 %vm467_vm1, %v13715_v1 }
 0x405   : > { %v12219_v51 = vpop.f32.mrf.mxu1  ;;  %v12229_v54 = vpop.f32.mrf.mxu0 }
 0x406   : > { %v2829_v32 = vadd.f32 %v12219_v51, %v2463_v25  ;;  %v2857_v52 = vadd.f32 %v12229_v54, %v2548_v18 }
 0x407   : > { %v2724_v33 = vpop.f32.mrf.mxu1  ;;  %v2809_v19 = vpop.f32.mrf.mxu0 }
 0x408   : > { %v10972_v45 = vmul.f32 -1.442695, %v2829_v32  ;;  %v2828_v34 = vadd.f32 %v2724_v33, %v2458_v43  ;;  %v2856_v56 = vadd.f32 %v2809_v19, %v2543_v50  ;;  %v10976_v29 = vmul.f32 -1.442695, %v2857_v52 }
 0x409   : > { %v12222_v35 = vpop.f32.mrf.mxu1  ;;  %v12232_v0 = vpop.f32.mrf.mxu0  ;;  %v2643_v50 = vadd.f32 %v14223_v24, %v13885_v42 }
 0x40a   : > { %13055 = vpow2.f32 %v10972_v45  ;;  %v10971_v37 = vmul.f32 -1.442695, %v2828_v34  ;;  %v2831_v38 = vadd.f32 %v12222_v35, %v2473_v30  ;;  %v2859_v28 = vadd.f32 %v12232_v0, %v2558_v55 }
 0x40b   : > { %v2734_v47 = vpop.f32.mrf.mxu1  ;;  %v2819_v26 = vpop.f32.mrf.mxu0  ;;  %v10975_v61 = vmul.f32 -1.442695, %v2856_v56  ;;  %v2633_v34 = vadd.f32 %v14219_v23, %v13885_v42 }
 0x40c   : > { %13057 = vpow2.f32 %v10971_v37  ;;  %v10974_v62 = vmul.f32 -1.442695, %v2831_v38  ;;  %v2830_v46 = vadd.f32 %v2734_v47, %v2468_v36  ;;  %v2858_v17 = vadd.f32 %v2819_v26, %v2553_v14 }
 0x40d   : > { %v10978_v15 = vmul.f32 -1.442695, %v2859_v28  ;;  %v12239_v51 = vpop.f32.mrf.mxu1 }
 0x40e   : > { %13059 = vpow2.f32 %v10974_v62  ;;  %v10973_v21 = vmul.f32 -1.442695, %v2830_v46  ;;  %v10977_v20 = vmul.f32 -1.442695, %v2858_v17  ;;  %v2956_v33 = vadd.f32 %v12239_v51, %v13881_v40 }
 0x40f   : > { %v2950_v43 = vpop.f32.mrf.mxu1  ;;  %v2628_v62 = vadd.f32 %v14221_v44, %v13885_v42  ;;  %v2638_v44 = vadd.f32 %v14226_v48, %v13885_v42 }
 0x410   : > { %13061 = vpow2.f32 %v10973_v21  ;;  %v2951_v36 = vadd.f32 %v2950_v43, %v13881_v40 }
 0x411   : > { %13063 = vpow2.f32 %v10976_v29  ;;  %v12242_v30 = vpop.f32.mrf.mxu1 }
 0x412   : > { %v2966_v18 = vadd.f32 %v12242_v30, %v13881_v40 }
 0x413   : > { %v2960_v47 = vpop.f32.mrf.mxu1 }
 0x414   : > { %v2961_v26 = vadd.f32 %v2960_v47, %v13881_v40  ;;  %v11033_v47 = vld [vmem:[%s13706_s8 + $0xb8] sm:$0xff] }
 0x417   : > { %v13056_v60 = vpop.eup %13055 }
 0x418   : > { %v2845_v63 = vadd.f32 1.0, %v13056_v60 }
 0x419   : > { %v13058_v39 = vpop.eup %13057 }
 0x41a   : > { %13065 = vrcp.f32 %v2845_v63  ;;  %v2844_v22 = vadd.f32 1.0, %v13058_v39 }
 0x41b   : > { %v13060_v16 = vpop.eup %13059  ;;  %13067 = vpow2.f32 %v10975_v61 }
 0x41c   : > { %13069 = vrcp.f32 %v2844_v22  ;;  %v2847_v41 = vadd.f32 1.0, %v13060_v16 }
 0x41d   : > { %v13062_v25 = vpop.eup %13061  ;;  %13071 = vpow2.f32 %v10978_v15 }
 0x41e   : > { %13073 = vrcp.f32 %v2847_v41  ;;  %v2846_v49 = vadd.f32 1.0, %v13062_v25  ;;  %v13064_v32 = vpop.eup %13063 }
 0x41f   : > { %13075 = vpow2.f32 %v10977_v20  ;;  %v2873_v38 = vadd.f32 1.0, %v13064_v32 }
 0x420   : > { %13077 = vrcp.f32 %v2846_v49 }
 0x427   : > { %v13066_v45 = vpop.eup %13065 }
 0x428   : > { %v13068_v54 = vpop.eup %13067  ;;  %v2970_v35 = vmul.f32 %v13066_v45, %v2956_v33 }
 0x429   : > { %v13070_v37 = vpop.eup %13069  ;;  %v2872_v52 = vadd.f32 1.0, %v13068_v54 }
 0x42a   : > { %v13072_v19 = vpop.eup %13071  ;;  %v2974_v46 = vadd.f32 %v2970_v35, %v2633_v34  ;;  %v2969_v21 = vmul.f32 %v13070_v37, %v2951_v36  ;;  %v11030_v36 = vld [vmem:[%s13706_s8 + $0xa0] sm:$0xff]  ;;  %v11031_v37 = vld [vmem:[%s13706_s8 + $0xa8] sm:$0xff] }
 0x42b   : > { %v13074_v0 = vpop.eup %13073  ;;  %v2875_v29 = vadd.f32 1.0, %v13072_v19  ;;  %v12247_v19 = vpop.f32.mrf.mxu0 }
 0x42c   : > { %v13076_v23 = vpop.eup %13075  ;;  %13079 = vtanh.f32 %v2974_v46  ;;  %v2973_v55 = vadd.f32 %v2969_v21, %v2628_v62  ;;  %v2972_v56 = vmul.f32 %v13074_v0, %v2966_v18  ;;  %v12255_v18 = vpop.f32.mrf.mxu1 }
 0x42d   : > { %v13078_v14 = vpop.eup %13077  ;;  %13081 = vrcp.f32 %v2873_v38  ;;  %v2874_v61 = vadd.f32 1.0, %v13076_v23  ;;  %v11032_v38 = vld [vmem:[%s13706_s8 + $0xb0] sm:$0xff]  ;;  %v3089_v62 = vpop.f32.mrf.mxu0 }
 0x42e   : > { %13083 = vtanh.f32 %v2973_v55  ;;  %v2976_v28 = vadd.f32 %v2972_v56, %v2643_v50  ;;  %v2971_v60 = vmul.f32 %v13078_v14, %v2961_v26  ;;  %v3174_v50 = vpop.f32.mrf.mxu1  ;;  %v3095_v56 = vadd.f32 %v12247_v19, %v13857_v31 }
 0x42f   : > { %13085 = vrcp.f32 %v2872_v52  ;;  %v12250_v46 = vpop.f32.mrf.mxu0 }
 0x430   : > { %13087 = vtanh.f32 %v2976_v28  ;;  %v2975_v24 = vadd.f32 %v2971_v60, %v2638_v44  ;;  %v12258_v23 = vpop.f32.mrf.mxu1  ;;  %v3090_v44 = vadd.f32 %v3089_v62, %v13857_v31  ;;  %v3105_v28 = vadd.f32 %v12250_v46, %v13857_v31 }
 0x431   : > { %13089 = vrcp.f32 %v2875_v29  ;;  %v3099_v21 = vpop.f32.mrf.mxu0 }
 0x432   : > { %13091 = vtanh.f32 %v2975_v24  ;;  %v3184_v26 = vpop.f32.mrf.mxu1 }
 0x433   : > { %13093 = vrcp.f32 %v2874_v61  ;;  %v14335_v0 = vpop.f32.mrf.mxu0 }
 0x435   : > { %v14337_v52 = vpop.f32.mrf.mxu0 }
 0x437   : > { %v14339_v55 = vpop.f32.mrf.mxu0 }
 0x439   : > { %v13080_v17 = vpop.eup %13079  ;;  %v14342_v14 = vpop.f32.mrf.mxu0 }
 0x43a   : > { %v13082_v63 = vpop.eup %13081  ;;  %v2982_v39 = vsub.f32 %v14153_v27, %v13080_v17 }
 0x43b   : > { %v13084_v15 = vpop.eup %13083 }
 0x43c   : > { %v13086_v22 = vpop.eup %13085  ;;  %v2986_v16 = vmul.f32 %v13082_v63, %v2982_v39  ;;  %v2981_v48 = vsub.f32 %v14147_v57, %v13084_v15 }
 0x43d   : > { %v13088_v20 = vpop.eup %13087 }
 0x43e   : > { %v13090_v41 = vpop.eup %13089  ;;  %v2990_v25 = vadd.f32 %v13080_v17, %v2986_v16  ;;  %v2985_v51 = vmul.f32 %v13086_v22, %v2981_v48  ;;  %v2984_v49 = vsub.f32 %v14171_v59, %v13088_v20 }
 0x43f   : > { %v13092_v43 = vpop.eup %13091 }
 0x440   : > { %2994 = vst.msk [vmem:[#allocation2 + $0x8] sm:$0xff] %vm744_vm3, %v2990_v25  ;;  %10984 = vst.msk [vmem:[%s13712_s13 + $0x68] sm:$0xff] %vm744_vm3, %v2990_v25  ;;  %v2989_v27 = vadd.f32 %v13084_v15, %v2985_v51  ;;  %v2988_v30 = vmul.f32 %v13090_v41, %v2984_v49  ;;  %v2983_v32 = vsub.f32 %v14162_v58, %v13092_v43  ;;  %v13094_v33 = vpop.eup %13093 }
 0x441   : > { %v3100_v15 = vadd.f32 %v3099_v21, %v13857_v31  ;;  %v3180_v49 = vadd.f32 %v12255_v18, %v13871_v53 }
 0x442   : > { %2993 = vst.msk [vmem:[#allocation2] sm:$0xff] %vm744_vm3, %v2989_v27  ;;  %10983 = vst.msk [vmem:[%s13712_s13 + $0x60] sm:$0xff] %vm744_vm3, %v2989_v27  ;;  %v2992_v57 = vadd.f32 %v13088_v20, %v2988_v30  ;;  %v2987_v45 = vmul.f32 %v13094_v33, %v2983_v32  ;;  %v3175_v27 = vadd.f32 %v3174_v50, %v13871_v53 }
 0x443   : > { %v3190_v32 = vadd.f32 %v12258_v23, %v13871_v53 }
 0x444   : > { %2996 = vst.msk [vmem:[#allocation2 + $0x18] sm:$0xff] %vm744_vm3, %v2992_v57  ;;  %10986 = vst.msk [vmem:[%s13712_s13 + $0x78] sm:$0xff] %vm744_vm3, %v2992_v57  ;;  %v2991_v59 = vadd.f32 %v13092_v43, %v2987_v45  ;;  %v3185_v45 = vadd.f32 %v3184_v26, %v13871_v53 }
 0x446   : > { %2995 = vst.msk [vmem:[#allocation2 + $0x10] sm:$0xff] %vm744_vm3, %v2991_v59  ;;  %10985 = vst.msk [vmem:[%s13712_s13 + $0x70] sm:$0xff] %vm744_vm3, %v2991_v59 }
 0x447   : > { %v14269_v58 = vld [vmem:[#allocation2 + $0x8] sm:$0xff] }
 0x449   : > { %v14263_v54 = vld [vmem:[#allocation2] sm:$0xff] }
 0x44a   : > { %12271 = vmatprep.mubr.msk.f32.mxu1 %vm744_vm3, %v14263_v54  ;;  %12281 = vmatprep.mubr.msk.f32.mxu0 %vm744_vm3, %v14263_v54 }
 0x44b   : > { %12272 = vmatmul.mubr.msk.f32.vlgmr.msra.gmra.mxu1 %vm744_vm3, %v14269_v58  ;;  %12282 = vmatmul.mubr.msk.f32.vlgmr.msra.gmra.mxu0 %vm744_vm3, %v14269_v58  ;;  %v14287_v35 = vld [vmem:[#allocation2 + $0x18] sm:$0xff] }
 0x44c   : > { %12288 = vmatpush3.msra.mxu1 %v13737_v12  ;;  %12298 = vmatpush3.msk.msra.mxu0 %vm467_vm1, %v13715_v1 }
 0x44d   : > { %v14278_v34 = vld [vmem:[#allocation2 + $0x10] sm:$0xff]  ;;  %12289 = vmatprep.subr.mxu1 %v13735_v11  ;;  %12313 = vmatprep.subr.msk.mxu0 %vm467_vm1, %v13719_v3 }
 0x44e   : > { %12274 = vmatprep.mubr.msk.f32.mxu1 %vm744_vm3, %v14278_v34  ;;  %12284 = vmatprep.mubr.msk.f32.mxu0 %vm744_vm3, %v14278_v34 }
 0x44f   : > { %12275 = vmatmul.mubr.msk.f32.gmra.mxu1 %vm744_vm3, %v14287_v35  ;;  %12285 = vmatmul.mubr.msk.f32.gmra.mxu0 %vm744_vm3, %v14287_v35 }
 0x450   : > { %12291 = vmatprep.mubr.msk.f32.mxu1 %vm744_vm3, %v14263_v54  ;;  %12290 = vmatpush3.msra.mxu1 %v13735_v11 }
 0x451   : > { %12305 = vmatprep.subr.msk.mxu1 %vm467_vm1, %v13717_v2  ;;  %12299 = vmatprep.mubr.msk.f32.mxu0 %vm454_vm2, %v11030_v36 }
 0x453   : > { %12292 = vmatmul.mubr.msk.f32.vlgmr.msra.gmra.mxu1 %vm744_vm3, %v14269_v58  ;;  %12300 = vmatmul.mubr.msk.f32.vlgmr.msra.gmra.mxu0 %vm454_vm2, %v11031_v37 }
 0x454   : > { %12294 = vmatprep.mubr.msk.f32.mxu1 %vm744_vm3, %v14278_v34  ;;  %12306 = vmatpush3.msk.msra.mxu1 %vm467_vm1, %v13717_v2 }
 0x455   : > { %12321 = vmatprep.subr.mxu1 %v13729_v8  ;;  %12314 = vmatpush3.msk.msra.mxu0 %vm467_vm1, %v13719_v3 }
 0x456   : > { %12331 = vmatprep.subr.mxu0 %v13733_v10  ;;  %12302 = vmatprep.mubr.msk.f32.mxu0 %vm454_vm2, %v11032_v38 }
 0x457   : > { %12295 = vmatmul.mubr.msk.f32.gmra.mxu1 %vm744_vm3, %v14287_v35  ;;  %12303 = vmatmul.mubr.msk.f32.gmra.mxu0 %vm454_vm2, %v11033_v47 }
 0x458   : > { %12307 = vmatprep.mubr.msk.f32.mxu1 %vm454_vm2, %v11030_v36  ;;  %12315 = vmatprep.mubr.msk.f32.mxu0 %vm454_vm2, %v11030_v36 }
 0x45b   : > { %12308 = vmatmul.mubr.msk.f32.vlgmr.msra.gmra.mxu1 %vm454_vm2, %v11031_v37  ;;  %12316 = vmatmul.mubr.msk.f32.vlgmr.msra.gmra.mxu0 %vm454_vm2, %v11031_v37 }
 0x45c   : > { %12322 = vmatpush3.msra.mxu1 %v13729_v8  ;;  %12310 = vmatprep.mubr.msk.f32.mxu1 %vm454_vm2, %v11032_v38 }
 0x45d   : > { %12323 = vmatprep.subr.mxu1 %v13727_v7  ;;  %12318 = vmatprep.mubr.msk.f32.mxu0 %vm454_vm2, %v11032_v38 }
 0x45e   : > { %12324 = vmatpush3.msra.mxu1 %v13727_v7  ;;  %12332 = vmatpush3.msra.mxu0 %v13733_v10 }
 0x45f   : > { %12311 = vmatmul.mubr.msk.f32.gmra.mxu1 %vm454_vm2, %v11033_v47  ;;  %12341 = vmatprep.subr.mxu1 %v13737_v12 }
 0x460   : > { %12333 = vmatprep.subr.mxu0 %v13731_v9  ;;  %12319 = vmatmul.mubr.msk.f32.gmra.mxu0 %vm454_vm2, %v11033_v47 }
 0x461   : > { %12334 = vmatpush3.msra.mxu0 %v13731_v9 }
 0x462   : > { %12351 = vmatprep.subr.msk.mxu0 %vm467_vm1, %v13715_v1 }
 0x50b   : > { %v12273_v29 = vpop.f32.mrf.mxu1  ;;  %v12283_v17 = vpop.f32.mrf.mxu0 }
 0x50c   : > { %v3461_v60 = vadd.f32 %v12273_v29, %v3095_v56  ;;  %v3489_v30 = vadd.f32 %v12283_v17, %v3180_v49 }
 0x50d   : > { %v3356_v61 = vpop.f32.mrf.mxu1  ;;  %v3441_v20 = vpop.f32.mrf.mxu0 }
 0x50e   : > { %v11015_v24 = vmul.f32 -1.442695, %v3461_v60  ;;  %v3460_v63 = vadd.f32 %v3356_v61, %v3090_v44  ;;  %v3488_v33 = vadd.f32 %v3441_v20, %v3175_v27  ;;  %v11019_v59 = vmul.f32 -1.442695, %v3489_v30 }
 0x50f   : > { %v12276_v39 = vpop.f32.mrf.mxu1  ;;  %v12286_v43 = vpop.f32.mrf.mxu0  ;;  %v3275_v27 = vadd.f32 %v14339_v55, %v13885_v42 }
 0x510   : > { %13095 = vpow2.f32 %v11015_v24  ;;  %v11014_v22 = vmul.f32 -1.442695, %v3460_v63  ;;  %v3463_v16 = vadd.f32 %v12276_v39, %v3105_v28  ;;  %v3491_v36 = vadd.f32 %v12286_v43, %v3190_v32 }
 0x511   : > { %v3366_v48 = vpop.f32.mrf.mxu1  ;;  %v3451_v57 = vpop.f32.mrf.mxu0  ;;  %v11018_v38 = vmul.f32 -1.442695, %v3488_v33  ;;  %v3265_v63 = vadd.f32 %v14335_v0, %v13885_v42 }
 0x512   : > { %13097 = vpow2.f32 %v11014_v22  ;;  %v11017_v41 = vmul.f32 -1.442695, %v3463_v16  ;;  %v3462_v25 = vadd.f32 %v3366_v48, %v3100_v15  ;;  %v3490_v47 = vadd.f32 %v3451_v57, %v3185_v45 }
 0x513   : > { %v11021_v46 = vmul.f32 -1.442695, %v3491_v36  ;;  %v12293_v29 = vpop.f32.mrf.mxu1 }
 0x514   : > { %13099 = vpow2.f32 %v11017_v41  ;;  %v11016_v51 = vmul.f32 -1.442695, %v3462_v25  ;;  %v11020_v50 = vmul.f32 -1.442695, %v3490_v47  ;;  %v3588_v61 = vadd.f32 %v12293_v29, %v13881_v40 }
 0x515   : > { %v3582_v44 = vpop.f32.mrf.mxu1  ;;  %v3260_v41 = vadd.f32 %v14337_v52, %v13885_v42  ;;  %v3270_v52 = vadd.f32 %v14342_v14, %v13885_v42 }
 0x516   : > { %13101 = vpow2.f32 %v11016_v51  ;;  %v3583_v15 = vadd.f32 %v3582_v44, %v13881_v40 }
 0x517   : > { %13103 = vpow2.f32 %v11019_v59  ;;  %v12296_v28 = vpop.f32.mrf.mxu1 }
 0x518   : > { %v3598_v49 = vadd.f32 %v12296_v28, %v13881_v40 }
 0x519   : > { %v3592_v48 = vpop.f32.mrf.mxu1 }
 0x51a   : > { %v3593_v57 = vadd.f32 %v3592_v48, %v13881_v40  ;;  %v11076_v48 = vld [vmem:[%s13706_s8 + $0xd8] sm:$0xff] }
 0x51d   : > { %v13096_v37 = vpop.eup %13095 }
 0x51e   : > { %v3477_v19 = vadd.f32 1.0, %v13096_v37 }
 0x51f   : > { %v13098_v62 = vpop.eup %13097 }
 0x520   : > { %13105 = vrcp.f32 %v3477_v19  ;;  %v3476_v21 = vadd.f32 1.0, %v13098_v62 }
 0x521   : > { %v13100_v18 = vpop.eup %13099  ;;  %13107 = vpow2.f32 %v11018_v38 }
 0x522   : > { %13109 = vrcp.f32 %v3476_v21  ;;  %v3479_v23 = vadd.f32 1.0, %v13100_v18 }
 0x523   : > { %v13102_v56 = vpop.eup %13101  ;;  %13111 = vpow2.f32 %v11021_v46 }
 0x524   : > { %13113 = vrcp.f32 %v3479_v23  ;;  %v3478_v26 = vadd.f32 1.0, %v13102_v56  ;;  %v13104_v60 = vpop.eup %13103 }
 0x525   : > { %13115 = vpow2.f32 %v11020_v50  ;;  %v3505_v16 = vadd.f32 1.0, %v13104_v60 }
 0x526   : > { %13117 = vrcp.f32 %v3478_v26 }
 0x52d   : > { %v13106_v24 = vpop.eup %13105 }
 0x52e   : > { %v13108_v17 = vpop.eup %13107  ;;  %v3602_v39 = vmul.f32 %v13106_v24, %v3588_v61 }
 0x52f   : > { %v13110_v22 = vpop.eup %13109  ;;  %v3504_v30 = vadd.f32 1.0, %v13108_v17 }
 0x530   : > { %v13112_v20 = vpop.eup %13111  ;;  %v3606_v25 = vadd.f32 %v3602_v39, %v3265_v63  ;;  %v3601_v51 = vmul.f32 %v13110_v22, %v3583_v15  ;;  %v11073_v15 = vld [vmem:[%s13706_s8 + $0xc0] sm:$0xff]  ;;  %v11074_v22 = vld [vmem:[%s13706_s8 + $0xc8] sm:$0xff] }
 0x531   : > { %v13114_v43 = vpop.eup %13113  ;;  %v3507_v59 = vadd.f32 1.0, %v13112_v20  ;;  %v12301_v20 = vpop.f32.mrf.mxu0 }
 0x532   : > { %v13116_v0 = vpop.eup %13115  ;;  %13119 = vtanh.f32 %v3606_v25  ;;  %v3605_v32 = vadd.f32 %v3601_v51, %v3260_v41  ;;  %v3604_v33 = vmul.f32 %v13114_v43, %v3598_v49  ;;  %v12309_v49 = vpop.f32.mrf.mxu1 }
 0x533   : > { %v13118_v45 = vpop.eup %13117  ;;  %13121 = vrcp.f32 %v3505_v16  ;;  %v3506_v38 = vadd.f32 1.0, %v13116_v0  ;;  %v11075_v16 = vld [vmem:[%s13706_s8 + $0xd0] sm:$0xff]  ;;  %v3721_v41 = vpop.f32.mrf.mxu0 }
 0x534   : > { %13123 = vtanh.f32 %v3605_v32  ;;  %v3608_v36 = vadd.f32 %v3604_v33, %v3275_v27  ;;  %v3603_v37 = vmul.f32 %v13118_v45, %v3593_v57  ;;  %v3806_v27 = vpop.f32.mrf.mxu1  ;;  %v3727_v33 = vadd.f32 %v12301_v20, %v13857_v31 }
 0x535   : > { %13125 = vrcp.f32 %v3504_v30  ;;  %v12304_v25 = vpop.f32.mrf.mxu0 }
 0x536   : > { %13127 = vtanh.f32 %v3608_v36  ;;  %v3607_v55 = vadd.f32 %v3603_v37, %v3270_v52  ;;  %v12312_v0 = vpop.f32.mrf.mxu1  ;;  %v3722_v52 = vadd.f32 %v3721_v41, %v13857_v31  ;;  %v3737_v36 = vadd.f32 %v12304_v25, %v13857_v31 }
 0x537   : > { %13129 = vrcp.f32 %v3507_v59  ;;  %v3731_v51 = vpop.f32.mrf.mxu0 }
 0x538   : > { %13131 = vtanh.f32 %v3607_v55  ;;  %v3816_v57 = vpop.f32.mrf.mxu1 }
 0x539   : > { %13133 = vrcp.f32 %v3506_v38  ;;  %v14451_v43 = vpop.f32.mrf.mxu0 }
 0x53b   : > { %v14453_v30 = vpop.f32.mrf.mxu0 }
 0x53d   : > { %v14455_v32 = vpop.f32.mrf.mxu0 }
 0x53f   : > { %v13120_v47 = vpop.eup %13119  ;;  %v14458_v45 = vpop.f32.mrf.mxu0 }
 0x540   : > { %v13122_v19 = vpop.eup %13121  ;;  %v3614_v62 = vsub.f32 %v14269_v58, %v13120_v47 }
 0x541   : > { %v13124_v46 = vpop.eup %13123 }
 0x542   : > { %v13126_v21 = vpop.eup %13125  ;;  %v3618_v18 = vmul.f32 %v13122_v19, %v3614_v62  ;;  %v3613_v14 = vsub.f32 %v14263_v54, %v13124_v46 }
 0x543   : > { %v13128_v50 = vpop.eup %13127 }
 0x544   : > { %v13130_v23 = vpop.eup %13129  ;;  %v3622_v56 = vadd.f32 %v13120_v47, %v3618_v18  ;;  %v3617_v29 = vmul.f32 %v13126_v21, %v3613_v14  ;;  %v3616_v26 = vsub.f32 %v14287_v35, %v13128_v50 }
 0x545   : > { %v13132_v44 = vpop.eup %13131 }
 0x546   : > { %3626 = vst.msk [vmem:[#allocation2 + $0x8] sm:$0xff] %vm744_vm3, %v3622_v56  ;;  %11027 = vst.msk [vmem:[%s13712_s13 + $0x88] sm:$0xff] %vm744_vm3, %v3622_v56  ;;  %v3621_v58 = vadd.f32 %v13124_v46, %v3617_v29  ;;  %v3620_v28 = vmul.f32 %v13130_v23, %v3616_v26  ;;  %v3615_v60 = vsub.f32 %v14278_v34, %v13132_v44  ;;  %v13134_v61 = vpop.eup %13133 }
 0x547   : > { %v3732_v46 = vadd.f32 %v3731_v51, %v13857_v31  ;;  %v3812_v26 = vadd.f32 %v12309_v49, %v13871_v53 }
 0x548   : > { %3625 = vst.msk [vmem:[#allocation2] sm:$0xff] %vm744_vm3, %v3621_v58  ;;  %11026 = vst.msk [vmem:[%s13712_s13 + $0x80] sm:$0xff] %vm744_vm3, %v3621_v58  ;;  %v3624_v54 = vadd.f32 %v13128_v50, %v3620_v28  ;;  %v3619_v24 = vmul.f32 %v13134_v61, %v3615_v60  ;;  %v3807_v58 = vadd.f32 %v3806_v27, %v13871_v53 }
 0x549   : > { %v3822_v60 = vadd.f32 %v12312_v0, %v13871_v53 }
 0x54a   : > { %3628 = vst.msk [vmem:[#allocation2 + $0x18] sm:$0xff] %vm744_vm3, %v3624_v54  ;;  %11029 = vst.msk [vmem:[%s13712_s13 + $0x98] sm:$0xff] %vm744_vm3, %v3624_v54  ;;  %v3623_v35 = vadd.f32 %v13132_v44, %v3619_v24  ;;  %v3817_v24 = vadd.f32 %v3816_v57, %v13871_v53 }
 0x54c   : > { %3627 = vst.msk [vmem:[#allocation2 + $0x10] sm:$0xff] %vm744_vm3, %v3623_v35  ;;  %11028 = vst.msk [vmem:[%s13712_s13 + $0x90] sm:$0xff] %vm744_vm3, %v3623_v35 }
 0x54d   : > { %v14385_v34 = vld [vmem:[#allocation2 + $0x8] sm:$0xff] }
 0x54f   : > { %v14379_v17 = vld [vmem:[#allocation2] sm:$0xff] }
 0x550   : > { %12325 = vmatprep.mubr.msk.f32.mxu1 %vm744_vm3, %v14379_v17  ;;  %12335 = vmatprep.mubr.msk.f32.mxu0 %vm744_vm3, %v14379_v17 }
 0x551   : > { %12326 = vmatmul.mubr.msk.f32.vlgmr.msra.gmra.mxu1 %vm744_vm3, %v14385_v34  ;;  %12336 = vmatmul.mubr.msk.f32.vlgmr.msra.gmra.mxu0 %vm744_vm3, %v14385_v34  ;;  %v14403_v39 = vld [vmem:[#allocation2 + $0x18] sm:$0xff] }
 0x552   : > { %12342 = vmatpush3.msra.mxu1 %v13737_v12  ;;  %12352 = vmatpush3.msk.msra.mxu0 %vm467_vm1, %v13715_v1 }
 0x553   : > { %v14394_v63 = vld [vmem:[#allocation2 + $0x10] sm:$0xff]  ;;  %12343 = vmatprep.subr.mxu1 %v13735_v11  ;;  %12367 = vmatprep.subr.msk.mxu0 %vm467_vm1, %v13719_v3 }
 0x554   : > { %12328 = vmatprep.mubr.msk.f32.mxu1 %vm744_vm3, %v14394_v63  ;;  %12338 = vmatprep.mubr.msk.f32.mxu0 %vm744_vm3, %v14394_v63 }
 0x555   : > { %12329 = vmatmul.mubr.msk.f32.gmra.mxu1 %vm744_vm3, %v14403_v39  ;;  %12339 = vmatmul.mubr.msk.f32.gmra.mxu0 %vm744_vm3, %v14403_v39 }
 0x556   : > { %12345 = vmatprep.mubr.msk.f32.mxu1 %vm744_vm3, %v14379_v17  ;;  %12344 = vmatpush3.msra.mxu1 %v13735_v11 }
 0x557   : > { %12359 = vmatprep.subr.msk.mxu1 %vm467_vm1, %v13717_v2  ;;  %12353 = vmatprep.mubr.msk.f32.mxu0 %vm454_vm2, %v11073_v15 }
 0x559   : > { %12346 = vmatmul.mubr.msk.f32.vlgmr.msra.gmra.mxu1 %vm744_vm3, %v14385_v34  ;;  %12354 = vmatmul.mubr.msk.f32.vlgmr.msra.gmra.mxu0 %vm454_vm2, %v11074_v22 }
 0x55a   : > { %12348 = vmatprep.mubr.msk.f32.mxu1 %vm744_vm3, %v14394_v63  ;;  %12360 = vmatpush3.msk.msra.mxu1 %vm467_vm1, %v13717_v2 }
 0x55b   : > { %12375 = vmatprep.subr.mxu1 %v13729_v8  ;;  %12368 = vmatpush3.msk.msra.mxu0 %vm467_vm1, %v13719_v3 }
 0x55c   : > { %12385 = vmatprep.subr.mxu0 %v13733_v10  ;;  %12356 = vmatprep.mubr.msk.f32.mxu0 %vm454_vm2, %v11075_v16 }
 0x55d   : > { %12349 = vmatmul.mubr.msk.f32.gmra.mxu1 %vm744_vm3, %v14403_v39  ;;  %12357 = vmatmul.mubr.msk.f32.gmra.mxu0 %vm454_vm2, %v11076_v48 }
 0x55e   : > { %12361 = vmatprep.mubr.msk.f32.mxu1 %vm454_vm2, %v11073_v15  ;;  %12369 = vmatprep.mubr.msk.f32.mxu0 %vm454_vm2, %v11073_v15 }
 0x561   : > { %12362 = vmatmul.mubr.msk.f32.vlgmr.msra.gmra.mxu1 %vm454_vm2, %v11074_v22  ;;  %12370 = vmatmul.mubr.msk.f32.vlgmr.msra.gmra.mxu0 %vm454_vm2, %v11074_v22 }
 0x562   : > { %12376 = vmatpush3.msra.mxu1 %v13729_v8  ;;  %12364 = vmatprep.mubr.msk.f32.mxu1 %vm454_vm2, %v11075_v16 }
 0x563   : > { %12377 = vmatprep.subr.mxu1 %v13727_v7  ;;  %12372 = vmatprep.mubr.msk.f32.mxu0 %vm454_vm2, %v11075_v16 }
 0x564   : > { %12378 = vmatpush3.msra.mxu1 %v13727_v7  ;;  %12386 = vmatpush3.msra.mxu0 %v13733_v10 }
 0x565   : > { %12365 = vmatmul.mubr.msk.f32.gmra.mxu1 %vm454_vm2, %v11076_v48  ;;  %12395 = vmatprep.subr.mxu1 %v13737_v12 }
 0x566   : > { %12387 = vmatprep.subr.mxu0 %v13731_v9  ;;  %12373 = vmatmul.mubr.msk.f32.gmra.mxu0 %vm454_vm2, %v11076_v48 }
 0x567   : > { %12388 = vmatpush3.msra.mxu0 %v13731_v9 }
 0x568   : > { %12405 = vmatprep.subr.msk.mxu0 %vm467_vm1, %v13715_v1 }
 0x611   : > { %v12327_v59 = vpop.f32.mrf.mxu1  ;;  %v12337_v47 = vpop.f32.mrf.mxu0 }
 0x612   : > { %v4093_v37 = vadd.f32 %v12327_v59, %v3727_v33  ;;  %v4121_v28 = vadd.f32 %v12337_v47, %v3812_v26 }
 0x613   : > { %v3988_v38 = vpop.f32.mrf.mxu1  ;;  %v4073_v50 = vpop.f32.mrf.mxu0 }
 0x614   : > { %v11058_v55 = vmul.f32 -1.442695, %v4093_v37  ;;  %v4092_v19 = vadd.f32 %v3988_v38, %v3722_v52  ;;  %v4120_v61 = vadd.f32 %v4073_v50, %v3807_v58  ;;  %v11062_v35 = vmul.f32 -1.442695, %v4121_v28 }
 0x615   : > { %v12330_v62 = vpop.f32.mrf.mxu1  ;;  %v12340_v44 = vpop.f32.mrf.mxu0  ;;  %v3907_v58 = vadd.f32 %v14455_v32, %v13885_v42 }
 0x616   : > { %13135 = vpow2.f32 %v11058_v55  ;;  %v11057_v21 = vmul.f32 -1.442695, %v4092_v19  ;;  %v4095_v18 = vadd.f32 %v12330_v62, %v3737_v36  ;;  %v4123_v15 = vadd.f32 %v12340_v44, %v3822_v60 }
 0x617   : > { %v3998_v14 = vpop.f32.mrf.mxu1  ;;  %v4083_v54 = vpop.f32.mrf.mxu0  ;;  %v11061_v16 = vmul.f32 -1.442695, %v4120_v61  ;;  %v3897_v19 = vadd.f32 %v14451_v43, %v13885_v42 }
 0x618   : > { %13137 = vpow2.f32 %v11057_v21  ;;  %v11060_v23 = vmul.f32 -1.442695, %v4095_v18  ;;  %v4094_v56 = vadd.f32 %v3998_v14, %v3732_v46  ;;  %v4122_v48 = vadd.f32 %v4083_v54, %v3817_v24 }
 0x619   : > { %v11064_v25 = vmul.f32 -1.442695, %v4123_v15  ;;  %v12347_v59 = vpop.f32.mrf.mxu1 }
 0x61a   : > { %13139 = vpow2.f32 %v11060_v23  ;;  %v11059_v29 = vmul.f32 -1.442695, %v4094_v56  ;;  %v11063_v27 = vmul.f32 -1.442695, %v4122_v48  ;;  %v4220_v38 = vadd.f32 %v12347_v59, %v13881_v40 }
 0x61b   : > { %v4214_v52 = vpop.f32.mrf.mxu1  ;;  %v3892_v23 = vadd.f32 %v14453_v30, %v13885_v42  ;;  %v3902_v30 = vadd.f32 %v14458_v45, %v13885_v42 }
 0x61c   : > { %13141 = vpow2.f32 %v11059_v29  ;;  %v4215_v46 = vadd.f32 %v4214_v52, %v13881_v40 }
 0x61d   : > { %13143 = vpow2.f32 %v11062_v35  ;;  %v12350_v36 = vpop.f32.mrf.mxu1 }
 0x61e   : > { %v4230_v26 = vadd.f32 %v12350_v36, %v13881_v40 }
 0x61f   : > { %v4224_v14 = vpop.f32.mrf.mxu1 }
 0x620   : > { %v4225_v54 = vadd.f32 %v4224_v14, %v13881_v40  ;;  %v11119_v14 = vld [vmem:[%s13706_s8 + $0xf8] sm:$0xff] }
 0x623   : > { %v13136_v22 = vpop.eup %13135 }
 0x624   : > { %v4109_v20 = vadd.f32 1.0, %v13136_v22 }
 0x625   : > { %v13138_v41 = vpop.eup %13137 }
 0x626   : > { %13145 = vrcp.f32 %v4109_v20  ;;  %v4108_v51 = vadd.f32 1.0, %v13138_v41 }
 0x627   : > { %v13140_v49 = vpop.eup %13139  ;;  %13147 = vpow2.f32 %v11061_v16 }
 0x628   : > { %13149 = vrcp.f32 %v4108_v51  ;;  %v4111_v0 = vadd.f32 1.0, %v13140_v49 }
 0x629   : > { %v13142_v33 = vpop.eup %13141  ;;  %13151 = vpow2.f32 %v11064_v25 }
 0x62a   : > { %13153 = vrcp.f32 %v4111_v0  ;;  %v4110_v57 = vadd.f32 1.0, %v13142_v33  ;;  %v13144_v37 = vpop.eup %13143 }
 0x62b   : > { %13155 = vpow2.f32 %v11063_v27  ;;  %v4137_v18 = vadd.f32 1.0, %v13144_v37 }
 0x62c   : > { %13157 = vrcp.f32 %v4110_v57 }
 0x633   : > { %v13146_v55 = vpop.eup %13145 }
 0x634   : > { %v13148_v47 = vpop.eup %13147  ;;  %v4234_v62 = vmul.f32 %v13146_v55, %v4220_v38 }
 0x635   : > { %v13150_v21 = vpop.eup %13149  ;;  %v4136_v28 = vadd.f32 1.0, %v13148_v47 }
 0x636   : > { %v13152_v50 = vpop.eup %13151  ;;  %v4238_v56 = vadd.f32 %v4234_v62, %v3897_v19  ;;  %v4233_v29 = vmul.f32 %v13150_v21, %v4215_v46  ;;  %v11116_v46 = vld [vmem:[%s13706_s8 + $0xe0] sm:$0xff]  ;;  %v11117_v21 = vld [vmem:[%s13706_s8 + $0xe8] sm:$0xff] }
 0x637   : > { %v13154_v44 = vpop.eup %13153  ;;  %v4139_v35 = vadd.f32 1.0, %v13152_v50  ;;  %v12355_v50 = vpop.f32.mrf.mxu0 }
 0x638   : > { %v13156_v43 = vpop.eup %13155  ;;  %13159 = vtanh.f32 %v4238_v56  ;;  %v4237_v60 = vadd.f32 %v4233_v29, %v3892_v23  ;;  %v4236_v61 = vmul.f32 %v13154_v44, %v4230_v26  ;;  %v12363_v26 = vpop.f32.mrf.mxu1 }
 0x639   : > { %v13158_v24 = vpop.eup %13157  ;;  %13161 = vrcp.f32 %v4137_v18  ;;  %v4138_v16 = vadd.f32 1.0, %v13156_v43  ;;  %v11118_v18 = vld [vmem:[%s13706_s8 + $0xf0] sm:$0xff]  ;;  %v4353_v23 = vpop.f32.mrf.mxu0 }
 0x63a   : > { %13163 = vtanh.f32 %v4237_v60  ;;  %v4240_v15 = vadd.f32 %v4236_v61, %v3907_v58  ;;  %v4235_v22 = vmul.f32 %v13158_v24, %v4225_v54  ;;  %v4438_v58 = vpop.f32.mrf.mxu1  ;;  %v4359_v61 = vadd.f32 %v12355_v50, %v13857_v31 }
 0x63b   : > { %13165 = vrcp.f32 %v4136_v28  ;;  %v12358_v56 = vpop.f32.mrf.mxu0 }
 0x63c   : > { %13167 = vtanh.f32 %v4240_v15  ;;  %v4239_v32 = vadd.f32 %v4235_v22, %v3902_v30  ;;  %v12366_v43 = vpop.f32.mrf.mxu1  ;;  %v4354_v30 = vadd.f32 %v4353_v23, %v13857_v31  ;;  %v4369_v15 = vadd.f32 %v12358_v56, %v13857_v31 }
 0x63d   : > { %13169 = vrcp.f32 %v4139_v35  ;;  %v4363_v29 = vpop.f32.mrf.mxu0 }
 0x63e   : > { %13171 = vtanh.f32 %v4239_v32  ;;  %v4448_v54 = vpop.f32.mrf.mxu1 }
 0x63f   : > { %13173 = vrcp.f32 %v4138_v16  ;;  %v14565_v44 = vpop.f32.mrf.mxu0 }
 0x641   : > { %v14567_v28 = vpop.f32.mrf.mxu0 }
 0x643   : > { %v14569_v60 = vpop.f32.mrf.mxu0 }
 0x645   : > { %v13160_v48 = vpop.eup %13159  ;;  %v14572_v24 = vpop.f32.mrf.mxu0 }
 0x646   : > { %v13162_v20 = vpop.eup %13161  ;;  %v4246_v41 = vsub.f32 %v14385_v34, %v13160_v48 }
 0x647   : > { %v13164_v25 = vpop.eup %13163 }
 0x648   : > { %v13166_v51 = vpop.eup %13165  ;;  %v4250_v49 = vmul.f32 %v13162_v20, %v4246_v41  ;;  %v4245_v45 = vsub.f32 %v14379_v17, %v13164_v25 }
 0x649   : > { %v13168_v27 = vpop.eup %13167 }
 0x64a   : > { %v13170_v0 = vpop.eup %13169  ;;  %v4254_v33 = vadd.f32 %v13160_v48, %v4250_v49  ;;  %v4249_v59 = vmul.f32 %v13166_v51, %v4245_v45  ;;  %v4248_v57 = vsub.f32 %v14403_v39, %v13168_v27 }
 0x64b   : > { %v13172_v52 = vpop.eup %13171 }
 0x64c   : > { %4258 = vst.msk [vmem:[#allocation2 + $0x8] sm:$0xff] %vm744_vm3, %v4254_v33  ;;  %11070 = vst.msk [vmem:[%s13712_s13 + $0xa8] sm:$0xff] %vm744_vm3, %v4254_v33  ;;  %v4253_v34 = vadd.f32 %v13164_v25, %v4249_v59  ;;  %v4252_v36 = vmul.f32 %v13170_v0, %v4248_v57  ;;  %v4247_v37 = vsub.f32 %v14394_v63, %v13172_v52  ;;  %v13174_v38 = vpop.eup %13173 }
 0x64d   : > { %v4364_v25 = vadd.f32 %v4363_v29, %v13857_v31  ;;  %v4444_v57 = vadd.f32 %v12363_v26, %v13871_v53 }
 0x64e   : > { %4257 = vst.msk [vmem:[#allocation2] sm:$0xff] %vm744_vm3, %v4253_v34  ;;  %11069 = vst.msk [vmem:[%s13712_s13 + $0xa0] sm:$0xff] %vm744_vm3, %v4253_v34  ;;  %v4256_v17 = vadd.f32 %v13168_v27, %v4252_v36  ;;  %v4251_v55 = vmul.f32 %v13174_v38, %v4247_v37  ;;  %v4439_v34 = vadd.f32 %v4438_v58, %v13871_v53 }
 0x64f   : > { %v4454_v37 = vadd.f32 %v12366_v43, %v13871_v53 }
 0x650   : > { %4260 = vst.msk [vmem:[#allocation2 + $0x18] sm:$0xff] %vm744_vm3, %v4256_v17  ;;  %11072 = vst.msk [vmem:[%s13712_s13 + $0xb8] sm:$0xff] %vm744_vm3, %v4256_v17  ;;  %v4255_v39 = vadd.f32 %v13172_v52, %v4251_v55  ;;  %v4449_v55 = vadd.f32 %v4448_v54, %v13871_v53 }
 0x652   : > { %4259 = vst.msk [vmem:[#allocation2 + $0x10] sm:$0xff] %vm744_vm3, %v4255_v39  ;;  %11071 = vst.msk [vmem:[%s13712_s13 + $0xb0] sm:$0xff] %vm744_vm3, %v4255_v39 }
 0x653   : > { %v14501_v63 = vld [vmem:[#allocation2 + $0x8] sm:$0xff] }
 0x655   : > { %v14495_v47 = vld [vmem:[#allocation2] sm:$0xff] }
 0x656   : > { %12379 = vmatprep.mubr.msk.f32.mxu1 %vm744_vm3, %v14495_v47  ;;  %12389 = vmatprep.mubr.msk.f32.mxu0 %vm744_vm3, %v14495_v47 }
 0x657   : > { %12380 = vmatmul.mubr.msk.f32.vlgmr.msra.gmra.mxu1 %vm744_vm3, %v14501_v63  ;;  %12390 = vmatmul.mubr.msk.f32.vlgmr.msra.gmra.mxu0 %vm744_vm3, %v14501_v63  ;;  %v14519_v62 = vld [vmem:[#allocation2 + $0x18] sm:$0xff] }
 0x658   : > { %12396 = vmatpush3.msra.mxu1 %v13737_v12  ;;  %12406 = vmatpush3.msk.msra.mxu0 %vm467_vm1, %v13715_v1 }
 0x659   : > { %v14510_v19 = vld [vmem:[#allocation2 + $0x10] sm:$0xff]  ;;  %12397 = vmatprep.subr.mxu1 %v13735_v11  ;;  %12421 = vmatprep.subr.msk.mxu0 %vm467_vm1, %v13719_v3 }
 0x65a   : > { %12382 = vmatprep.mubr.msk.f32.mxu1 %vm744_vm3, %v14510_v19  ;;  %12392 = vmatprep.mubr.msk.f32.mxu0 %vm744_vm3, %v14510_v19 }
 0x65b   : > { %12383 = vmatmul.mubr.msk.f32.gmra.mxu1 %vm744_vm3, %v14519_v62  ;;  %12393 = vmatmul.mubr.msk.f32.gmra.mxu0 %vm744_vm3, %v14519_v62 }
 0x65c   : > { %12399 = vmatprep.mubr.msk.f32.mxu1 %vm744_vm3, %v14495_v47  ;;  %12398 = vmatpush3.msra.mxu1 %v13735_v11 }
 0x65d   : > { %12413 = vmatprep.subr.msk.mxu1 %vm467_vm1, %v13717_v2  ;;  %12407 = vmatprep.mubr.msk.f32.mxu0 %vm454_vm2, %v11116_v46 }
 0x65f   : > { %12400 = vmatmul.mubr.msk.f32.vlgmr.msra.gmra.mxu1 %vm744_vm3, %v14501_v63  ;;  %12408 = vmatmul.mubr.msk.f32.vlgmr.msra.gmra.mxu0 %vm454_vm2, %v11117_v21 }
 0x660   : > { %12402 = vmatprep.mubr.msk.f32.mxu1 %vm744_vm3, %v14510_v19  ;;  %12414 = vmatpush3.msk.msra.mxu1 %vm467_vm1, %v13717_v2 }
 0x661   : > { %12429 = vmatprep.subr.mxu1 %v13729_v8  ;;  %12422 = vmatpush3.msk.msra.mxu0 %vm467_vm1, %v13719_v3 }
 0x662   : > { %12439 = vmatprep.subr.mxu0 %v13733_v10  ;;  %12410 = vmatprep.mubr.msk.f32.mxu0 %vm454_vm2, %v11118_v18 }
 0x663   : > { %12403 = vmatmul.mubr.msk.f32.gmra.mxu1 %vm744_vm3, %v14519_v62  ;;  %12411 = vmatmul.mubr.msk.f32.gmra.mxu0 %vm454_vm2, %v11119_v14 }
 0x664   : > { %12415 = vmatprep.mubr.msk.f32.mxu1 %vm454_vm2, %v11116_v46  ;;  %12423 = vmatprep.mubr.msk.f32.mxu0 %vm454_vm2, %v11116_v46 }
 0x667   : > { %12416 = vmatmul.mubr.msk.f32.vlgmr.msra.gmra.mxu1 %vm454_vm2, %v11117_v21  ;;  %12424 = vmatmul.mubr.msk.f32.vlgmr.msra.gmra.mxu0 %vm454_vm2, %v11117_v21 }
 0x668   : > { %12430 = vmatpush3.msra.mxu1 %v13729_v8  ;;  %12418 = vmatprep.mubr.msk.f32.mxu1 %vm454_vm2, %v11118_v18 }
 0x669   : > { %12431 = vmatprep.subr.mxu1 %v13727_v7  ;;  %12426 = vmatprep.mubr.msk.f32.mxu0 %vm454_vm2, %v11118_v18 }
 0x66a   : > { %12432 = vmatpush3.msra.mxu1 %v13727_v7  ;;  %12440 = vmatpush3.msra.mxu0 %v13733_v10 }
 0x66b   : > { %12419 = vmatmul.mubr.msk.f32.gmra.mxu1 %vm454_vm2, %v11119_v14  ;;  %12449 = vmatprep.subr.mxu1 %v13737_v12 }
 0x66c   : > { %12441 = vmatprep.subr.mxu0 %v13731_v9  ;;  %12427 = vmatmul.mubr.msk.f32.gmra.mxu0 %vm454_vm2, %v11119_v14 }
 0x66d   : > { %12442 = vmatpush3.msra.mxu0 %v13731_v9 }
 0x717   : > { %v12381_v35 = vpop.f32.mrf.mxu1  ;;  %v12391_v48 = vpop.f32.mrf.mxu0 }
 0x718   : > { %v4725_v22 = vadd.f32 %v12381_v35, %v4359_v61  ;;  %v4753_v36 = vadd.f32 %v12391_v48, %v4444_v57 }
 0x719   : > { %v4620_v16 = vpop.f32.mrf.mxu1  ;;  %v4705_v27 = vpop.f32.mrf.mxu0 }
 0x71a   : > { %v11101_v32 = vmul.f32 -1.442695, %v4725_v22  ;;  %v4724_v20 = vadd.f32 %v4620_v16, %v4354_v30  ;;  %v4752_v38 = vadd.f32 %v4705_v27, %v4439_v34  ;;  %v11105_v39 = vmul.f32 -1.442695, %v4753_v36 }
 0x71b   : > { %v12384_v41 = vpop.f32.mrf.mxu1  ;;  %v12394_v52 = vpop.f32.mrf.mxu0  ;;  %v4539_v34 = vadd.f32 %v14569_v60, %v13885_v42 }
 0x71c   : > { %13175 = vpow2.f32 %v11101_v32  ;;  %v11100_v51 = vmul.f32 -1.442695, %v4724_v20  ;;  %v4727_v49 = vadd.f32 %v12384_v41, %v4369_v15  ;;  %v4755_v46 = vadd.f32 %v12394_v52, %v4454_v37 }
 0x71d   : > { %v4630_v45 = vpop.f32.mrf.mxu1  ;;  %v4715_v17 = vpop.f32.mrf.mxu0  ;;  %v11104_v18 = vmul.f32 -1.442695, %v4752_v38  ;;  %v4529_v20 = vadd.f32 %v14565_v44, %v13885_v42 }
 0x71e   : > { %13177 = vpow2.f32 %v11100_v51  ;;  %v11103_v0 = vmul.f32 -1.442695, %v4727_v49  ;;  %v4726_v33 = vadd.f32 %v4630_v45, %v4364_v25  ;;  %v4754_v14 = vadd.f32 %v4715_v17, %v4449_v55 }
 0x71f   : > { %v11107_v56 = vmul.f32 -1.442695, %v4755_v46  ;;  %v12401_v35 = vpop.f32.mrf.mxu1 }
 0x720   : > { %13179 = vpow2.f32 %v11103_v0  ;;  %v11102_v59 = vmul.f32 -1.442695, %v4726_v33  ;;  %v11106_v58 = vmul.f32 -1.442695, %v4754_v14  ;;  %v4852_v16 = vadd.f32 %v12401_v35, %v13881_v40 }
 0x721   : > { %v4846_v30 = vpop.f32.mrf.mxu1  ;;  %v4524_v0 = vadd.f32 %v14567_v28, %v13885_v42  ;;  %v4534_v28 = vadd.f32 %v14572_v24, %v13885_v42 }
 0x722   : > { %13181 = vpow2.f32 %v11102_v59  ;;  %v4847_v25 = vadd.f32 %v4846_v30, %v13881_v40 }
 0x723   : > { %13183 = vpow2.f32 %v11105_v39  ;;  %v12404_v15 = vpop.f32.mrf.mxu1 }
 0x724   : > { %v4862_v57 = vadd.f32 %v12404_v15, %v13881_v40 }
 0x725   : > { %v4856_v45 = vpop.f32.mrf.mxu1 }
 0x726   : > { %v4857_v17 = vadd.f32 %v4856_v45, %v13881_v40 }
 0x729   : > { %v13176_v21 = vpop.eup %13175 }
 0x72a   : > { %v4741_v50 = vadd.f32 1.0, %v13176_v21 }
 0x72b   : > { %v13178_v23 = vpop.eup %13177 }
 0x72c   : > { %13185 = vrcp.f32 %v4741_v50  ;;  %v4740_v29 = vadd.f32 1.0, %v13178_v23 }
 0x72d   : > { %v13180_v26 = vpop.eup %13179  ;;  %13187 = vpow2.f32 %v11104_v18 }
 0x72e   : > { %13189 = vrcp.f32 %v4740_v29  ;;  %v4743_v43 = vadd.f32 1.0, %v13180_v26 }
 0x72f   : > { %v13182_v61 = vpop.eup %13181  ;;  %13191 = vpow2.f32 %v11107_v56 }
 0x730   : > { %13193 = vrcp.f32 %v4743_v43  ;;  %v4742_v54 = vadd.f32 1.0, %v13182_v61  ;;  %v13184_v22 = vpop.eup %13183 }
 0x731   : > { %13195 = vpow2.f32 %v11106_v58  ;;  %v4769_v49 = vadd.f32 1.0, %v13184_v22 }
 0x732   : > { %13197 = vrcp.f32 %v4742_v54 }
 0x739   : > { %v13186_v32 = vpop.eup %13185 }
 0x73a   : > { %v13188_v48 = vpop.eup %13187  ;;  %v4866_v41 = vmul.f32 %v13186_v32, %v4852_v16 }
 0x73b   : > { %v13190_v51 = vpop.eup %13189  ;;  %v4768_v36 = vadd.f32 1.0, %v13188_v48 }
 0x73c   : > { %v13192_v27 = vpop.eup %13191  ;;  %v4870_v33 = vadd.f32 %v4866_v41, %v4529_v20  ;;  %v4865_v59 = vmul.f32 %v13190_v51, %v4847_v25  ;;  %v12409_v25 = vpop.f32.mrf.mxu0 }
 0x73d   : > { %v13194_v52 = vpop.eup %13193  ;;  %v4771_v39 = vadd.f32 1.0, %v13192_v27  ;;  %v12417_v27 = vpop.f32.mrf.mxu1 }
 0x73e   : > { %v13196_v44 = vpop.eup %13195  ;;  %13199 = vtanh.f32 %v4870_v33  ;;  %v4869_v37 = vadd.f32 %v4865_v59, %v4524_v0  ;;  %v4868_v38 = vmul.f32 %v13194_v52, %v4862_v57  ;;  %v4985_v51 = vpop.f32.mrf.mxu0 }
 0x73f   : > { %v13198_v55 = vpop.eup %13197  ;;  %13201 = vrcp.f32 %v4769_v49  ;;  %v4770_v18 = vadd.f32 1.0, %v13196_v44  ;;  %v5070_v33 = vpop.f32.mrf.mxu1 }
 0x740   : > { %13203 = vtanh.f32 %v4869_v37  ;;  %v4872_v46 = vadd.f32 %v4868_v38, %v4539_v34  ;;  %v4867_v21 = vmul.f32 %v13198_v55, %v4857_v17  ;;  %v12412_v49 = vpop.f32.mrf.mxu0  ;;  %v4991_v34 = vadd.f32 %v12409_v25, %v13857_v31 }
 0x741   : > { %13205 = vrcp.f32 %v4768_v36  ;;  %v12420_v57 = vpop.f32.mrf.mxu1  ;;  %v4986_v38 = vadd.f32 %v4985_v51, %v13857_v31  ;;  %v5001_v17 = vadd.f32 %v12412_v49, %v13857_v31 }
 0x742   : > { %13207 = vtanh.f32 %v4872_v46  ;;  %v4871_v60 = vadd.f32 %v4867_v21, %v4534_v28  ;;  %v4995_v45 = vpop.f32.mrf.mxu0 }
 0x743   : > { %13209 = vrcp.f32 %v4771_v39  ;;  %v5080_v36 = vpop.f32.mrf.mxu1 }
 0x744   : > { %13211 = vtanh.f32 %v4871_v60  ;;  %v14644_v0 = vpop.f32.mrf.mxu0  ;;  %v4996_v60 = vadd.f32 %v4995_v45, %v13857_v31 }
 0x745   : > { %13213 = vrcp.f32 %v4770_v18 }
 0x746   : > { %v14646_v59 = vpop.f32.mrf.mxu0 }
 0x748   : > { %v14648_v52 = vpop.f32.mrf.mxu0 }
 0x74a   : > { %v14651_v44 = vpop.f32.mrf.mxu0 }
 0x74b   : > { %v13200_v14 = vpop.eup %13199 }
 0x74c   : > { %v13202_v50 = vpop.eup %13201  ;;  %v4878_v23 = vsub.f32 %v14501_v63, %v13200_v14 }
 0x74d   : > { %v13204_v56 = vpop.eup %13203 }
 0x74e   : > { %v13206_v29 = vpop.eup %13205  ;;  %v4882_v26 = vmul.f32 %v13202_v50, %v4878_v23  ;;  %v4877_v24 = vsub.f32 %v14495_v47, %v13204_v56 }
 0x74f   : > { %v13208_v58 = vpop.eup %13207 }
 0x750   : > { %v13210_v43 = vpop.eup %13209  ;;  %v4886_v61 = vadd.f32 %v13200_v14, %v4882_v26  ;;  %v4881_v35 = vmul.f32 %v13206_v29, %v4877_v24  ;;  %v4880_v54 = vsub.f32 %v14519_v62, %v13208_v58 }
 0x751   : > { %v13212_v30 = vpop.eup %13211 }
 0x752   : > { %4890 = vst.msk [vmem:[#allocation2 + $0x8] sm:$0xff] %vm744_vm3, %v4886_v61  ;;  %11113 = vst.msk [vmem:[%s13712_s13 + $0xc8] sm:$0xff] %vm744_vm3, %v4886_v61  ;;  %v4885_v63 = vadd.f32 %v13204_v56, %v4881_v35  ;;  %v4884_v15 = vmul.f32 %v13210_v43, %v4880_v54  ;;  %v4879_v22 = vsub.f32 %v14510_v19, %v13212_v30  ;;  %v13214_v16 = vpop.eup %13213 }
 0x753   : > { %v5071_v61 = vadd.f32 %v5070_v33, %v13871_v53  ;;  %v5086_v54 = vadd.f32 %v12420_v57, %v13871_v53 }
 0x754   : > { %4889 = vst.msk [vmem:[#allocation2] sm:$0xff] %vm744_vm3, %v4885_v63  ;;  %11112 = vst.msk [vmem:[%s13712_s13 + $0xc0] sm:$0xff] %vm744_vm3, %v4885_v63  ;;  %v4888_v47 = vadd.f32 %v13208_v58, %v4884_v15  ;;  %v4883_v32 = vmul.f32 %v13214_v16, %v4879_v22  ;;  %v5076_v58 = vadd.f32 %v12417_v27, %v13871_v53 }
 0x755   : > { %v5081_v63 = vadd.f32 %v5080_v36, %v13871_v53 }
 0x756   : > { %4892 = vst.msk [vmem:[#allocation2 + $0x18] sm:$0xff] %vm744_vm3, %v4888_v47  ;;  %11115 = vst.msk [vmem:[%s13712_s13 + $0xd8] sm:$0xff] %vm744_vm3, %v4888_v47  ;;  %v4887_v62 = vadd.f32 %v13212_v30, %v4883_v32 }
 0x758   : > { %4891 = vst.msk [vmem:[#allocation2 + $0x10] sm:$0xff] %vm744_vm3, %v4887_v62  ;;  %11114 = vst.msk [vmem:[%s13712_s13 + $0xd0] sm:$0xff] %vm744_vm3, %v4887_v62 }
 0x759   : > { %v14615_v19 = vld [vmem:[#allocation2 + $0x8] sm:$0xff] }
 0x75b   : > { %v14609_v48 = vld [vmem:[#allocation2] sm:$0xff] }
 0x75c   : > { %12433 = vmatprep.mubr.msk.f32.mxu1 %vm744_vm3, %v14609_v48  ;;  %12443 = vmatprep.mubr.msk.f32.mxu0 %vm744_vm3, %v14609_v48 }
 0x75d   : > { %12434 = vmatmul.mubr.msk.f32.vlgmr.msra.gmra.mxu1 %vm744_vm3, %v14615_v19  ;;  %12444 = vmatmul.mubr.msk.f32.vlgmr.msra.gmra.mxu0 %vm744_vm3, %v14615_v19  ;;  %v14629_v41 = vld [vmem:[#allocation2 + $0x18] sm:$0xff] }
 0x75e   : > { %12450 = vmatpush3.msra.mxu1 %v13737_v12 }
 0x75f   : > { %v14622_v20 = vld [vmem:[#allocation2 + $0x10] sm:$0xff]  ;;  %12451 = vmatprep.subr.mxu1 %v13735_v11 }
 0x760   : > { %12436 = vmatprep.mubr.msk.f32.mxu1 %vm744_vm3, %v14622_v20  ;;  %12446 = vmatprep.mubr.msk.f32.mxu0 %vm744_vm3, %v14622_v20 }
 0x761   : > { %12437 = vmatmul.mubr.msk.f32.gmra.mxu1 %vm744_vm3, %v14629_v41  ;;  %12447 = vmatmul.mubr.msk.f32.gmra.mxu0 %vm744_vm3, %v14629_v41 }
 0x762   : > { %12453 = vmatprep.mubr.msk.f32.mxu1 %vm744_vm3, %v14609_v48  ;;  %12452 = vmatpush3.msra.mxu1 %v13735_v11 }
 0x765   : > { %12454 = vmatmul.mubr.msk.f32.vlgmr.msra.gmra.mxu1 %vm744_vm3, %v14615_v19 }
 0x766   : > { %12456 = vmatprep.mubr.msk.f32.mxu1 %vm744_vm3, %v14622_v20 }
 0x769   : > { %12457 = vmatmul.mubr.msk.f32.gmra.mxu1 %vm744_vm3, %v14629_v41 }
 0x81d   : > { %v12435_v37 = vpop.f32.mrf.mxu1  ;;  %v12445_v46 = vpop.f32.mrf.mxu0 }
 0x81e   : > { %v5357_v55 = vadd.f32 %v12435_v37, %v4991_v34  ;;  %v5385_v35 = vadd.f32 %v12445_v46, %v5076_v58  ;;  %v5171_v58 = vadd.f32 %v14648_v52, %v13885_v42 }
 0x81f   : > { %v5252_v39 = vpop.f32.mrf.mxu1  ;;  %v5337_v56 = vpop.f32.mrf.mxu0 }
 0x820   : > { %v11144_v28 = vmul.f32 -1.442695, %v5357_v55  ;;  %v5356_v21 = vadd.f32 %v5252_v39, %v4986_v38  ;;  %v5384_v31 = vadd.f32 %v5337_v56, %v5071_v61  ;;  %v11148_v15 = vmul.f32 -1.442695, %v5385_v35 }
 0x821   : > { %v12438_v18 = vpop.f32.mrf.mxu1  ;;  %v12448_v43 = vpop.f32.mrf.mxu0 }
 0x822   : > { %13215 = vpow2.f32 %v11144_v28  ;;  %v11143_v14 = vmul.f32 -1.442695, %v5356_v21  ;;  %v5359_v50 = vadd.f32 %v12438_v18, %v5001_v17  ;;  %v5387_v22 = vadd.f32 %v12448_v43, %v5086_v54 }
 0x823   : > { %v5262_v23 = vpop.f32.mrf.mxu1  ;;  %v5347_v30 = vpop.f32.mrf.mxu0  ;;  %v11147_v47 = vmul.f32 -1.442695, %v5384_v31  ;;  %v5161_v28 = vadd.f32 %v14644_v0, %v13885_v42 }
 0x824   : > { %13217 = vpow2.f32 %v11143_v14  ;;  %v11146_v29 = vmul.f32 -1.442695, %v5359_v50  ;;  %v5358_v26 = vadd.f32 %v5262_v23, %v4996_v60  ;;  %v5386_v32 = vadd.f32 %v5347_v30, %v5081_v63 }
 0x825   : > { %v11150_v51 = vmul.f32 -1.442695, %v5387_v22  ;;  %v12455_v34 = vpop.f32.mrf.mxu1  ;;  %v5156_v23 = vadd.f32 %v14646_v59, %v13885_v42  ;;  %v5166_v59 = vadd.f32 %v14651_v44, %v13885_v42 }
 0x826   : > { %13219 = vpow2.f32 %v11146_v29  ;;  %v11145_v24 = vmul.f32 -1.442695, %v5358_v26  ;;  %v11149_v27 = vmul.f32 -1.442695, %v5386_v32  ;;  %v5484_v17 = vadd.f32 %v12455_v34, %v13881_v40 }
 0x827   : > { %v5478_v36 = vpop.f32.mrf.mxu1 }
 0x828   : > { %13221 = vpow2.f32 %v11145_v24  ;;  %v5479_v21 = vadd.f32 %v5478_v36, %v13881_v40 }
 0x829   : > { %13223 = vpow2.f32 %v11148_v15  ;;  %v12458_v37 = vpop.f32.mrf.mxu1 }
 0x82a   : > { %v5494_v26 = vadd.f32 %v12458_v37, %v13881_v40 }
 0x82b   : > { %v5488_v14 = vpop.f32.mrf.mxu1 }
 0x82c   : > { %v5489_v54 = vadd.f32 %v5488_v14, %v13881_v40 }
 0x82f   : > { %v13216_v16 = vpop.eup %13215 }
 0x830   : > { %v5373_v62 = vadd.f32 1.0, %v13216_v16 }
 0x831   : > { %v13218_v25 = vpop.eup %13217 }
 0x832   : > { %13225 = vrcp.f32 %v5373_v62  ;;  %v5372_v49 = vadd.f32 1.0, %v13218_v25 }
 0x833   : > { %v13220_v45 = vpop.eup %13219  ;;  %13227 = vpow2.f32 %v11147_v47 }
 0x834   : > { %13229 = vrcp.f32 %v5372_v49  ;;  %v5375_v33 = vadd.f32 1.0, %v13220_v45 }
 0x835   : > { %v13222_v57 = vpop.eup %13221  ;;  %13231 = vpow2.f32 %v11150_v51 }
 0x836   : > { %13233 = vrcp.f32 %v5375_v33  ;;  %v5374_v53 = vadd.f32 1.0, %v13222_v57  ;;  %v13224_v38 = vpop.eup %13223 }
 0x837   : > { %13235 = vpow2.f32 %v11149_v27  ;;  %v5401_v60 = vadd.f32 1.0, %v13224_v38 }
 0x838   : > { %13237 = vrcp.f32 %v5374_v53 }
 0x83f   : > { %v13226_v55 = vpop.eup %13225 }
 0x840   : > { %v13228_v39 = vpop.eup %13227  ;;  %v5498_v46 = vmul.f32 %v13226_v55, %v5484_v17 }
 0x841   : > { %v13230_v18 = vpop.eup %13229  ;;  %v5400_v43 = vadd.f32 1.0, %v13228_v39 }
 0x842   : > { %v13232_v50 = vpop.eup %13231  ;;  %v5502_v56 = vadd.f32 %v5498_v46, %v5161_v28  ;;  %v5497_v29 = vmul.f32 %v13230_v18, %v5479_v21 }
 0x843   : > { %v13234_v24 = vpop.eup %13233  ;;  %v5403_v30 = vadd.f32 1.0, %v13232_v50 }
 0x844   : > { %v13236_v0 = vpop.eup %13235  ;;  %13239 = vtanh.f32 %v5502_v56  ;;  %v5501_v61 = vadd.f32 %v5497_v29, %v5156_v23  ;;  %v5500_v35 = vmul.f32 %v13234_v24, %v5494_v26 }
 0x845   : > { %v13238_v31 = vpop.eup %13237  ;;  %13241 = vrcp.f32 %v5401_v60  ;;  %v5402_v22 = vadd.f32 1.0, %v13236_v0 }
 0x846   : > { %13243 = vtanh.f32 %v5501_v61  ;;  %v5504_v63 = vadd.f32 %v5500_v35, %v5171_v58  ;;  %v5499_v15 = vmul.f32 %v13238_v31, %v5489_v54 }
 0x847   : > { %13245 = vrcp.f32 %v5400_v43 }
 0x848   : > { %13247 = vtanh.f32 %v5504_v63  ;;  %v5503_v52 = vadd.f32 %v5499_v15, %v5166_v59 }
 0x849   : > { %13249 = vrcp.f32 %v5403_v30 }
 0x84a   : > { %13251 = vtanh.f32 %v5503_v52 }
 0x84b   : > { %13253 = vrcp.f32 %v5402_v22 }
 0x851   : > { %v13240_v16 = vpop.eup %13239 }
 0x852   : > { %v13242_v47 = vpop.eup %13241  ;;  %v5510_v40 = vsub.f32 %v14615_v19, %v13240_v16 }
 0x853   : > { %v13244_v32 = vpop.eup %13243 }
 0x854   : > { %v13246_v62 = vpop.eup %13245  ;;  %v5514_v25 = vmul.f32 %v13242_v47, %v5510_v40  ;;  %v5509_v42 = vsub.f32 %v14609_v48, %v13244_v32 }
 0x855   : > { %v13248_v44 = vpop.eup %13247 }
 0x856   : > { %v13250_v51 = vpop.eup %13249  ;;  %v5518_v49 = vadd.f32 %v13240_v16, %v5514_v25  ;;  %v5513_v45 = vmul.f32 %v13246_v62, %v5509_v42  ;;  %v5512_v27 = vsub.f32 %v14629_v41, %v13248_v44 }
 0x857   : > { %v13252_v33 = vpop.eup %13251 }
 0x858   : > { %5522 = vst.msk [vmem:[#allocation2 + $0x8] sm:$0xff] %vm744_vm3, %v5518_v49  ;;  %11156 = vst.msk [vmem:[%s13712_s13 + $0xe8] sm:$0xff] %vm744_vm3, %v5518_v49  ;;  %v5517_v19 = vadd.f32 %v13244_v32, %v5513_v45  ;;  %v5516_v57 = vmul.f32 %v13250_v51, %v5512_v27  ;;  %v5511_v34 = vsub.f32 %v14622_v20, %v13252_v33  ;;  %v13254_v53 = vpop.eup %13253 }
 0x85a   : > { %5521 = vst.msk [vmem:[#allocation2] sm:$0xff] %vm744_vm3, %v5517_v19  ;;  %11155 = vst.msk [vmem:[%s13712_s13 + $0xe0] sm:$0xff] %vm744_vm3, %v5517_v19  ;;  %v5520_v48 = vadd.f32 %v13248_v44, %v5516_v57  ;;  %v5515_v36 = vmul.f32 %v13254_v53, %v5511_v34 }
 0x85c   : > { %5524 = vst.msk [vmem:[#allocation2 + $0x18] sm:$0xff] %vm744_vm3, %v5520_v48  ;;  %11158 = vst.msk [vmem:[%s13712_s13 + $0xf8] sm:$0xff] %vm744_vm3, %v5520_v48  ;;  %v5519_v41 = vadd.f32 %v13252_v33, %v5515_v36 }
 0x85e   : > { %5523 = vst.msk [vmem:[#allocation2 + $0x10] sm:$0xff] %vm744_vm3, %v5519_v41  ;;  %11157 = vst.msk [vmem:[%s13712_s13 + $0xf0] sm:$0xff] %vm744_vm3, %v5519_v41 }
 0x85f PF: > { %p11159_p9 = scmp.ne.s32.totalorder %s13601_s19, 1 }
 0x861   : > { %5533 = sbr.rel (%p11159_p9) target bundleno = 4254 (0x109e), region = 52 }
 0x866   : > { %vm5562_vm4 = vcmask 1043456   ;;  %v11160_v20 = vld [vmem:[%s13706_s8 + $0xe0] sm:$0xff]  ;;  %vm5549_vm5 = vcmask 31744   ;;  %v11161_v37 = vld [vmem:[%s13706_s8 + $0xe8] sm:$0xff]  ;;  %v11162_v38 = vld [vmem:[%s13706_s8 + $0xf0] sm:$0xff]  ;;  %vm5839_vm6 = vcmask 130048   ;;  %v5544_v50 = vlaneseq }
 0x867   : > { %12459 = vmatprep.subr.msk.mxu0 %vm5562_vm4, %v13715_v1  ;;  %12467 = vmatprep.subr.msk.mxu1 %vm5562_vm4, %v13717_v2  ;;  %v11163_v17 = vld [vmem:[%s13706_s8 + $0xf8] sm:$0xff]  ;;  %v14712_v55 = vld [vmem:[#allocation2] sm:$0xff]  ;;  %v14719_v39 = vld [vmem:[#allocation2 + $0x8] sm:$0xff] }
 0x868   : > { %12460 = vmatpush3.msk.msra.mxu0 %vm5562_vm4, %v13715_v1  ;;  %12461 = vmatprep.mubr.msk.f32.mxu0 %vm5549_vm5, %v11160_v20  ;;  %v14724_v28 = vld [vmem:[#allocation2 + $0x10] sm:$0xff]  ;;  %v14734_v46 = vld [vmem:[#allocation2 + $0x18] sm:$0xff]  ;;  %v11203_v21 = vld [vmem:[%s13706_s8 + $0xc0] sm:$0xff]  ;;  %v5545_v23 = vshrl.u32 %v5544_v50, 7 }
 0x869   : > { %12468 = vmatpush3.msk.msra.mxu1 %vm5562_vm4, %v13717_v2  ;;  %12469 = vmatprep.mubr.msk.f32.mxu1 %vm5549_vm5, %v11160_v20  ;;  %v11204_v18 = vld [vmem:[%s13706_s8 + $0xc8] sm:$0xff]  ;;  %v11205_v60 = vld [vmem:[%s13706_s8 + $0xd0] sm:$0xff]  ;;  %v11206_v14 = vld [vmem:[%s13706_s8 + $0xd8] sm:$0xff] }
 0x86a   : > { %12462 = vmatmul.mubr.msk.f32.vlgmr.msra.gmra.mxu0 %vm5549_vm5, %v11161_v37  ;;  %12470 = vmatmul.mubr.msk.f32.vlgmr.msra.gmra.mxu1 %vm5549_vm5, %v11161_v37  ;;  %v14800_v56 = vsub.s32 0, %v5545_v23 }
 0x86b   : > { %12483 = vmatprep.subr.mxu1 %v13729_v8  ;;  %12464 = vmatprep.mubr.msk.f32.mxu0 %vm5549_vm5, %v11162_v38 }
 0x86c   : > { %12484 = vmatpush3.msra.mxu1 %v13729_v8  ;;  %12472 = vmatprep.mubr.msk.f32.mxu1 %vm5549_vm5, %v11162_v38  ;;  %v14804_v24 = vrot.slane %v13721_v4, %v14800_v56  ;;  %v14818_v44 = vrot.slane %v13723_v5, %v14800_v56 }
 0x86d   : > { %12485 = vmatprep.subr.mxu1 %v13727_v7  ;;  %12475 = vmatprep.subr.msk.mxu0 %vm5562_vm4, %v13719_v3 }
 0x86e   : > { %12465 = vmatmul.mubr.msk.f32.gmra.mxu0 %vm5549_vm5, %v11163_v17  ;;  %12473 = vmatmul.mubr.msk.f32.gmra.mxu1 %vm5549_vm5, %v11163_v17 }
 0x86f   : > { %12486 = vmatpush3.msra.mxu1 %v13727_v7  ;;  %12476 = vmatpush3.msk.msra.mxu0 %vm5562_vm4, %v13719_v3 }
 0x870   : > { %12477 = vmatprep.mubr.msk.f32.mxu0 %vm5549_vm5, %v11160_v20  ;;  %12487 = vmatprep.mubr.msk.f32.mxu1 %vm5839_vm6, %v14712_v55 }
 0x871   : > { %12493 = vmatprep.subr.mxu0 %v13733_v10  ;;  %12503 = vmatprep.subr.mxu1 %v13737_v12 }
 0x872   : > { %12478 = vmatmul.mubr.msk.f32.vlgmr.msra.gmra.mxu0 %vm5549_vm5, %v11161_v37  ;;  %12488 = vmatmul.mubr.msk.f32.vlgmr.msra.gmra.mxu1 %vm5839_vm6, %v14719_v39 }
 0x873   : > { %12480 = vmatprep.mubr.msk.f32.mxu0 %vm5549_vm5, %v11162_v38  ;;  %12490 = vmatprep.mubr.msk.f32.mxu1 %vm5839_vm6, %v14724_v28 }
 0x874   : > { %12494 = vmatpush3.msra.mxu0 %v13733_v10  ;;  %12504 = vmatpush3.msra.mxu1 %v13737_v12 }
 0x875   : > { %12495 = vmatprep.subr.mxu0 %v13731_v9  ;;  %12505 = vmatprep.subr.mxu1 %v13735_v11 }
 0x876   : > { %12481 = vmatmul.mubr.msk.f32.gmra.mxu0 %vm5549_vm5, %v11163_v17  ;;  %12491 = vmatmul.mubr.msk.f32.gmra.mxu1 %vm5839_vm6, %v14734_v46 }
 0x877   : > { %12496 = vmatpush3.msra.mxu0 %v13731_v9  ;;  %12497 = vmatprep.mubr.msk.f32.mxu0 %vm5839_vm6, %v14712_v55 }
 0x878   : > { %12506 = vmatpush3.msra.mxu1 %v13735_v11  ;;  %12507 = vmatprep.mubr.msk.f32.mxu1 %vm5839_vm6, %v14712_v55 }
 0x879   : > { %12513 = vmatprep.subr.msk.mxu0 %vm5562_vm4, %v13715_v1  ;;  %12521 = vmatprep.subr.msk.mxu1 %vm5562_vm4, %v13717_v2 }
 0x87a   : > { %12498 = vmatmul.mubr.msk.f32.vlgmr.msra.gmra.mxu0 %vm5839_vm6, %v14719_v39  ;;  %12508 = vmatmul.mubr.msk.f32.vlgmr.msra.gmra.mxu1 %vm5839_vm6, %v14719_v39 }
 0x87b   : > { %12500 = vmatprep.mubr.msk.f32.mxu0 %vm5839_vm6, %v14724_v28  ;;  %12510 = vmatprep.mubr.msk.f32.mxu1 %vm5839_vm6, %v14724_v28 }
 0x87c   : > { %12514 = vmatpush3.msk.msra.mxu0 %vm5562_vm4, %v13715_v1  ;;  %12522 = vmatpush3.msk.msra.mxu1 %vm5562_vm4, %v13717_v2 }
 0x87d   : > { %12529 = vmatprep.subr.msk.mxu0 %vm5562_vm4, %v13719_v3  ;;  %12537 = vmatprep.subr.mxu1 %v13729_v8 }
 0x87e   : > { %12501 = vmatmul.mubr.msk.f32.gmra.mxu0 %vm5839_vm6, %v14734_v46  ;;  %12511 = vmatmul.mubr.msk.f32.gmra.mxu1 %vm5839_vm6, %v14734_v46 }
 0x87f   : > { %12515 = vmatprep.mubr.msk.f32.mxu0 %vm5549_vm5, %v11203_v21  ;;  %12523 = vmatprep.mubr.msk.f32.mxu1 %vm5549_vm5, %v11203_v21 }
 0x882   : > { %12516 = vmatmul.mubr.msk.f32.vlgmr.msra.gmra.mxu0 %vm5549_vm5, %v11204_v18  ;;  %12524 = vmatmul.mubr.msk.f32.vlgmr.msra.gmra.mxu1 %vm5549_vm5, %v11204_v18 }
 0x883   : > { %12530 = vmatpush3.msk.msra.mxu0 %vm5562_vm4, %v13719_v3  ;;  %12538 = vmatpush3.msra.mxu1 %v13729_v8 }
 0x884   : > { %12539 = vmatprep.subr.mxu1 %v13727_v7  ;;  %12547 = vmatprep.subr.mxu0 %v13733_v10 }
 0x885   : > { %12518 = vmatprep.mubr.msk.f32.mxu0 %vm5549_vm5, %v11205_v60  ;;  %12526 = vmatprep.mubr.msk.f32.mxu1 %vm5549_vm5, %v11205_v60 }
 0x886   : > { %12519 = vmatmul.mubr.msk.f32.gmra.mxu0 %vm5549_vm5, %v11206_v14  ;;  %12527 = vmatmul.mubr.msk.f32.gmra.mxu1 %vm5549_vm5, %v11206_v14 }
 0x887   : > { %12531 = vmatprep.mubr.msk.f32.mxu0 %vm5549_vm5, %v11203_v21  ;;  %12540 = vmatpush3.msra.mxu1 %v13727_v7 }
 0x888   : > { %12557 = vmatprep.subr.mxu1 %v13737_v12 }
 0x88a   : > { %12532 = vmatmul.mubr.msk.f32.vlgmr.msra.gmra.mxu0 %vm5549_vm5, %v11204_v18 }
 0x88b   : > { %12534 = vmatprep.mubr.msk.f32.mxu0 %vm5549_vm5, %v11205_v60  ;;  %12548 = vmatpush3.msra.mxu0 %v13733_v10 }
 0x88c   : > { %12549 = vmatprep.subr.mxu0 %v13731_v9 }
 0x88d   : > { %12550 = vmatpush3.msra.mxu0 %v13731_v9 }
 0x88e   : > { %12535 = vmatmul.mubr.msk.f32.gmra.mxu0 %vm5549_vm5, %v11206_v14  ;;  %12567 = vmatprep.subr.msk.mxu0 %vm5562_vm4, %v13715_v1 }
 0x92a   : > { %v12463_v29 = vpop.f32.mrf.mxu0  ;;  %v12471_v26 = vpop.f32.mrf.mxu1 }
 0x92b   : > { %v5638_v35 = vadd.f32 %v12463_v29, %v14804_v24  ;;  %v5732_v57 = vadd.f32 %v12471_v26, %v14818_v44 }
 0x92c   : > { %v5632_v58 = vpop.f32.mrf.mxu0  ;;  %v5726_v43 = vpop.f32.mrf.mxu1 }
 0x92d   : > { %v5633_v63 = vadd.f32 %v5632_v58, %v14804_v24  ;;  %v5727_v53 = vadd.f32 %v5726_v43, %v14818_v44 }
 0x92e   : > { %v12466_v0 = vpop.f32.mrf.mxu0  ;;  %v12474_v61 = vpop.f32.mrf.mxu1 }
 0x92f   : > { %v5648_v15 = vadd.f32 %v12466_v0, %v14804_v24  ;;  %v5742_v5 = vadd.f32 %v12474_v61, %v14818_v44 }
 0x930   : > { %v5642_v54 = vpop.f32.mrf.mxu0  ;;  %v5736_v31 = vpop.f32.mrf.mxu1 }
 0x931   : > { %v5643_v62 = vadd.f32 %v5642_v54, %v14804_v24  ;;  %v5737_v37 = vadd.f32 %v5736_v31, %v14818_v44  ;;  %v14828_v54 = vrot.slane %v13739_v13, %v14800_v56 }
 0x932   : > { %v14807_v30 = vpop.f32.mrf.mxu0  ;;  %v12489_v59 = vpop.f32.mrf.mxu1 }
 0x933   : > { %v6023_v22 = vadd.f32 %v12489_v59, %v5638_v35  ;;  %v14832_v59 = vrot.slane %v13725_v6, %v14800_v56 }
 0x934   : > { %v14811_v52 = vpop.f32.mrf.mxu0  ;;  %v5918_v4 = vpop.f32.mrf.mxu1 }
 0x935   : > { %v11188_v16 = vmul.f32 -1.442695, %v6023_v22  ;;  %v6022_v47 = vadd.f32 %v5918_v4, %v5633_v63  ;;  %v5821_v6 = vadd.f32 %v14811_v52, %v14832_v59 }
 0x936   : > { %v14813_v40 = vpop.f32.mrf.mxu0  ;;  %v12492_v32 = vpop.f32.mrf.mxu1 }
 0x937   : > { %13255 = vpow2.f32 %v11188_v16  ;;  %v11187_v25 = vmul.f32 -1.442695, %v6022_v47  ;;  %v6025_v42 = vadd.f32 %v12492_v32, %v5648_v15  ;;  %v5826_v47 = vadd.f32 %v14807_v30, %v14832_v59 }
 0x938   : > { %v14820_v51 = vpop.f32.mrf.mxu0  ;;  %v5928_v49 = vpop.f32.mrf.mxu1 }
 0x939   : > { %13257 = vpow2.f32 %v11187_v25  ;;  %v11190_v45 = vmul.f32 -1.442695, %v6025_v42  ;;  %v6024_v27 = vadd.f32 %v5928_v49, %v5643_v62 }
 0x93a   : > { %v12499_v33 = vpop.f32.mrf.mxu0  ;;  %v12509_v61 = vpop.f32.mrf.mxu1 }
 0x93b   : > { %13259 = vpow2.f32 %v11190_v45  ;;  %v11189_v19 = vmul.f32 -1.442695, %v6024_v27  ;;  %v6051_v48 = vadd.f32 %v12499_v33, %v5732_v57  ;;  %v6156_v63 = vadd.f32 %v12509_v61, %v14828_v54 }
 0x93c   : > { %v6003_v34 = vpop.f32.mrf.mxu0  ;;  %v6150_v31 = vpop.f32.mrf.mxu1 }
 0x93d   : > { %13261 = vpow2.f32 %v11189_v19  ;;  %v6050_v41 = vadd.f32 %v6003_v34, %v5727_v53  ;;  %v11192_v38 = vmul.f32 -1.442695, %v6051_v48  ;;  %v6151_v62 = vadd.f32 %v6150_v31, %v14828_v54 }
 0x93e   : > { %v12502_v36 = vpop.f32.mrf.mxu0  ;;  %v12512_v15 = vpop.f32.mrf.mxu1  ;;  %v5836_v19 = vadd.f32 %v14813_v40, %v14832_v59 }
 0x93f   : > { %v6053_v17 = vadd.f32 %v12502_v36, %v5742_v5  ;;  %v11191_v18 = vmul.f32 -1.442695, %v6050_v41  ;;  %13263 = vpow2.f32 %v11192_v38  ;;  %v6166_v13 = vadd.f32 %v12512_v15, %v14828_v54 }
 0x940   : > { %v6013_v20 = vpop.f32.mrf.mxu0  ;;  %v6160_v49 = vpop.f32.mrf.mxu1  ;;  %v5831_v41 = vadd.f32 %v14820_v51, %v14832_v59 }
 0x941   : > { %v6052_v60 = vadd.f32 %v6013_v20, %v5737_v37  ;;  %v11194_v23 = vmul.f32 -1.442695, %v6053_v17  ;;  %v6161_v48 = vadd.f32 %v6160_v49, %v14828_v54 }
 0x942   : > { %v12525_v49 = vpop.f32.mrf.mxu1 }
 0x943   : > { %v11193_v58 = vmul.f32 -1.442695, %v6052_v60 }
 0x944   : > { %v13256_v21 = vpop.eup %13255 }
 0x945   : > { %v6039_v14 = vadd.f32 1.0, %v13256_v21 }
 0x946   : > { %v13258_v50 = vpop.eup %13257 }
 0x947   : > { %13265 = vrcp.f32 %v6039_v14  ;;  %v6038_v29 = vadd.f32 1.0, %v13258_v50 }
 0x948   : > { %v13260_v26 = vpop.eup %13259  ;;  %13267 = vpow2.f32 %v11191_v18 }
 0x949   : > { %13269 = vrcp.f32 %v6038_v29  ;;  %v6041_v43 = vadd.f32 1.0, %v13260_v26 }
 0x94a   : > { %v13262_v0 = vpop.eup %13261  ;;  %13271 = vpow2.f32 %v11194_v23 }
 0x94b   : > { %13273 = vrcp.f32 %v6041_v43  ;;  %v6040_v35 = vadd.f32 1.0, %v13262_v0 }
 0x94c   : > { %13275 = vpow2.f32 %v11193_v58  ;;  %v13264_v22 = vpop.eup %13263 }
 0x94d   : > { %13277 = vrcp.f32 %v6040_v35  ;;  %v6067_v42 = vadd.f32 1.0, %v13264_v22 }
 0x954   : > { %v13266_v4 = vpop.eup %13265 }
 0x955   : > { %v13268_v16 = vpop.eup %13267  ;;  %v6170_v32 = vmul.f32 %v13266_v4, %v6156_v63  ;;  %v11246_v4 = vld [vmem:[%s13706_s8 + $0xa0] sm:$0xff] }
 0x956   : > { %v13270_v25 = vpop.eup %13269  ;;  %v6066_v57 = vadd.f32 1.0, %v13268_v16  ;;  %v11247_v16 = vld [vmem:[%s13706_s8 + $0xa8] sm:$0xff] }
 0x957   : > { %v13272_v45 = vpop.eup %13271  ;;  %v6174_v56 = vadd.f32 %v6170_v32, %v5826_v47  ;;  %v6169_v27 = vmul.f32 %v13270_v25, %v6151_v62  ;;  %v11248_v47 = vld [vmem:[%s13706_s8 + $0xb0] sm:$0xff]  ;;  %v11249_v32 = vld [vmem:[%s13706_s8 + $0xb8] sm:$0xff]  ;;  %v12517_v62 = vpop.f32.mrf.mxu0 }
 0x958   : > { %v13274_v33 = vpop.eup %13273  ;;  %v6069_v5 = vadd.f32 1.0, %v13272_v45 }
 0x959   : > { %v13276_v30 = vpop.eup %13275  ;;  %13279 = vtanh.f32 %v6174_v56  ;;  %v6173_v34 = vadd.f32 %v6169_v27, %v5821_v6  ;;  %v6172_v53 = vmul.f32 %v13274_v33, %v6166_v13  ;;  %v6289_v13 = vpop.f32.mrf.mxu0 }
 0x95a   : > { %v13278_v36 = vpop.eup %13277  ;;  %13281 = vrcp.f32 %v6067_v42  ;;  %v6068_v37 = vadd.f32 1.0, %v13276_v30  ;;  %v6374_v6 = vpop.f32.mrf.mxu1 }
 0x95b   : > { %13283 = vtanh.f32 %v6173_v34  ;;  %v6176_v52 = vadd.f32 %v6172_v53, %v5836_v19  ;;  %v6171_v20 = vmul.f32 %v13278_v36, %v6161_v48  ;;  %v12520_v25 = vpop.f32.mrf.mxu0  ;;  %v6295_v19 = vadd.f32 %v12517_v62, %v14804_v24 }
 0x95c   : > { %13285 = vrcp.f32 %v6066_v57  ;;  %v12528_v27 = vpop.f32.mrf.mxu1  ;;  %v6290_v53 = vadd.f32 %v6289_v13, %v14804_v24  ;;  %v6305_v48 = vadd.f32 %v12520_v25, %v14804_v24 }
 0x95d   : > { %13287 = vtanh.f32 %v6176_v52  ;;  %v6175_v40 = vadd.f32 %v6171_v20, %v5831_v41  ;;  %v6299_v42 = vpop.f32.mrf.mxu0 }
 0x95e   : > { %13289 = vrcp.f32 %v6069_v5  ;;  %v6384_v57 = vpop.f32.mrf.mxu1 }
 0x95f   : > { %13291 = vtanh.f32 %v6175_v40  ;;  %v14934_v45 = vpop.f32.mrf.mxu0  ;;  %v6300_v40 = vadd.f32 %v6299_v42, %v14804_v24 }
 0x960   : > { %13293 = vrcp.f32 %v6068_v37 }
 0x961   : > { %v14936_v56 = vpop.f32.mrf.mxu0 }
 0x963   : > { %v14938_v33 = vpop.f32.mrf.mxu0 }
 0x965   : > { %v14941_v30 = vpop.f32.mrf.mxu0 }
 0x966   : > { %v13280_v38 = vpop.eup %13279 }
 0x967   : > { %v13282_v17 = vpop.eup %13281  ;;  %v6182_v21 = vsub.f32 %v14719_v39, %v13280_v38 }
 0x968   : > { %v13284_v18 = vpop.eup %13283 }
 0x969   : > { %v13286_v60 = vpop.eup %13285  ;;  %v6186_v14 = vmul.f32 %v13282_v17, %v6182_v21  ;;  %v6181_v51 = vsub.f32 %v14712_v55, %v13284_v18 }
 0x96a   : > { %v13288_v50 = vpop.eup %13287 }
 0x96b   : > { %v13290_v23 = vpop.eup %13289  ;;  %v6190_v29 = vadd.f32 %v13280_v38, %v6186_v14  ;;  %v6185_v26 = vmul.f32 %v13286_v60, %v6181_v51  ;;  %v6184_v58 = vsub.f32 %v14734_v46, %v13288_v50 }
 0x96c   : > { %v13292_v43 = vpop.eup %13291 }
 0x96d   : > { %6194 = vst.msk [vmem:[#allocation2 + $0x8] sm:$0xff] %vm5839_vm6, %v6190_v29  ;;  %11200 = vst.msk [vmem:[%s13712_s13 + $0xe8] sm:$0xff] %vm5839_vm6, %v6190_v29  ;;  %v6189_v39 = vadd.f32 %v13284_v18, %v6185_v26  ;;  %v6188_v0 = vmul.f32 %v13290_v23, %v6184_v58  ;;  %v6183_v61 = vsub.f32 %v14724_v28, %v13292_v43  ;;  %v13294_v35 = vpop.eup %13293 }
 0x96e   : > { %v6375_v29 = vadd.f32 %v6374_v6, %v14818_v44  ;;  %v6390_v58 = vadd.f32 %v12528_v27, %v14818_v44 }
 0x96f   : > { %6193 = vst.msk [vmem:[#allocation2] sm:$0xff] %vm5839_vm6, %v6189_v39  ;;  %11199 = vst.msk [vmem:[%s13712_s13 + $0xe0] sm:$0xff] %vm5839_vm6, %v6189_v39  ;;  %v6192_v55 = vadd.f32 %v13288_v50, %v6188_v0  ;;  %v6187_v31 = vmul.f32 %v13294_v35, %v6183_v61  ;;  %v6380_v50 = vadd.f32 %v12525_v49, %v14818_v44 }
 0x970   : > { %v6385_v0 = vadd.f32 %v6384_v57, %v14818_v44 }
 0x971   : > { %6196 = vst.msk [vmem:[#allocation2 + $0x18] sm:$0xff] %vm5839_vm6, %v6192_v55  ;;  %11202 = vst.msk [vmem:[%s13712_s13 + $0xf8] sm:$0xff] %vm5839_vm6, %v6192_v55  ;;  %v6191_v46 = vadd.f32 %v13292_v43, %v6187_v31 }
 0x973   : > { %6195 = vst.msk [vmem:[#allocation2 + $0x10] sm:$0xff] %vm5839_vm6, %v6191_v46  ;;  %11201 = vst.msk [vmem:[%s13712_s13 + $0xf0] sm:$0xff] %vm5839_vm6, %v6191_v46 }
 0x974   : > { %v14868_v28 = vld [vmem:[#allocation2 + $0x8] sm:$0xff] }
 0x976   : > { %v14862_v63 = vld [vmem:[#allocation2] sm:$0xff] }
 0x977   : > { %12541 = vmatprep.mubr.msk.f32.mxu1 %vm5839_vm6, %v14862_v63  ;;  %12551 = vmatprep.mubr.msk.f32.mxu0 %vm5839_vm6, %v14862_v63 }
 0x978   : > { %12542 = vmatmul.mubr.msk.f32.vlgmr.msra.gmra.mxu1 %vm5839_vm6, %v14868_v28  ;;  %12552 = vmatmul.mubr.msk.f32.vlgmr.msra.gmra.mxu0 %vm5839_vm6, %v14868_v28  ;;  %v14886_v22 = vld [vmem:[#allocation2 + $0x18] sm:$0xff] }
 0x979   : > { %12558 = vmatpush3.msra.mxu1 %v13737_v12  ;;  %12568 = vmatpush3.msk.msra.mxu0 %vm5562_vm4, %v13715_v1 }
 0x97a   : > { %v14877_v15 = vld [vmem:[#allocation2 + $0x10] sm:$0xff]  ;;  %12559 = vmatprep.subr.mxu1 %v13735_v11  ;;  %12583 = vmatprep.subr.msk.mxu0 %vm5562_vm4, %v13719_v3 }
 0x97b   : > { %12544 = vmatprep.mubr.msk.f32.mxu1 %vm5839_vm6, %v14877_v15  ;;  %12554 = vmatprep.mubr.msk.f32.mxu0 %vm5839_vm6, %v14877_v15 }
 0x97c   : > { %12545 = vmatmul.mubr.msk.f32.gmra.mxu1 %vm5839_vm6, %v14886_v22  ;;  %12555 = vmatmul.mubr.msk.f32.gmra.mxu0 %vm5839_vm6, %v14886_v22 }
 0x97d   : > { %12561 = vmatprep.mubr.msk.f32.mxu1 %vm5839_vm6, %v14862_v63  ;;  %12560 = vmatpush3.msra.mxu1 %v13735_v11 }
 0x97e   : > { %12575 = vmatprep.subr.msk.mxu1 %vm5562_vm4, %v13717_v2  ;;  %12569 = vmatprep.mubr.msk.f32.mxu0 %vm5549_vm5, %v11246_v4 }
 0x980   : > { %12562 = vmatmul.mubr.msk.f32.vlgmr.msra.gmra.mxu1 %vm5839_vm6, %v14868_v28  ;;  %12570 = vmatmul.mubr.msk.f32.vlgmr.msra.gmra.mxu0 %vm5549_vm5, %v11247_v16 }
 0x981   : > { %12564 = vmatprep.mubr.msk.f32.mxu1 %vm5839_vm6, %v14877_v15  ;;  %12576 = vmatpush3.msk.msra.mxu1 %vm5562_vm4, %v13717_v2 }
 0x982   : > { %12591 = vmatprep.subr.mxu1 %v13729_v8  ;;  %12584 = vmatpush3.msk.msra.mxu0 %vm5562_vm4, %v13719_v3 }
 0x983   : > { %12601 = vmatprep.subr.mxu0 %v13733_v10  ;;  %12572 = vmatprep.mubr.msk.f32.mxu0 %vm5549_vm5, %v11248_v47 }
 0x984   : > { %12565 = vmatmul.mubr.msk.f32.gmra.mxu1 %vm5839_vm6, %v14886_v22  ;;  %12573 = vmatmul.mubr.msk.f32.gmra.mxu0 %vm5549_vm5, %v11249_v32 }
 0x985   : > { %12577 = vmatprep.mubr.msk.f32.mxu1 %vm5549_vm5, %v11246_v4  ;;  %12585 = vmatprep.mubr.msk.f32.mxu0 %vm5549_vm5, %v11246_v4 }
 0x988   : > { %12578 = vmatmul.mubr.msk.f32.vlgmr.msra.gmra.mxu1 %vm5549_vm5, %v11247_v16  ;;  %12586 = vmatmul.mubr.msk.f32.vlgmr.msra.gmra.mxu0 %vm5549_vm5, %v11247_v16 }
 0x989   : > { %12592 = vmatpush3.msra.mxu1 %v13729_v8  ;;  %12580 = vmatprep.mubr.msk.f32.mxu1 %vm5549_vm5, %v11248_v47 }
 0x98a   : > { %12593 = vmatprep.subr.mxu1 %v13727_v7  ;;  %12588 = vmatprep.mubr.msk.f32.mxu0 %vm5549_vm5, %v11248_v47 }
 0x98b   : > { %12594 = vmatpush3.msra.mxu1 %v13727_v7  ;;  %12602 = vmatpush3.msra.mxu0 %v13733_v10 }
 0x98c   : > { %12581 = vmatmul.mubr.msk.f32.gmra.mxu1 %vm5549_vm5, %v11249_v32  ;;  %12611 = vmatprep.subr.mxu1 %v13737_v12 }
 0x98d   : > { %12603 = vmatprep.subr.mxu0 %v13731_v9  ;;  %12589 = vmatmul.mubr.msk.f32.gmra.mxu0 %vm5549_vm5, %v11249_v32 }
 0x98e   : > { %12604 = vmatpush3.msra.mxu0 %v13731_v9 }
 0x98f   : > { %12621 = vmatprep.subr.msk.mxu0 %vm5562_vm4, %v13715_v1 }
 0xa38   : > { %v12543_v34 = vpop.f32.mrf.mxu1  ;;  %v12553_v52 = vpop.f32.mrf.mxu0 }
 0xa39   : > { %v6661_v36 = vadd.f32 %v12543_v34, %v6295_v19  ;;  %v6689_v26 = vadd.f32 %v12553_v52, %v6380_v50 }
 0xa3a   : > { %v6556_v5 = vpop.f32.mrf.mxu1  ;;  %v6641_v18 = vpop.f32.mrf.mxu0 }
 0xa3b   : > { %v11231_v41 = vmul.f32 -1.442695, %v6661_v36  ;;  %v6660_v20 = vadd.f32 %v6556_v5, %v6290_v53  ;;  %v6688_v43 = vadd.f32 %v6641_v18, %v6375_v29  ;;  %v11235_v61 = vmul.f32 -1.442695, %v6689_v26 }
 0xa3c   : > { %v12546_v37 = vpop.f32.mrf.mxu1  ;;  %v12556_v23 = vpop.f32.mrf.mxu0  ;;  %v6465_v36 = vadd.f32 %v14934_v45, %v14832_v59 }
 0xa3d   : > { %13295 = vpow2.f32 %v11231_v41  ;;  %v11230_v38 = vmul.f32 -1.442695, %v6660_v20  ;;  %v6663_v17 = vadd.f32 %v12546_v37, %v6305_v48  ;;  %v6691_v35 = vadd.f32 %v12556_v23, %v6390_v58 }
 0xa3e   : > { %v6566_v21 = vpop.f32.mrf.mxu1  ;;  %v6651_v39 = vpop.f32.mrf.mxu0  ;;  %v11234_v31 = vmul.f32 -1.442695, %v6688_v43 }
 0xa3f   : > { %13297 = vpow2.f32 %v11230_v38  ;;  %v11233_v60 = vmul.f32 -1.442695, %v6663_v17  ;;  %v6662_v14 = vadd.f32 %v6566_v21, %v6300_v40  ;;  %v6690_v46 = vadd.f32 %v6651_v39, %v6385_v0 }
 0xa40   : > { %v11237_v47 = vmul.f32 -1.442695, %v6691_v35  ;;  %v12563_v49 = vpop.f32.mrf.mxu1  ;;  %v6460_v38 = vadd.f32 %v14936_v56, %v14832_v59  ;;  %v6470_v56 = vadd.f32 %v14941_v30, %v14832_v59 }
 0xa41   : > { %13299 = vpow2.f32 %v11233_v60  ;;  %v11232_v51 = vmul.f32 -1.442695, %v6662_v14  ;;  %v11236_v13 = vmul.f32 -1.442695, %v6690_v46  ;;  %v6788_v34 = vadd.f32 %v12563_v49, %v14828_v54 }
 0xa42   : > { %v6782_v27 = vpop.f32.mrf.mxu1  ;;  %v6475_v14 = vadd.f32 %v14938_v33, %v14832_v59 }
 0xa43   : > { %13301 = vpow2.f32 %v11232_v51  ;;  %v6783_v41 = vadd.f32 %v6782_v27, %v14828_v54 }
 0xa44   : > { %13303 = vpow2.f32 %v11235_v61  ;;  %v12566_v19 = vpop.f32.mrf.mxu1 }
 0xa45   : > { %v6798_v18 = vadd.f32 %v12566_v19, %v14828_v54 }
 0xa46   : > { %v6792_v37 = vpop.f32.mrf.mxu1 }
 0xa47   : > { %v6793_v29 = vadd.f32 %v6792_v37, %v14828_v54 }
 0xa4a   : > { %v13296_v55 = vpop.eup %13295 }
 0xa4b   : > { %v6677_v4 = vadd.f32 1.0, %v13296_v55 }
 0xa4c   : > { %v13298_v16 = vpop.eup %13297 }
 0xa4d   : > { %13305 = vrcp.f32 %v6677_v4  ;;  %v6676_v32 = vadd.f32 1.0, %v13298_v16 }
 0xa4e   : > { %v13300_v62 = vpop.eup %13299  ;;  %13307 = vpow2.f32 %v11234_v31 }
 0xa4f   : > { %13309 = vrcp.f32 %v6676_v32  ;;  %v6679_v25 = vadd.f32 1.0, %v13300_v62 }
 0xa50   : > { %v13302_v42 = vpop.eup %13301  ;;  %13311 = vpow2.f32 %v11237_v47 }
 0xa51   : > { %13313 = vrcp.f32 %v6679_v25  ;;  %v6678_v6 = vadd.f32 1.0, %v13302_v42  ;;  %v13304_v57 = vpop.eup %13303 }
 0xa52   : > { %13315 = vpow2.f32 %v11236_v13  ;;  %v6705_v20 = vadd.f32 1.0, %v13304_v57 }
 0xa53   : > { %13317 = vrcp.f32 %v6678_v6 }
 0xa5a   : > { %v13306_v53 = vpop.eup %13305 }
 0xa5b   : > { %v13308_v48 = vpop.eup %13307  ;;  %v6802_v5 = vmul.f32 %v13306_v53, %v6788_v34  ;;  %v11289_v53 = vld [vmem:[%s13706_s8 + $0x80] sm:$0xff] }
 0xa5c   : > { %v13310_v52 = vpop.eup %13309  ;;  %v6704_v51 = vadd.f32 1.0, %v13308_v48  ;;  %v11290_v48 = vld [vmem:[%s13706_s8 + $0x88] sm:$0xff] }
 0xa5d   : > { %v13312_v40 = vpop.eup %13311  ;;  %v6806_v17 = vadd.f32 %v6802_v5, %v6465_v36  ;;  %v6801_v21 = vmul.f32 %v13310_v52, %v6783_v41  ;;  %v11291_v36 = vld [vmem:[%s13706_s8 + $0x90] sm:$0xff]  ;;  %v11292_v5 = vld [vmem:[%s13706_s8 + $0x98] sm:$0xff]  ;;  %v12571_v41 = vpop.f32.mrf.mxu0 }
 0xa5e   : > { %v13314_v60 = vpop.eup %13313  ;;  %v6707_v58 = vadd.f32 1.0, %v13312_v40  ;;  %v12579_v40 = vpop.f32.mrf.mxu1 }
 0xa5f   : > { %v13316_v45 = vpop.eup %13315  ;;  %13319 = vtanh.f32 %v6806_v17  ;;  %v6805_v50 = vadd.f32 %v6801_v21, %v6460_v38  ;;  %v6804_v23 = vmul.f32 %v13314_v60, %v6798_v18  ;;  %v6921_v52 = vpop.f32.mrf.mxu0 }
 0xa60   : > { %v13318_v26 = vpop.eup %13317  ;;  %13321 = vrcp.f32 %v6705_v20  ;;  %v6706_v0 = vadd.f32 1.0, %v13316_v45  ;;  %v7006_v17 = vpop.f32.mrf.mxu1 }
 0xa61   : > { %13323 = vtanh.f32 %v6805_v50  ;;  %v6808_v43 = vadd.f32 %v6804_v23, %v6475_v14  ;;  %v6803_v39 = vmul.f32 %v13318_v26, %v6793_v29  ;;  %v12574_v20 = vpop.f32.mrf.mxu0  ;;  %v6927_v14 = vadd.f32 %v12571_v41, %v14804_v24 }
 0xa62   : > { %13325 = vrcp.f32 %v6704_v51  ;;  %v12582_v18 = vpop.f32.mrf.mxu1  ;;  %v6922_v23 = vadd.f32 %v6921_v52, %v14804_v24  ;;  %v6937_v29 = vadd.f32 %v12574_v20, %v14804_v24 }
 0xa63   : > { %13327 = vtanh.f32 %v6808_v43  ;;  %v6807_v33 = vadd.f32 %v6803_v39, %v6470_v56  ;;  %v6931_v37 = vpop.f32.mrf.mxu0 }
 0xa64   : > { %13329 = vrcp.f32 %v6707_v58  ;;  %v7016_v51 = vpop.f32.mrf.mxu1 }
 0xa65   : > { %13331 = vtanh.f32 %v6807_v33  ;;  %v15050_v38 = vpop.f32.mrf.mxu0  ;;  %v6932_v33 = vadd.f32 %v6931_v37, %v14804_v24 }
 0xa66   : > { %13333 = vrcp.f32 %v6706_v0 }
 0xa67   : > { %v15052_v21 = vpop.f32.mrf.mxu0 }
 0xa69   : > { %v15054_v60 = vpop.f32.mrf.mxu0 }
 0xa6b   : > { %v15057_v45 = vpop.f32.mrf.mxu0 }
 0xa6c   : > { %v13320_v61 = vpop.eup %13319 }
 0xa6d   : > { %v13322_v35 = vpop.eup %13321  ;;  %v6814_v55 = vsub.f32 %v14868_v28, %v13320_v61 }
 0xa6e   : > { %v13324_v31 = vpop.eup %13323 }
 0xa6f   : > { %v13326_v46 = vpop.eup %13325  ;;  %v6818_v4 = vmul.f32 %v13322_v35, %v6814_v55  ;;  %v6813_v30 = vsub.f32 %v14862_v63, %v13324_v31 }
 0xa70   : > { %v13328_v16 = vpop.eup %13327 }
 0xa71   : > { %v13330_v47 = vpop.eup %13329  ;;  %v6822_v32 = vadd.f32 %v13320_v61, %v6818_v4  ;;  %v6817_v62 = vmul.f32 %v13326_v46, %v6813_v30  ;;  %v6816_v13 = vsub.f32 %v14886_v22, %v13328_v16 }
 0xa72   : > { %v13332_v25 = vpop.eup %13331 }
 0xa73   : > { %6826 = vst.msk [vmem:[#allocation2 + $0x8] sm:$0xff] %vm5839_vm6, %v6822_v32  ;;  %11243 = vst.msk [vmem:[%s13712_s13 + $0xc8] sm:$0xff] %vm5839_vm6, %v6822_v32  ;;  %v6821_v28 = vadd.f32 %v13324_v31, %v6817_v62  ;;  %v6820_v42 = vmul.f32 %v13330_v47, %v6816_v13  ;;  %v6815_v49 = vsub.f32 %v14877_v15, %v13332_v25  ;;  %v13334_v6 = vpop.eup %13333 }
 0xa74   : > { %v7007_v32 = vadd.f32 %v7006_v17, %v14818_v44  ;;  %v7022_v13 = vadd.f32 %v12582_v18, %v14818_v44 }
 0xa75   : > { %6825 = vst.msk [vmem:[#allocation2] sm:$0xff] %vm5839_vm6, %v6821_v28  ;;  %11242 = vst.msk [vmem:[%s13712_s13 + $0xc0] sm:$0xff] %vm5839_vm6, %v6821_v28  ;;  %v6824_v63 = vadd.f32 %v13328_v16, %v6820_v42  ;;  %v6819_v27 = vmul.f32 %v13334_v6, %v6815_v49  ;;  %v7012_v16 = vadd.f32 %v12579_v40, %v14818_v44 }
 0xa76   : > { %v7017_v42 = vadd.f32 %v7016_v51, %v14818_v44 }
 0xa77   : > { %6828 = vst.msk [vmem:[#allocation2 + $0x18] sm:$0xff] %vm5839_vm6, %v6824_v63  ;;  %11245 = vst.msk [vmem:[%s13712_s13 + $0xd8] sm:$0xff] %vm5839_vm6, %v6824_v63  ;;  %v6823_v22 = vadd.f32 %v13332_v25, %v6819_v27 }
 0xa79   : > { %6827 = vst.msk [vmem:[#allocation2 + $0x10] sm:$0xff] %vm5839_vm6, %v6823_v22  ;;  %11244 = vst.msk [vmem:[%s13712_s13 + $0xd0] sm:$0xff] %vm5839_vm6, %v6823_v22 }
 0xa7a   : > { %v14984_v15 = vld [vmem:[#allocation2 + $0x8] sm:$0xff] }
 0xa7c   : > { %v14978_v19 = vld [vmem:[#allocation2] sm:$0xff] }
 0xa7d   : > { %12595 = vmatprep.mubr.msk.f32.mxu1 %vm5839_vm6, %v14978_v19  ;;  %12605 = vmatprep.mubr.msk.f32.mxu0 %vm5839_vm6, %v14978_v19 }
 0xa7e   : > { %12596 = vmatmul.mubr.msk.f32.vlgmr.msra.gmra.mxu1 %vm5839_vm6, %v14984_v15  ;;  %12606 = vmatmul.mubr.msk.f32.vlgmr.msra.gmra.mxu0 %vm5839_vm6, %v14984_v15  ;;  %v15002_v34 = vld [vmem:[#allocation2 + $0x18] sm:$0xff] }
 0xa7f   : > { %12612 = vmatpush3.msra.mxu1 %v13737_v12  ;;  %12622 = vmatpush3.msk.msra.mxu0 %vm5562_vm4, %v13715_v1 }
 0xa80   : > { %v14993_v57 = vld [vmem:[#allocation2 + $0x10] sm:$0xff]  ;;  %12613 = vmatprep.subr.mxu1 %v13735_v11  ;;  %12637 = vmatprep.subr.msk.mxu0 %vm5562_vm4, %v13719_v3 }
 0xa81   : > { %12598 = vmatprep.mubr.msk.f32.mxu1 %vm5839_vm6, %v14993_v57  ;;  %12608 = vmatprep.mubr.msk.f32.mxu0 %vm5839_vm6, %v14993_v57 }
 0xa82   : > { %12599 = vmatmul.mubr.msk.f32.gmra.mxu1 %vm5839_vm6, %v15002_v34  ;;  %12609 = vmatmul.mubr.msk.f32.gmra.mxu0 %vm5839_vm6, %v15002_v34 }
 0xa83   : > { %12615 = vmatprep.mubr.msk.f32.mxu1 %vm5839_vm6, %v14978_v19  ;;  %12614 = vmatpush3.msra.mxu1 %v13735_v11 }
 0xa84   : > { %12629 = vmatprep.subr.msk.mxu1 %vm5562_vm4, %v13717_v2  ;;  %12623 = vmatprep.mubr.msk.f32.mxu0 %vm5549_vm5, %v11289_v53 }
 0xa86   : > { %12616 = vmatmul.mubr.msk.f32.vlgmr.msra.gmra.mxu1 %vm5839_vm6, %v14984_v15  ;;  %12624 = vmatmul.mubr.msk.f32.vlgmr.msra.gmra.mxu0 %vm5549_vm5, %v11290_v48 }
 0xa87   : > { %12618 = vmatprep.mubr.msk.f32.mxu1 %vm5839_vm6, %v14993_v57  ;;  %12630 = vmatpush3.msk.msra.mxu1 %vm5562_vm4, %v13717_v2 }
 0xa88   : > { %12645 = vmatprep.subr.mxu1 %v13729_v8  ;;  %12638 = vmatpush3.msk.msra.mxu0 %vm5562_vm4, %v13719_v3 }
 0xa89   : > { %12655 = vmatprep.subr.mxu0 %v13733_v10  ;;  %12626 = vmatprep.mubr.msk.f32.mxu0 %vm5549_vm5, %v11291_v36 }
 0xa8a   : > { %12619 = vmatmul.mubr.msk.f32.gmra.mxu1 %vm5839_vm6, %v15002_v34  ;;  %12627 = vmatmul.mubr.msk.f32.gmra.mxu0 %vm5549_vm5, %v11292_v5 }
 0xa8b   : > { %12631 = vmatprep.mubr.msk.f32.mxu1 %vm5549_vm5, %v11289_v53  ;;  %12639 = vmatprep.mubr.msk.f32.mxu0 %vm5549_vm5, %v11289_v53 }
 0xa8e   : > { %12632 = vmatmul.mubr.msk.f32.vlgmr.msra.gmra.mxu1 %vm5549_vm5, %v11290_v48  ;;  %12640 = vmatmul.mubr.msk.f32.vlgmr.msra.gmra.mxu0 %vm5549_vm5, %v11290_v48 }
 0xa8f   : > { %12646 = vmatpush3.msra.mxu1 %v13729_v8  ;;  %12634 = vmatprep.mubr.msk.f32.mxu1 %vm5549_vm5, %v11291_v36 }
 0xa90   : > { %12647 = vmatprep.subr.mxu1 %v13727_v7  ;;  %12642 = vmatprep.mubr.msk.f32.mxu0 %vm5549_vm5, %v11291_v36 }
 0xa91   : > { %12648 = vmatpush3.msra.mxu1 %v13727_v7  ;;  %12656 = vmatpush3.msra.mxu0 %v13733_v10 }
 0xa92   : > { %12635 = vmatmul.mubr.msk.f32.gmra.mxu1 %vm5549_vm5, %v11292_v5  ;;  %12665 = vmatprep.subr.mxu1 %v13737_v12 }
 0xa93   : > { %12657 = vmatprep.subr.mxu0 %v13731_v9  ;;  %12643 = vmatmul.mubr.msk.f32.gmra.mxu0 %vm5549_vm5, %v11292_v5 }
 0xa94   : > { %12658 = vmatpush3.msra.mxu0 %v13731_v9 }
 0xa95   : > { %12675 = vmatprep.subr.msk.mxu0 %vm5562_vm4, %v13715_v1 }
 0xb3e   : > { %v12597_v50 = vpop.f32.mrf.mxu1  ;;  %v12607_v43 = vpop.f32.mrf.mxu0 }
 0xb3f   : > { %v7293_v26 = vadd.f32 %v12597_v50, %v6927_v14  ;;  %v7321_v62 = vadd.f32 %v12607_v43, %v7012_v16 }
 0xb40   : > { %v7188_v58 = vpop.f32.mrf.mxu1  ;;  %v7273_v31 = vpop.f32.mrf.mxu0 }
 0xb41   : > { %v11274_v56 = vmul.f32 -1.442695, %v7293_v26  ;;  %v7292_v39 = vadd.f32 %v7188_v58, %v6922_v23  ;;  %v7320_v25 = vadd.f32 %v7273_v31, %v7007_v32  ;;  %v11278_v49 = vmul.f32 -1.442695, %v7321_v62 }
 0xb42   : > { %v12600_v0 = vpop.f32.mrf.mxu1  ;;  %v12610_v47 = vpop.f32.mrf.mxu0  ;;  %v7097_v26 = vadd.f32 %v15050_v38, %v14832_v59 }
 0xb43   : > { %13335 = vpow2.f32 %v11274_v56  ;;  %v11273_v61 = vmul.f32 -1.442695, %v7292_v39  ;;  %v7295_v35 = vadd.f32 %v12600_v0, %v6937_v29  ;;  %v7323_v6 = vadd.f32 %v12610_v47, %v7022_v13 }
 0xb44   : > { %v7198_v55 = vpop.f32.mrf.mxu1  ;;  %v7283_v28 = vpop.f32.mrf.mxu0  ;;  %v11277_v27 = vmul.f32 -1.442695, %v7320_v25 }
 0xb45   : > { %13337 = vpow2.f32 %v11273_v61  ;;  %v11276_v46 = vmul.f32 -1.442695, %v7295_v35  ;;  %v7294_v4 = vadd.f32 %v7198_v55, %v6932_v33  ;;  %v7322_v22 = vadd.f32 %v7283_v28, %v7017_v42 }
 0xb46   : > { %v11280_v36 = vmul.f32 -1.442695, %v7323_v6  ;;  %v12617_v40 = vpop.f32.mrf.mxu1  ;;  %v7092_v61 = vadd.f32 %v15052_v21, %v14832_v59  ;;  %v7102_v21 = vadd.f32 %v15057_v45, %v14832_v59 }
 0xb47   : > { %13339 = vpow2.f32 %v11276_v46  ;;  %v11275_v30 = vmul.f32 -1.442695, %v7294_v4  ;;  %v11279_v52 = vmul.f32 -1.442695, %v7322_v22  ;;  %v7420_v50 = vadd.f32 %v12617_v40, %v14828_v54 }
 0xb48   : > { %v7414_v18 = vpop.f32.mrf.mxu1  ;;  %v7107_v4 = vadd.f32 %v15054_v60, %v14832_v59 }
 0xb49   : > { %13341 = vpow2.f32 %v11275_v30  ;;  %v7415_v56 = vadd.f32 %v7414_v18, %v14828_v54 }
 0xb4a   : > { %13343 = vpow2.f32 %v11278_v49  ;;  %v12620_v14 = vpop.f32.mrf.mxu1 }
 0xb4b   : > { %v7430_v31 = vadd.f32 %v12620_v14, %v14828_v54 }
 0xb4c   : > { %v7424_v0 = vpop.f32.mrf.mxu1 }
 0xb4d   : > { %v7425_v32 = vadd.f32 %v7424_v0, %v14828_v54 }
 0xb50   : > { %v13336_v63 = vpop.eup %13335 }
 0xb51   : > { %v7309_v53 = vadd.f32 1.0, %v13336_v63 }
 0xb52   : > { %v13338_v48 = vpop.eup %13337 }
 0xb53   : > { %13345 = vrcp.f32 %v7309_v53  ;;  %v7308_v5 = vadd.f32 1.0, %v13338_v48 }
 0xb54   : > { %v13340_v41 = vpop.eup %13339  ;;  %13347 = vpow2.f32 %v11277_v27 }
 0xb55   : > { %13349 = vrcp.f32 %v7308_v5  ;;  %v7311_v20 = vadd.f32 1.0, %v13340_v41 }
 0xb56   : > { %v13342_v37 = vpop.eup %13341  ;;  %13351 = vpow2.f32 %v11280_v36 }
 0xb57   : > { %13353 = vrcp.f32 %v7311_v20  ;;  %v7310_v17 = vadd.f32 1.0, %v13342_v37  ;;  %v13344_v51 = vpop.eup %13343 }
 0xb58   : > { %13355 = vpow2.f32 %v11279_v52  ;;  %v7337_v39 = vadd.f32 1.0, %v13344_v51 }
 0xb59   : > { %13357 = vrcp.f32 %v7310_v17 }
 0xb60   : > { %v13346_v23 = vpop.eup %13345 }
 0xb61   : > { %v13348_v29 = vpop.eup %13347  ;;  %v7434_v58 = vmul.f32 %v13346_v23, %v7420_v50  ;;  %v11332_v23 = vld [vmem:[%s13706_s8 + $0x60] sm:$0xff] }
 0xb62   : > { %v13350_v43 = vpop.eup %13349  ;;  %v7336_v30 = vadd.f32 1.0, %v13348_v29  ;;  %v11333_v29 = vld [vmem:[%s13706_s8 + $0x68] sm:$0xff] }
 0xb63   : > { %v13352_v33 = vpop.eup %13351  ;;  %v7438_v35 = vadd.f32 %v7434_v58, %v7097_v26  ;;  %v7433_v55 = vmul.f32 %v13350_v43, %v7415_v56  ;;  %v11334_v26 = vld [vmem:[%s13706_s8 + $0x70] sm:$0xff]  ;;  %v11335_v58 = vld [vmem:[%s13706_s8 + $0x78] sm:$0xff]  ;;  %v12625_v56 = vpop.f32.mrf.mxu0 }
 0xb64   : > { %v13354_v46 = vpop.eup %13353  ;;  %v7339_v13 = vadd.f32 1.0, %v13352_v33  ;;  %v12633_v33 = vpop.f32.mrf.mxu1 }
 0xb65   : > { %v13356_v38 = vpop.eup %13355  ;;  %13359 = vtanh.f32 %v7438_v35  ;;  %v7437_v16 = vadd.f32 %v7433_v55, %v7092_v61  ;;  %v7436_v47 = vmul.f32 %v13354_v46, %v7430_v31  ;;  %v7553_v43 = vpop.f32.mrf.mxu0 }
 0xb66   : > { %v13358_v62 = vpop.eup %13357  ;;  %13361 = vrcp.f32 %v7337_v39  ;;  %v7338_v42 = vadd.f32 1.0, %v13356_v38  ;;  %v7638_v35 = vpop.f32.mrf.mxu1 }
 0xb67   : > { %13363 = vtanh.f32 %v7437_v16  ;;  %v7440_v25 = vadd.f32 %v7436_v47, %v7107_v4  ;;  %v7435_v28 = vmul.f32 %v13358_v62, %v7425_v32  ;;  %v12628_v39 = vpop.f32.mrf.mxu0  ;;  %v7559_v4 = vadd.f32 %v12625_v56, %v14804_v24 }
 0xb68   : > { %13365 = vrcp.f32 %v7336_v30  ;;  %v12636_v31 = vpop.f32.mrf.mxu1  ;;  %v7554_v47 = vadd.f32 %v7553_v43, %v14804_v24  ;;  %v7569_v32 = vadd.f32 %v12628_v39, %v14804_v24 }
 0xb69   : > { %13367 = vtanh.f32 %v7440_v25  ;;  %v7439_v60 = vadd.f32 %v7435_v28, %v7102_v21  ;;  %v7563_v0 = vpop.f32.mrf.mxu0 }
 0xb6a   : > { %13369 = vrcp.f32 %v7339_v13  ;;  %v7648_v30 = vpop.f32.mrf.mxu1 }
 0xb6b   : > { %13371 = vtanh.f32 %v7439_v60  ;;  %v15166_v61 = vpop.f32.mrf.mxu0  ;;  %v7564_v60 = vadd.f32 %v7563_v0, %v14804_v24 }
 0xb6c   : > { %13373 = vrcp.f32 %v7338_v42 }
 0xb6d   : > { %v15168_v55 = vpop.f32.mrf.mxu0 }
 0xb6f   : > { %v15170_v46 = vpop.f32.mrf.mxu0 }
 0xb71   : > { %v15173_v38 = vpop.f32.mrf.mxu0 }
 0xb72   : > { %v13360_v49 = vpop.eup %13359 }
 0xb73   : > { %v13362_v6 = vpop.eup %13361  ;;  %v7446_v63 = vsub.f32 %v14984_v15, %v13360_v49 }
 0xb74   : > { %v13364_v27 = vpop.eup %13363 }
 0xb75   : > { %v13366_v22 = vpop.eup %13365  ;;  %v7450_v53 = vmul.f32 %v13362_v6, %v7446_v63  ;;  %v7445_v45 = vsub.f32 %v14978_v19, %v13364_v27 }
 0xb76   : > { %v13368_v48 = vpop.eup %13367 }
 0xb77   : > { %v13370_v36 = vpop.eup %13369  ;;  %v7454_v5 = vadd.f32 %v13360_v49, %v7450_v53  ;;  %v7449_v41 = vmul.f32 %v13366_v22, %v7445_v45  ;;  %v7448_v52 = vsub.f32 %v15002_v34, %v13368_v48 }
 0xb78   : > { %v13372_v20 = vpop.eup %13371 }
 0xb79   : > { %7458 = vst.msk [vmem:[#allocation2 + $0x8] sm:$0xff] %vm5839_vm6, %v7454_v5  ;;  %11286 = vst.msk [vmem:[%s13712_s13 + $0xa8] sm:$0xff] %vm5839_vm6, %v7454_v5  ;;  %v7453_v15 = vadd.f32 %v13364_v27, %v7449_v41  ;;  %v7452_v37 = vmul.f32 %v13370_v36, %v7448_v52  ;;  %v7447_v40 = vsub.f32 %v14993_v57, %v13372_v20  ;;  %v13374_v17 = vpop.eup %13373 }
 0xb7a   : > { %v7639_v5 = vadd.f32 %v7638_v35, %v14818_v44  ;;  %v7654_v52 = vadd.f32 %v12636_v31, %v14818_v44 }
 0xb7b   : > { %7457 = vst.msk [vmem:[#allocation2] sm:$0xff] %vm5839_vm6, %v7453_v15  ;;  %11285 = vst.msk [vmem:[%s13712_s13 + $0xa0] sm:$0xff] %vm5839_vm6, %v7453_v15  ;;  %v7456_v19 = vadd.f32 %v13368_v48, %v7452_v37  ;;  %v7451_v18 = vmul.f32 %v13374_v17, %v7447_v40  ;;  %v7644_v48 = vadd.f32 %v12633_v33, %v14818_v44 }
 0xb7c   : > { %v7649_v37 = vadd.f32 %v7648_v30, %v14818_v44 }
 0xb7d   : > { %7460 = vst.msk [vmem:[#allocation2 + $0x18] sm:$0xff] %vm5839_vm6, %v7456_v19  ;;  %11288 = vst.msk [vmem:[%s13712_s13 + $0xb8] sm:$0xff] %vm5839_vm6, %v7456_v19  ;;  %v7455_v34 = vadd.f32 %v13372_v20, %v7451_v18 }
 0xb7f   : > { %7459 = vst.msk [vmem:[#allocation2 + $0x10] sm:$0xff] %vm5839_vm6, %v7455_v34  ;;  %11287 = vst.msk [vmem:[%s13712_s13 + $0xb0] sm:$0xff] %vm5839_vm6, %v7455_v34 }
 0xb80   : > { %v15100_v57 = vld [vmem:[#allocation2 + $0x8] sm:$0xff] }
 0xb82   : > { %v15094_v14 = vld [vmem:[#allocation2] sm:$0xff] }
 0xb83   : > { %12649 = vmatprep.mubr.msk.f32.mxu1 %vm5839_vm6, %v15094_v14  ;;  %12659 = vmatprep.mubr.msk.f32.mxu0 %vm5839_vm6, %v15094_v14 }
 0xb84   : > { %12650 = vmatmul.mubr.msk.f32.vlgmr.msra.gmra.mxu1 %vm5839_vm6, %v15100_v57  ;;  %12660 = vmatmul.mubr.msk.f32.vlgmr.msra.gmra.mxu0 %vm5839_vm6, %v15100_v57  ;;  %v15118_v50 = vld [vmem:[#allocation2 + $0x18] sm:$0xff] }
 0xb85   : > { %12666 = vmatpush3.msra.mxu1 %v13737_v12  ;;  %12676 = vmatpush3.msk.msra.mxu0 %vm5562_vm4, %v13715_v1 }
 0xb86   : > { %v15109_v51 = vld [vmem:[#allocation2 + $0x10] sm:$0xff]  ;;  %12667 = vmatprep.subr.mxu1 %v13735_v11  ;;  %12691 = vmatprep.subr.msk.mxu0 %vm5562_vm4, %v13719_v3 }
 0xb87   : > { %12652 = vmatprep.mubr.msk.f32.mxu1 %vm5839_vm6, %v15109_v51  ;;  %12662 = vmatprep.mubr.msk.f32.mxu0 %vm5839_vm6, %v15109_v51 }
 0xb88   : > { %12653 = vmatmul.mubr.msk.f32.gmra.mxu1 %vm5839_vm6, %v15118_v50  ;;  %12663 = vmatmul.mubr.msk.f32.gmra.mxu0 %vm5839_vm6, %v15118_v50 }
 0xb89   : > { %12669 = vmatprep.mubr.msk.f32.mxu1 %vm5839_vm6, %v15094_v14  ;;  %12668 = vmatpush3.msra.mxu1 %v13735_v11 }
 0xb8a   : > { %12683 = vmatprep.subr.msk.mxu1 %vm5562_vm4, %v13717_v2  ;;  %12677 = vmatprep.mubr.msk.f32.mxu0 %vm5549_vm5, %v11332_v23 }
 0xb8c   : > { %12670 = vmatmul.mubr.msk.f32.vlgmr.msra.gmra.mxu1 %vm5839_vm6, %v15100_v57  ;;  %12678 = vmatmul.mubr.msk.f32.vlgmr.msra.gmra.mxu0 %vm5549_vm5, %v11333_v29 }
 0xb8d   : > { %12672 = vmatprep.mubr.msk.f32.mxu1 %vm5839_vm6, %v15109_v51  ;;  %12684 = vmatpush3.msk.msra.mxu1 %vm5562_vm4, %v13717_v2 }
 0xb8e   : > { %12699 = vmatprep.subr.mxu1 %v13729_v8  ;;  %12692 = vmatpush3.msk.msra.mxu0 %vm5562_vm4, %v13719_v3 }
 0xb8f   : > { %12709 = vmatprep.subr.mxu0 %v13733_v10  ;;  %12680 = vmatprep.mubr.msk.f32.mxu0 %vm5549_vm5, %v11334_v26 }
 0xb90   : > { %12673 = vmatmul.mubr.msk.f32.gmra.mxu1 %vm5839_vm6, %v15118_v50  ;;  %12681 = vmatmul.mubr.msk.f32.gmra.mxu0 %vm5549_vm5, %v11335_v58 }
 0xb91   : > { %12685 = vmatprep.mubr.msk.f32.mxu1 %vm5549_vm5, %v11332_v23  ;;  %12693 = vmatprep.mubr.msk.f32.mxu0 %vm5549_vm5, %v11332_v23 }
 0xb94   : > { %12686 = vmatmul.mubr.msk.f32.vlgmr.msra.gmra.mxu1 %vm5549_vm5, %v11333_v29  ;;  %12694 = vmatmul.mubr.msk.f32.vlgmr.msra.gmra.mxu0 %vm5549_vm5, %v11333_v29 }
 0xb95   : > { %12700 = vmatpush3.msra.mxu1 %v13729_v8  ;;  %12688 = vmatprep.mubr.msk.f32.mxu1 %vm5549_vm5, %v11334_v26 }
 0xb96   : > { %12701 = vmatprep.subr.mxu1 %v13727_v7  ;;  %12696 = vmatprep.mubr.msk.f32.mxu0 %vm5549_vm5, %v11334_v26 }
 0xb97   : > { %12702 = vmatpush3.msra.mxu1 %v13727_v7  ;;  %12710 = vmatpush3.msra.mxu0 %v13733_v10 }
 0xb98   : > { %12689 = vmatmul.mubr.msk.f32.gmra.mxu1 %vm5549_vm5, %v11335_v58  ;;  %12719 = vmatprep.subr.mxu1 %v13737_v12 }
 0xb99   : > { %12711 = vmatprep.subr.mxu0 %v13731_v9  ;;  %12697 = vmatmul.mubr.msk.f32.gmra.mxu0 %vm5549_vm5, %v11335_v58 }
 0xb9a   : > { %12712 = vmatpush3.msra.mxu0 %v13731_v9 }
 0xb9b   : > { %12729 = vmatprep.subr.msk.mxu0 %vm5562_vm4, %v13715_v1 }
 0xc44   : > { %v12651_v16 = vpop.f32.mrf.mxu1  ;;  %v12661_v25 = vpop.f32.mrf.mxu0 }
 0xc45   : > { %v7925_v62 = vadd.f32 %v12651_v16, %v7559_v4  ;;  %v7953_v41 = vadd.f32 %v12661_v25, %v7644_v48 }
 0xc46   : > { %v7820_v13 = vpop.f32.mrf.mxu1  ;;  %v7905_v27 = vpop.f32.mrf.mxu0 }
 0xc47   : > { %v11317_v21 = vmul.f32 -1.442695, %v7925_v62  ;;  %v7924_v28 = vadd.f32 %v7820_v13, %v7554_v47  ;;  %v7952_v20 = vadd.f32 %v7905_v27, %v7639_v5  ;;  %v11321_v40 = vmul.f32 -1.442695, %v7953_v41 }
 0xc48   : > { %v12654_v42 = vpop.f32.mrf.mxu1  ;;  %v12664_v36 = vpop.f32.mrf.mxu0  ;;  %v7729_v62 = vadd.f32 %v15166_v61, %v14832_v59 }
 0xc49   : > { %13375 = vpow2.f32 %v11317_v21  ;;  %v11316_v49 = vmul.f32 -1.442695, %v7924_v28  ;;  %v7927_v6 = vadd.f32 %v12654_v42, %v7569_v32  ;;  %v7955_v17 = vadd.f32 %v12664_v36, %v7654_v52 }
 0xc4a   : > { %v7830_v63 = vpop.f32.mrf.mxu1  ;;  %v7915_v15 = vpop.f32.mrf.mxu0  ;;  %v11320_v18 = vmul.f32 -1.442695, %v7952_v20 }
 0xc4b   : > { %13377 = vpow2.f32 %v11316_v49  ;;  %v11319_v22 = vmul.f32 -1.442695, %v7927_v6  ;;  %v7926_v53 = vadd.f32 %v7830_v63, %v7564_v60  ;;  %v7954_v34 = vadd.f32 %v7915_v15, %v7649_v37 }
 0xc4c   : > { %v11323_v26 = vmul.f32 -1.442695, %v7955_v17  ;;  %v12671_v33 = vpop.f32.mrf.mxu1  ;;  %v7724_v49 = vadd.f32 %v15168_v55, %v14832_v59  ;;  %v7734_v55 = vadd.f32 %v15173_v38, %v14832_v59 }
 0xc4d   : > { %13379 = vpow2.f32 %v11319_v22  ;;  %v11318_v45 = vmul.f32 -1.442695, %v7926_v53  ;;  %v11322_v43 = vmul.f32 -1.442695, %v7954_v34  ;;  %v8052_v16 = vadd.f32 %v12671_v33, %v14828_v54 }
 0xc4e   : > { %v8046_v31 = vpop.f32.mrf.mxu1  ;;  %v7739_v53 = vadd.f32 %v15170_v46, %v14832_v59 }
 0xc4f   : > { %13381 = vpow2.f32 %v11318_v45  ;;  %v8047_v21 = vadd.f32 %v8046_v31, %v14828_v54 }
 0xc50   : > { %13383 = vpow2.f32 %v11321_v40  ;;  %v12674_v4 = vpop.f32.mrf.mxu1 }
 0xc51   : > { %v8062_v27 = vadd.f32 %v12674_v4, %v14828_v54 }
 0xc52   : > { %v8056_v42 = vpop.f32.mrf.mxu1 }
 0xc53   : > { %v8057_v5 = vadd.f32 %v8056_v42, %v14828_v54 }
 0xc56   : > { %v13376_v19 = vpop.eup %13375 }
 0xc57   : > { %v7941_v23 = vadd.f32 1.0, %v13376_v19 }
 0xc58   : > { %v13378_v29 = vpop.eup %13377 }
 0xc59   : > { %13385 = vrcp.f32 %v7941_v23  ;;  %v7940_v58 = vadd.f32 1.0, %v13378_v29 }
 0xc5a   : > { %v13380_v56 = vpop.eup %13379  ;;  %13387 = vpow2.f32 %v11320_v18 }
 0xc5b   : > { %13389 = vrcp.f32 %v7940_v58  ;;  %v7943_v39 = vadd.f32 1.0, %v13380_v56 }
 0xc5c   : > { %v13382_v0 = vpop.eup %13381  ;;  %13391 = vpow2.f32 %v11323_v26 }
 0xc5d   : > { %13393 = vrcp.f32 %v7943_v39  ;;  %v7942_v35 = vadd.f32 1.0, %v13382_v0  ;;  %v13384_v30 = vpop.eup %13383 }
 0xc5e   : > { %13395 = vpow2.f32 %v11322_v43  ;;  %v7969_v28 = vadd.f32 1.0, %v13384_v30 }
 0xc5f   : > { %13397 = vrcp.f32 %v7942_v35 }
 0xc66   : > { %v13386_v47 = vpop.eup %13385 }
 0xc67   : > { %v13388_v32 = vpop.eup %13387  ;;  %v8066_v13 = vmul.f32 %v13386_v47, %v8052_v16  ;;  %v11375_v47 = vld [vmem:[%s13706_s8 + $0x40] sm:$0xff] }
 0xc68   : > { %v13390_v25 = vpop.eup %13389  ;;  %v7968_v45 = vadd.f32 1.0, %v13388_v32  ;;  %v11376_v32 = vld [vmem:[%s13706_s8 + $0x48] sm:$0xff] }
 0xc69   : > { %v13392_v60 = vpop.eup %13391  ;;  %v8070_v6 = vadd.f32 %v8066_v13, %v7729_v62  ;;  %v8065_v63 = vmul.f32 %v13390_v25, %v8047_v21  ;;  %v11377_v62 = vld [vmem:[%s13706_s8 + $0x50] sm:$0xff]  ;;  %v11378_v13 = vld [vmem:[%s13706_s8 + $0x58] sm:$0xff]  ;;  %v12679_v21 = vpop.f32.mrf.mxu0 }
 0xc6a   : > { %v13394_v22 = vpop.eup %13393  ;;  %v7971_v52 = vadd.f32 1.0, %v13392_v60  ;;  %v12687_v60 = vpop.f32.mrf.mxu1 }
 0xc6b   : > { %v13396_v61 = vpop.eup %13395  ;;  %13399 = vtanh.f32 %v8070_v6  ;;  %v8069_v48 = vadd.f32 %v8065_v63, %v7724_v49  ;;  %v8068_v36 = vmul.f32 %v13394_v22, %v8062_v27  ;;  %v8185_v25 = vpop.f32.mrf.mxu0 }
 0xc6c   : > { %v13398_v41 = vpop.eup %13397  ;;  %13401 = vrcp.f32 %v7969_v28  ;;  %v7970_v37 = vadd.f32 1.0, %v13396_v61  ;;  %v8270_v6 = vpop.f32.mrf.mxu1 }
 0xc6d   : > { %13403 = vtanh.f32 %v8069_v48  ;;  %v8072_v20 = vadd.f32 %v8068_v36, %v7739_v53  ;;  %v8067_v15 = vmul.f32 %v13398_v41, %v8057_v5  ;;  %v12682_v28 = vpop.f32.mrf.mxu0  ;;  %v8191_v53 = vadd.f32 %v12679_v21, %v14804_v24 }
 0xc6e   : > { %13405 = vrcp.f32 %v7968_v45  ;;  %v12690_v27 = vpop.f32.mrf.mxu1  ;;  %v8186_v36 = vadd.f32 %v8185_v25, %v14804_v24  ;;  %v8201_v5 = vadd.f32 %v12682_v28, %v14804_v24 }
 0xc6f   : > { %13407 = vtanh.f32 %v8072_v20  ;;  %v8071_v46 = vadd.f32 %v8067_v15, %v7734_v55  ;;  %v8195_v42 = vpop.f32.mrf.mxu0 }
 0xc70   : > { %13409 = vrcp.f32 %v7971_v52  ;;  %v8280_v45 = vpop.f32.mrf.mxu1 }
 0xc71   : > { %13411 = vtanh.f32 %v8071_v46  ;;  %v15282_v49 = vpop.f32.mrf.mxu0  ;;  %v8196_v46 = vadd.f32 %v8195_v42, %v14804_v24 }
 0xc72   : > { %13413 = vrcp.f32 %v7970_v37 }
 0xc73   : > { %v15284_v63 = vpop.f32.mrf.mxu0 }
 0xc75   : > { %v15286_v22 = vpop.f32.mrf.mxu0 }
 0xc77   : > { %v15289_v61 = vpop.f32.mrf.mxu0 }
 0xc78   : > { %v13400_v40 = vpop.eup %13399 }
 0xc79   : > { %v13402_v17 = vpop.eup %13401  ;;  %v8078_v19 = vsub.f32 %v15100_v57, %v13400_v40 }
 0xc7a   : > { %v13404_v18 = vpop.eup %13403 }
 0xc7b   : > { %v13406_v34 = vpop.eup %13405  ;;  %v8082_v23 = vmul.f32 %v13402_v17, %v8078_v19  ;;  %v8077_v38 = vsub.f32 %v15094_v14, %v13404_v18 }
 0xc7c   : > { %v13408_v29 = vpop.eup %13407 }
 0xc7d   : > { %v13410_v26 = vpop.eup %13409  ;;  %v8086_v58 = vadd.f32 %v13400_v40, %v8082_v23  ;;  %v8081_v56 = vmul.f32 %v13406_v34, %v8077_v38  ;;  %v8080_v43 = vsub.f32 %v15118_v50, %v13408_v29 }
 0xc7e   : > { %v13412_v39 = vpop.eup %13411 }
 0xc7f   : > { %8090 = vst.msk [vmem:[#allocation2 + $0x8] sm:$0xff] %vm5839_vm6, %v8086_v58  ;;  %11329 = vst.msk [vmem:[%s13712_s13 + $0x88] sm:$0xff] %vm5839_vm6, %v8086_v58  ;;  %v8085_v57 = vadd.f32 %v13404_v18, %v8081_v56  ;;  %v8084_v0 = vmul.f32 %v13410_v26, %v8080_v43  ;;  %v8079_v33 = vsub.f32 %v15109_v51, %v13412_v39  ;;  %v13414_v35 = vpop.eup %13413 }
 0xc80   : > { %v8271_v58 = vadd.f32 %v8270_v6, %v14818_v44  ;;  %v8286_v43 = vadd.f32 %v12690_v27, %v14818_v44 }
 0xc81   : > { %8089 = vst.msk [vmem:[#allocation2] sm:$0xff] %vm5839_vm6, %v8085_v57  ;;  %11328 = vst.msk [vmem:[%s13712_s13 + $0x80] sm:$0xff] %vm5839_vm6, %v8085_v57  ;;  %v8088_v14 = vadd.f32 %v13408_v29, %v8084_v0  ;;  %v8083_v31 = vmul.f32 %v13414_v35, %v8079_v33  ;;  %v8276_v29 = vadd.f32 %v12687_v60, %v14818_v44 }
 0xc82   : > { %v8281_v0 = vadd.f32 %v8280_v45, %v14818_v44 }
 0xc83   : > { %8092 = vst.msk [vmem:[#allocation2 + $0x18] sm:$0xff] %vm5839_vm6, %v8088_v14  ;;  %11331 = vst.msk [vmem:[%s13712_s13 + $0x98] sm:$0xff] %vm5839_vm6, %v8088_v14  ;;  %v8087_v50 = vadd.f32 %v13412_v39, %v8083_v31 }
 0xc85   : > { %8091 = vst.msk [vmem:[#allocation2 + $0x10] sm:$0xff] %vm5839_vm6, %v8087_v50  ;;  %11330 = vst.msk [vmem:[%s13712_s13 + $0x90] sm:$0xff] %vm5839_vm6, %v8087_v50 }
 0xc86   : > { %v15216_v51 = vld [vmem:[#allocation2 + $0x8] sm:$0xff] }
 0xc88   : > { %v15210_v4 = vld [vmem:[#allocation2] sm:$0xff] }
 0xc89   : > { %12703 = vmatprep.mubr.msk.f32.mxu1 %vm5839_vm6, %v15210_v4  ;;  %12713 = vmatprep.mubr.msk.f32.mxu0 %vm5839_vm6, %v15210_v4 }
 0xc8a   : > { %12704 = vmatmul.mubr.msk.f32.vlgmr.msra.gmra.mxu1 %vm5839_vm6, %v15216_v51  ;;  %12714 = vmatmul.mubr.msk.f32.vlgmr.msra.gmra.mxu0 %vm5839_vm6, %v15216_v51  ;;  %v15234_v16 = vld [vmem:[#allocation2 + $0x18] sm:$0xff] }
 0xc8b   : > { %12720 = vmatpush3.msra.mxu1 %v13737_v12  ;;  %12730 = vmatpush3.msk.msra.mxu0 %vm5562_vm4, %v13715_v1 }
 0xc8c   : > { %v15225_v30 = vld [vmem:[#allocation2 + $0x10] sm:$0xff]  ;;  %12721 = vmatprep.subr.mxu1 %v13735_v11  ;;  %12745 = vmatprep.subr.msk.mxu0 %vm5562_vm4, %v13719_v3 }
 0xc8d   : > { %12706 = vmatprep.mubr.msk.f32.mxu1 %vm5839_vm6, %v15225_v30  ;;  %12716 = vmatprep.mubr.msk.f32.mxu0 %vm5839_vm6, %v15225_v30 }
 0xc8e   : > { %12707 = vmatmul.mubr.msk.f32.gmra.mxu1 %vm5839_vm6, %v15234_v16  ;;  %12717 = vmatmul.mubr.msk.f32.gmra.mxu0 %vm5839_vm6, %v15234_v16 }
 0xc8f   : > { %12723 = vmatprep.mubr.msk.f32.mxu1 %vm5839_vm6, %v15210_v4  ;;  %12722 = vmatpush3.msra.mxu1 %v13735_v11 }
 0xc90   : > { %12737 = vmatprep.subr.msk.mxu1 %vm5562_vm4, %v13717_v2  ;;  %12731 = vmatprep.mubr.msk.f32.mxu0 %vm5549_vm5, %v11375_v47 }
 0xc92   : > { %12724 = vmatmul.mubr.msk.f32.vlgmr.msra.gmra.mxu1 %vm5839_vm6, %v15216_v51  ;;  %12732 = vmatmul.mubr.msk.f32.vlgmr.msra.gmra.mxu0 %vm5549_vm5, %v11376_v32 }
 0xc93   : > { %12726 = vmatprep.mubr.msk.f32.mxu1 %vm5839_vm6, %v15225_v30  ;;  %12738 = vmatpush3.msk.msra.mxu1 %vm5562_vm4, %v13717_v2 }
 0xc94   : > { %12753 = vmatprep.subr.mxu1 %v13729_v8  ;;  %12746 = vmatpush3.msk.msra.mxu0 %vm5562_vm4, %v13719_v3 }
 0xc95   : > { %12763 = vmatprep.subr.mxu0 %v13733_v10  ;;  %12734 = vmatprep.mubr.msk.f32.mxu0 %vm5549_vm5, %v11377_v62 }
 0xc96   : > { %12727 = vmatmul.mubr.msk.f32.gmra.mxu1 %vm5839_vm6, %v15234_v16  ;;  %12735 = vmatmul.mubr.msk.f32.gmra.mxu0 %vm5549_vm5, %v11378_v13 }
 0xc97   : > { %12739 = vmatprep.mubr.msk.f32.mxu1 %vm5549_vm5, %v11375_v47  ;;  %12747 = vmatprep.mubr.msk.f32.mxu0 %vm5549_vm5, %v11375_v47 }
 0xc9a   : > { %12740 = vmatmul.mubr.msk.f32.vlgmr.msra.gmra.mxu1 %vm5549_vm5, %v11376_v32  ;;  %12748 = vmatmul.mubr.msk.f32.vlgmr.msra.gmra.mxu0 %vm5549_vm5, %v11376_v32 }
 0xc9b   : > { %12754 = vmatpush3.msra.mxu1 %v13729_v8  ;;  %12742 = vmatprep.mubr.msk.f32.mxu1 %vm5549_vm5, %v11377_v62 }
 0xc9c   : > { %12755 = vmatprep.subr.mxu1 %v13727_v7  ;;  %12750 = vmatprep.mubr.msk.f32.mxu0 %vm5549_vm5, %v11377_v62 }
 0xc9d   : > { %12756 = vmatpush3.msra.mxu1 %v13727_v7  ;;  %12764 = vmatpush3.msra.mxu0 %v13733_v10 }
 0xc9e   : > { %12743 = vmatmul.mubr.msk.f32.gmra.mxu1 %vm5549_vm5, %v11378_v13  ;;  %12773 = vmatprep.subr.mxu1 %v13737_v12 }
 0xc9f   : > { %12765 = vmatprep.subr.mxu0 %v13731_v9  ;;  %12751 = vmatmul.mubr.msk.f32.gmra.mxu0 %vm5549_vm5, %v11378_v13 }
 0xca0   : > { %12766 = vmatpush3.msra.mxu0 %v13731_v9 }
 0xca1   : > { %12783 = vmatprep.subr.msk.mxu0 %vm5562_vm4, %v13715_v1 }
 0xd4a   : > { %v12705_v48 = vpop.f32.mrf.mxu1  ;;  %v12715_v20 = vpop.f32.mrf.mxu0 }
 0xd4b   : > { %v8557_v41 = vadd.f32 %v12705_v48, %v8191_v53  ;;  %v8585_v56 = vadd.f32 %v12715_v20, %v8276_v29 }
 0xd4c   : > { %v8452_v52 = vpop.f32.mrf.mxu1  ;;  %v8537_v18 = vpop.f32.mrf.mxu0 }
 0xd4d   : > { %v11360_v55 = vmul.f32 -1.442695, %v8557_v41  ;;  %v8556_v15 = vadd.f32 %v8452_v52, %v8186_v36  ;;  %v8584_v39 = vadd.f32 %v8537_v18, %v8271_v58  ;;  %v11364_v33 = vmul.f32 -1.442695, %v8585_v56 }
 0xd4e   : > { %v12708_v37 = vpop.f32.mrf.mxu1  ;;  %v12718_v26 = vpop.f32.mrf.mxu0  ;;  %v8361_v41 = vadd.f32 %v15282_v49, %v14832_v59 }
 0xd4f   : > { %13415 = vpow2.f32 %v11360_v55  ;;  %v11359_v40 = vmul.f32 -1.442695, %v8556_v15  ;;  %v8559_v17 = vadd.f32 %v12708_v37, %v8201_v5  ;;  %v8587_v35 = vadd.f32 %v12718_v26, %v8286_v43 }
 0xd50   : > { %v8462_v19 = vpop.f32.mrf.mxu1  ;;  %v8547_v57 = vpop.f32.mrf.mxu0  ;;  %v11363_v31 = vmul.f32 -1.442695, %v8584_v39 }
 0xd51   : > { %13417 = vpow2.f32 %v11359_v40  ;;  %v11362_v34 = vmul.f32 -1.442695, %v8559_v17  ;;  %v8558_v23 = vadd.f32 %v8462_v19, %v8196_v46  ;;  %v8586_v50 = vadd.f32 %v8547_v57, %v8281_v0 }
 0xd52   : > { %v11366_v62 = vmul.f32 -1.442695, %v8587_v35  ;;  %v12725_v60 = vpop.f32.mrf.mxu1  ;;  %v8356_v40 = vadd.f32 %v15284_v63, %v14832_v59  ;;  %v8366_v63 = vadd.f32 %v15289_v61, %v14832_v59 }
 0xd53   : > { %13419 = vpow2.f32 %v11362_v34  ;;  %v11361_v38 = vmul.f32 -1.442695, %v8558_v23  ;;  %v11365_v25 = vmul.f32 -1.442695, %v8586_v50  ;;  %v8684_v48 = vadd.f32 %v12725_v60, %v14828_v54 }
 0xd54   : > { %v8678_v27 = vpop.f32.mrf.mxu1  ;;  %v8371_v23 = vadd.f32 %v15286_v22, %v14832_v59 }
 0xd55   : > { %13421 = vpow2.f32 %v11361_v38  ;;  %v8679_v55 = vadd.f32 %v8678_v27, %v14828_v54 }
 0xd56   : > { %13423 = vpow2.f32 %v11364_v33  ;;  %v12728_v53 = vpop.f32.mrf.mxu1 }
 0xd57   : > { %v8694_v18 = vadd.f32 %v12728_v53, %v14828_v54 }
 0xd58   : > { %v8688_v37 = vpop.f32.mrf.mxu1 }
 0xd59   : > { %v8689_v58 = vadd.f32 %v8688_v37, %v14828_v54 }
 0xd5c   : > { %v13416_v14 = vpop.eup %13415 }
 0xd5d   : > { %v8573_v47 = vadd.f32 1.0, %v13416_v14 }
 0xd5e   : > { %v13418_v32 = vpop.eup %13417 }
 0xd5f   : > { %13425 = vrcp.f32 %v8573_v47  ;;  %v8572_v13 = vadd.f32 1.0, %v13418_v32 }
 0xd60   : > { %v13420_v21 = vpop.eup %13419  ;;  %13427 = vpow2.f32 %v11363_v31 }
 0xd61   : > { %13429 = vrcp.f32 %v8572_v13  ;;  %v8575_v28 = vadd.f32 1.0, %v13420_v21 }
 0xd62   : > { %v13422_v42 = vpop.eup %13421  ;;  %13431 = vpow2.f32 %v11366_v62 }
 0xd63   : > { %13433 = vrcp.f32 %v8575_v28  ;;  %v8574_v6 = vadd.f32 1.0, %v13422_v42  ;;  %v13424_v45 = vpop.eup %13423 }
 0xd64   : > { %13435 = vpow2.f32 %v11365_v25  ;;  %v8601_v15 = vadd.f32 1.0, %v13424_v45 }
 0xd65   : > { %13437 = vrcp.f32 %v8574_v6 }
 0xd6c   : > { %v13426_v36 = vpop.eup %13425 }
 0xd6d   : > { %v13428_v5 = vpop.eup %13427  ;;  %v8698_v52 = vmul.f32 %v13426_v36, %v8684_v48  ;;  %v11418_v36 = vld [vmem:[%s13706_s8 + $0x20] sm:$0xff] }
 0xd6e   : > { %v13430_v20 = vpop.eup %13429  ;;  %v8600_v38 = vadd.f32 1.0, %v13428_v5  ;;  %v11419_v5 = vld [vmem:[%s13706_s8 + $0x28] sm:$0xff] }
 0xd6f   : > { %v13432_v46 = vpop.eup %13431  ;;  %v8702_v17 = vadd.f32 %v8698_v52, %v8361_v41  ;;  %v8697_v19 = vmul.f32 %v13430_v20, %v8679_v55  ;;  %v11420_v41 = vld [vmem:[%s13706_s8 + $0x30] sm:$0xff]  ;;  %v11421_v52 = vld [vmem:[%s13706_s8 + $0x38] sm:$0xff]  ;;  %v12733_v55 = vpop.f32.mrf.mxu0 }
 0xd70   : > { %v13434_v34 = vpop.eup %13433  ;;  %v8603_v43 = vadd.f32 1.0, %v13432_v46  ;;  %v12741_v46 = vpop.f32.mrf.mxu1 }
 0xd71   : > { %v13436_v49 = vpop.eup %13435  ;;  %13439 = vtanh.f32 %v8702_v17  ;;  %v8701_v29 = vadd.f32 %v8697_v19, %v8356_v40  ;;  %v8700_v26 = vmul.f32 %v13434_v34, %v8694_v18  ;;  %v8817_v20 = vpop.f32.mrf.mxu0 }
 0xd72   : > { %v13438_v56 = vpop.eup %13437  ;;  %13441 = vrcp.f32 %v8601_v15  ;;  %v8602_v0 = vadd.f32 1.0, %v13436_v49  ;;  %v8902_v17 = vpop.f32.mrf.mxu1 }
 0xd73   : > { %13443 = vtanh.f32 %v8701_v29  ;;  %v8704_v39 = vadd.f32 %v8700_v26, %v8371_v23  ;;  %v8699_v57 = vmul.f32 %v13438_v56, %v8689_v58  ;;  %v12736_v15 = vpop.f32.mrf.mxu0  ;;  %v8823_v23 = vadd.f32 %v12733_v55, %v14804_v24 }
 0xd74   : > { %13445 = vrcp.f32 %v8600_v38  ;;  %v12744_v18 = vpop.f32.mrf.mxu1  ;;  %v8818_v26 = vadd.f32 %v8817_v20, %v14804_v24  ;;  %v8833_v58 = vadd.f32 %v12736_v15, %v14804_v24 }
 0xd75   : > { %13447 = vtanh.f32 %v8704_v39  ;;  %v8703_v22 = vadd.f32 %v8699_v57, %v8366_v63  ;;  %v8827_v37 = vpop.f32.mrf.mxu0 }
 0xd76   : > { %13449 = vrcp.f32 %v8603_v43  ;;  %v8912_v38 = vpop.f32.mrf.mxu1 }
 0xd77   : > { %13451 = vtanh.f32 %v8703_v22  ;;  %v15398_v40 = vpop.f32.mrf.mxu0  ;;  %v8828_v22 = vadd.f32 %v8827_v37, %v14804_v24 }
 0xd78   : > { %13453 = vrcp.f32 %v8602_v0 }
 0xd79   : > { %v15400_v19 = vpop.f32.mrf.mxu0 }
 0xd7b   : > { %v15402_v34 = vpop.f32.mrf.mxu0 }
 0xd7d   : > { %v15405_v49 = vpop.f32.mrf.mxu0 }
 0xd7e   : > { %v13440_v33 = vpop.eup %13439 }
 0xd7f   : > { %v13442_v35 = vpop.eup %13441  ;;  %v8710_v14 = vsub.f32 %v15216_v51, %v13440_v33 }
 0xd80   : > { %v13444_v31 = vpop.eup %13443 }
 0xd81   : > { %v13446_v50 = vpop.eup %13445  ;;  %v8714_v47 = vmul.f32 %v13442_v35, %v8710_v14  ;;  %v8709_v61 = vsub.f32 %v15210_v4, %v13444_v31 }
 0xd82   : > { %v13448_v32 = vpop.eup %13447 }
 0xd83   : > { %v13450_v62 = vpop.eup %13449  ;;  %v8718_v13 = vadd.f32 %v13440_v33, %v8714_v47  ;;  %v8713_v21 = vmul.f32 %v13446_v50, %v8709_v61  ;;  %v8712_v25 = vsub.f32 %v15234_v16, %v13448_v32 }
 0xd84   : > { %v13452_v28 = vpop.eup %13451 }
 0xd85   : > { %8722 = vst.msk [vmem:[#allocation2 + $0x8] sm:$0xff] %vm5839_vm6, %v8718_v13  ;;  %11372 = vst.msk [vmem:[%s13712_s13 + $0x68] sm:$0xff] %vm5839_vm6, %v8718_v13  ;;  %v8717_v51 = vadd.f32 %v13444_v31, %v8713_v21  ;;  %v8716_v42 = vmul.f32 %v13450_v62, %v8712_v25  ;;  %v8711_v60 = vsub.f32 %v15225_v30, %v13452_v28  ;;  %v13454_v6 = vpop.eup %13453 }
 0xd86   : > { %v8903_v13 = vadd.f32 %v8902_v17, %v14818_v44  ;;  %v8918_v25 = vadd.f32 %v12744_v18, %v14818_v44 }
 0xd87   : > { %8721 = vst.msk [vmem:[#allocation2] sm:$0xff] %vm5839_vm6, %v8717_v51  ;;  %11371 = vst.msk [vmem:[%s13712_s13 + $0x60] sm:$0xff] %vm5839_vm6, %v8717_v51  ;;  %v8720_v4 = vadd.f32 %v13448_v32, %v8716_v42  ;;  %v8715_v27 = vmul.f32 %v13454_v6, %v8711_v60  ;;  %v8908_v32 = vadd.f32 %v12741_v46, %v14818_v44 }
 0xd88   : > { %v8913_v42 = vadd.f32 %v8912_v38, %v14818_v44 }
 0xd89   : > { %8724 = vst.msk [vmem:[#allocation2 + $0x18] sm:$0xff] %vm5839_vm6, %v8720_v4  ;;  %11374 = vst.msk [vmem:[%s13712_s13 + $0x78] sm:$0xff] %vm5839_vm6, %v8720_v4  ;;  %v8719_v16 = vadd.f32 %v13452_v28, %v8715_v27 }
 0xd8b   : > { %8723 = vst.msk [vmem:[#allocation2 + $0x10] sm:$0xff] %vm5839_vm6, %v8719_v16  ;;  %11373 = vst.msk [vmem:[%s13712_s13 + $0x70] sm:$0xff] %vm5839_vm6, %v8719_v16 }
 0xd8c   : > { %v15332_v30 = vld [vmem:[#allocation2 + $0x8] sm:$0xff] }
 0xd8e   : > { %v15326_v53 = vld [vmem:[#allocation2] sm:$0xff] }
 0xd8f   : > { %12757 = vmatprep.mubr.msk.f32.mxu1 %vm5839_vm6, %v15326_v53  ;;  %12767 = vmatprep.mubr.msk.f32.mxu0 %vm5839_vm6, %v15326_v53 }
 0xd90   : > { %12758 = vmatmul.mubr.msk.f32.vlgmr.msra.gmra.mxu1 %vm5839_vm6, %v15332_v30  ;;  %12768 = vmatmul.mubr.msk.f32.vlgmr.msra.gmra.mxu0 %vm5839_vm6, %v15332_v30  ;;  %v15350_v48 = vld [vmem:[#allocation2 + $0x18] sm:$0xff] }
 0xd91   : > { %12774 = vmatpush3.msra.mxu1 %v13737_v12  ;;  %12784 = vmatpush3.msk.msra.mxu0 %vm5562_vm4, %v13715_v1 }
 0xd92   : > { %v15341_v45 = vld [vmem:[#allocation2 + $0x10] sm:$0xff]  ;;  %12775 = vmatprep.subr.mxu1 %v13735_v11  ;;  %12799 = vmatprep.subr.msk.mxu0 %vm5562_vm4, %v13719_v3 }
 0xd93   : > { %12760 = vmatprep.mubr.msk.f32.mxu1 %vm5839_vm6, %v15341_v45  ;;  %12770 = vmatprep.mubr.msk.f32.mxu0 %vm5839_vm6, %v15341_v45 }
 0xd94   : > { %12761 = vmatmul.mubr.msk.f32.gmra.mxu1 %vm5839_vm6, %v15350_v48  ;;  %12771 = vmatmul.mubr.msk.f32.gmra.mxu0 %vm5839_vm6, %v15350_v48 }
 0xd95   : > { %12777 = vmatprep.mubr.msk.f32.mxu1 %vm5839_vm6, %v15326_v53  ;;  %12776 = vmatpush3.msra.mxu1 %v13735_v11 }
 0xd96   : > { %12791 = vmatprep.subr.msk.mxu1 %vm5562_vm4, %v13717_v2  ;;  %12785 = vmatprep.mubr.msk.f32.mxu0 %vm5549_vm5, %v11418_v36 }
 0xd98   : > { %12778 = vmatmul.mubr.msk.f32.vlgmr.msra.gmra.mxu1 %vm5839_vm6, %v15332_v30  ;;  %12786 = vmatmul.mubr.msk.f32.vlgmr.msra.gmra.mxu0 %vm5549_vm5, %v11419_v5 }
 0xd99   : > { %12780 = vmatprep.mubr.msk.f32.mxu1 %vm5839_vm6, %v15341_v45  ;;  %12792 = vmatpush3.msk.msra.mxu1 %vm5562_vm4, %v13717_v2 }
 0xd9a   : > { %12807 = vmatprep.subr.mxu1 %v13729_v8  ;;  %12800 = vmatpush3.msk.msra.mxu0 %vm5562_vm4, %v13719_v3 }
 0xd9b   : > { %12817 = vmatprep.subr.mxu0 %v13733_v10  ;;  %12788 = vmatprep.mubr.msk.f32.mxu0 %vm5549_vm5, %v11420_v41 }
 0xd9c   : > { %12781 = vmatmul.mubr.msk.f32.gmra.mxu1 %vm5839_vm6, %v15350_v48  ;;  %12789 = vmatmul.mubr.msk.f32.gmra.mxu0 %vm5549_vm5, %v11421_v52 }
 0xd9d   : > { %12793 = vmatprep.mubr.msk.f32.mxu1 %vm5549_vm5, %v11418_v36  ;;  %12801 = vmatprep.mubr.msk.f32.mxu0 %vm5549_vm5, %v11418_v36 }
 0xda0   : > { %12794 = vmatmul.mubr.msk.f32.vlgmr.msra.gmra.mxu1 %vm5549_vm5, %v11419_v5  ;;  %12802 = vmatmul.mubr.msk.f32.vlgmr.msra.gmra.mxu0 %vm5549_vm5, %v11419_v5 }
 0xda1   : > { %12808 = vmatpush3.msra.mxu1 %v13729_v8  ;;  %12796 = vmatprep.mubr.msk.f32.mxu1 %vm5549_vm5, %v11420_v41 }
 0xda2   : > { %12809 = vmatprep.subr.mxu1 %v13727_v7  ;;  %12804 = vmatprep.mubr.msk.f32.mxu0 %vm5549_vm5, %v11420_v41 }
 0xda3   : > { %12810 = vmatpush3.msra.mxu1 %v13727_v7  ;;  %12818 = vmatpush3.msra.mxu0 %v13733_v10 }
 0xda4   : > { %12797 = vmatmul.mubr.msk.f32.gmra.mxu1 %vm5549_vm5, %v11421_v52  ;;  %12827 = vmatprep.subr.mxu1 %v13737_v12 }
 0xda5   : > { %12819 = vmatprep.subr.mxu0 %v13731_v9  ;;  %12805 = vmatmul.mubr.msk.f32.gmra.mxu0 %vm5549_vm5, %v11421_v52 }
 0xda6   : > { %12820 = vmatpush3.msra.mxu0 %v13731_v9 }
 0xda7   : > { %12837 = vmatprep.subr.msk.mxu0 %vm5562_vm4, %v13715_v1 }
 0xe50   : > { %v12759_v29 = vpop.f32.mrf.mxu1  ;;  %v12769_v39 = vpop.f32.mrf.mxu0 }
 0xe51   : > { %v9189_v56 = vadd.f32 %v12759_v29, %v8823_v23  ;;  %v9217_v21 = vadd.f32 %v12769_v39, %v8908_v32 }
 0xe52   : > { %v9084_v43 = vpop.f32.mrf.mxu1  ;;  %v9169_v31 = vpop.f32.mrf.mxu0 }
 0xe53   : > { %v11403_v63 = vmul.f32 -1.442695, %v9189_v56  ;;  %v9188_v57 = vadd.f32 %v9084_v43, %v8818_v26  ;;  %v9216_v28 = vadd.f32 %v9169_v31, %v8903_v13  ;;  %v11407_v60 = vmul.f32 -1.442695, %v9217_v21 }
 0xe54   : > { %v12762_v0 = vpop.f32.mrf.mxu1  ;;  %v12772_v62 = vpop.f32.mrf.mxu0  ;;  %v8993_v56 = vadd.f32 %v15398_v40, %v14832_v59 }
 0xe55   : > { %13455 = vpow2.f32 %v11403_v63  ;;  %v11402_v33 = vmul.f32 -1.442695, %v9188_v57  ;;  %v9191_v35 = vadd.f32 %v12762_v0, %v8833_v58  ;;  %v9219_v6 = vadd.f32 %v12772_v62, %v8918_v25 }
 0xe56   : > { %v9094_v14 = vpop.f32.mrf.mxu1  ;;  %v9179_v51 = vpop.f32.mrf.mxu0  ;;  %v11406_v27 = vmul.f32 -1.442695, %v9216_v28 }
 0xe57   : > { %13457 = vpow2.f32 %v11402_v33  ;;  %v11405_v50 = vmul.f32 -1.442695, %v9191_v35  ;;  %v9190_v47 = vadd.f32 %v9094_v14, %v8828_v22  ;;  %v9218_v16 = vadd.f32 %v9179_v51, %v8913_v42 }
 0xe58   : > { %v11409_v41 = vmul.f32 -1.442695, %v9219_v6  ;;  %v12779_v46 = vpop.f32.mrf.mxu1  ;;  %v8988_v33 = vadd.f32 %v15400_v19, %v14832_v59  ;;  %v8998_v19 = vadd.f32 %v15405_v49, %v14832_v59 }
 0xe59   : > { %13459 = vpow2.f32 %v11405_v50  ;;  %v11404_v61 = vmul.f32 -1.442695, %v9190_v47  ;;  %v11408_v20 = vmul.f32 -1.442695, %v9218_v16  ;;  %v9316_v29 = vadd.f32 %v12779_v46, %v14828_v54 }
 0xe5a   : > { %v9310_v18 = vpop.f32.mrf.mxu1  ;;  %v9003_v47 = vadd.f32 %v15402_v34, %v14832_v59 }
 0xe5b   : > { %13461 = vpow2.f32 %v11404_v61  ;;  %v9311_v63 = vadd.f32 %v9310_v18, %v14828_v54 }
 0xe5c   : > { %13463 = vpow2.f32 %v11407_v60  ;;  %v12782_v23 = vpop.f32.mrf.mxu1 }
 0xe5d   : > { %v9326_v31 = vadd.f32 %v12782_v23, %v14828_v54 }
 0xe5e   : > { %v9320_v0 = vpop.f32.mrf.mxu1 }
 0xe5f   : > { %v9321_v13 = vadd.f32 %v9320_v0, %v14828_v54 }
 0xe62   : > { %v13456_v4 = vpop.eup %13455 }
 0xe63   : > { %v9205_v36 = vadd.f32 1.0, %v13456_v4 }
 0xe64   : > { %v13458_v5 = vpop.eup %13457 }
 0xe65   : > { %13465 = vrcp.f32 %v9205_v36  ;;  %v9204_v52 = vadd.f32 1.0, %v13458_v5 }
 0xe66   : > { %v13460_v55 = vpop.eup %13459  ;;  %13467 = vpow2.f32 %v11406_v27 }
 0xe67   : > { %13469 = vrcp.f32 %v9204_v52  ;;  %v9207_v15 = vadd.f32 1.0, %v13460_v55 }
 0xe68   : > { %v13462_v37 = vpop.eup %13461  ;;  %13471 = vpow2.f32 %v11409_v41 }
 0xe69   : > { %13473 = vrcp.f32 %v9207_v15  ;;  %v9206_v17 = vadd.f32 1.0, %v13462_v37  ;;  %v13464_v38 = vpop.eup %13463 }
 0xe6a   : > { %13475 = vpow2.f32 %v11408_v20  ;;  %v9233_v57 = vadd.f32 1.0, %v13464_v38 }
 0xe6b   : > { %13477 = vrcp.f32 %v9206_v17 }
 0xe72   : > { %v13466_v26 = vpop.eup %13465 }
 0xe73   : > { %v13468_v58 = vpop.eup %13467  ;;  %v9330_v43 = vmul.f32 %v13466_v26, %v9316_v29  ;;  %v9995_v26 = vld [vmem:[%s13706_s8 + $0x8] sm:$0xff] }
 0xe74   : > { %v13470_v39 = vpop.eup %13469  ;;  %v9232_v61 = vadd.f32 1.0, %v13468_v58  ;;  %v9997_v58 = vld [vmem:[%s13706_s8 + $0x18] sm:$0xff] }
 0xe75   : > { %v13472_v22 = vpop.eup %13471  ;;  %v9334_v35 = vadd.f32 %v9330_v43, %v8993_v56  ;;  %v9329_v14 = vmul.f32 %v13470_v39, %v9311_v63  ;;  %v12795_v63 = vpop.f32.mrf.mxu1 }
 0xe76   : > { %v13474_v50 = vpop.eup %13473  ;;  %v9235_v25 = vadd.f32 1.0, %v13472_v22 }
 0xe77   : > { %v13476_v40 = vpop.eup %13475  ;;  %13479 = vtanh.f32 %v9334_v35  ;;  %v9333_v32 = vadd.f32 %v9329_v14, %v8988_v33  ;;  %v9332_v62 = vmul.f32 %v13474_v50, %v9326_v31  ;;  %v9534_v39 = vpop.f32.mrf.mxu1 }
 0xe78   : > { %v13478_v21 = vpop.eup %13477  ;;  %13481 = vrcp.f32 %v9233_v57  ;;  %v9234_v42 = vadd.f32 1.0, %v13476_v40 }
 0xe79   : > { %13483 = vtanh.f32 %v9333_v32  ;;  %v9336_v28 = vadd.f32 %v9332_v62, %v9003_v47  ;;  %v9331_v51 = vmul.f32 %v13478_v21, %v9321_v13  ;;  %v12798_v0 = vpop.f32.mrf.mxu1 }
 0xe7a   : > { %13485 = vrcp.f32 %v9232_v61 }
 0xe7b   : > { %13487 = vtanh.f32 %v9336_v28  ;;  %v9335_v34 = vadd.f32 %v9331_v51, %v8998_v19  ;;  %v9544_v33 = vpop.f32.mrf.mxu1 }
 0xe7c   : > { %13489 = vrcp.f32 %v9235_v25 }
 0xe7d   : > { %13491 = vtanh.f32 %v9335_v34 }
 0xe7e   : > { %13493 = vrcp.f32 %v9234_v42 }
 0xe84   : > { %v13480_v60 = vpop.eup %13479 }
 0xe85   : > { %v13482_v6 = vpop.eup %13481  ;;  %v9342_v4 = vsub.f32 %v15332_v30, %v13480_v60 }
 0xe86   : > { %v13484_v27 = vpop.eup %13483 }
 0xe87   : > { %v13486_v16 = vpop.eup %13485  ;;  %v9346_v36 = vmul.f32 %v13482_v6, %v9342_v4  ;;  %v9341_v49 = vsub.f32 %v15326_v53, %v13484_v27  ;;  %v9535_v4 = vadd.f32 %v9534_v39, %v14818_v44 }
 0xe88   : > { %v13488_v5 = vpop.eup %13487 }
 0xe89   : > { %v13490_v41 = vpop.eup %13489  ;;  %v9350_v52 = vadd.f32 %v13480_v60, %v9346_v36  ;;  %v9345_v55 = vmul.f32 %v13486_v16, %v9341_v49  ;;  %v9344_v20 = vsub.f32 %v15350_v48, %v13488_v5  ;;  %v9540_v60 = vadd.f32 %v12795_v63, %v14818_v44 }
 0xe8a   : > { %v13492_v15 = vpop.eup %13491  ;;  %v9550_v16 = vadd.f32 %v12798_v0, %v14818_v44 }
 0xe8b   : > { %9354 = vst.msk [vmem:[#allocation2 + $0x8] sm:$0xff] %vm5839_vm6, %v9350_v52  ;;  %11415 = vst.msk [vmem:[%s13712_s13 + $0x48] sm:$0xff] %vm5839_vm6, %v9350_v52  ;;  %v9349_v30 = vadd.f32 %v13484_v27, %v9345_v55  ;;  %v9348_v37 = vmul.f32 %v13490_v41, %v9344_v20  ;;  %v9343_v46 = vsub.f32 %v15341_v45, %v13492_v15  ;;  %v13494_v17 = vpop.eup %13493 }
 0xe8d   : > { %9353 = vst.msk [vmem:[#allocation2] sm:$0xff] %vm5839_vm6, %v9349_v30  ;;  %11414 = vst.msk [vmem:[%s13712_s13 + $0x40] sm:$0xff] %vm5839_vm6, %v9349_v30  ;;  %v9352_v53 = vadd.f32 %v13488_v5, %v9348_v37  ;;  %v9347_v18 = vmul.f32 %v13494_v17, %v9343_v46  ;;  %v9545_v5 = vadd.f32 %v9544_v33, %v14818_v44 }
 0xe8f   : > { %9356 = vst.msk [vmem:[#allocation2 + $0x18] sm:$0xff] %vm5839_vm6, %v9352_v53  ;;  %11417 = vst.msk [vmem:[%s13712_s13 + $0x58] sm:$0xff] %vm5839_vm6, %v9352_v53  ;;  %v9351_v48 = vadd.f32 %v13492_v15, %v9347_v18 }
 0xe91   : > { %9355 = vst.msk [vmem:[#allocation2 + $0x10] sm:$0xff] %vm5839_vm6, %v9351_v48  ;;  %11416 = vst.msk [vmem:[%s13712_s13 + $0x50] sm:$0xff] %vm5839_vm6, %v9351_v48 }
 0xe92   : > { %v15448_v45 = vld [vmem:[#allocation2 + $0x8] sm:$0xff] }
 0xe94   : > { %v15442_v23 = vld [vmem:[#allocation2] sm:$0xff] }
 0xe95   : > { %12811 = vmatprep.mubr.msk.f32.mxu1 %vm5839_vm6, %v15442_v23  ;;  %12821 = vmatprep.mubr.msk.f32.mxu0 %vm5839_vm6, %v15442_v23 }
 0xe96   : > { %12812 = vmatmul.mubr.msk.f32.vlgmr.msra.gmra.mxu1 %vm5839_vm6, %v15448_v45  ;;  %12822 = vmatmul.mubr.msk.f32.vlgmr.msra.gmra.mxu0 %vm5839_vm6, %v15448_v45  ;;  %v15466_v29 = vld [vmem:[#allocation2 + $0x18] sm:$0xff] }
 0xe97   : > { %12828 = vmatpush3.msra.mxu1 %v13737_v12  ;;  %12838 = vmatpush3.msk.msra.mxu0 %vm5562_vm4, %v13715_v1  ;;  %v9994_v1 = vld [vmem:[%s13706_s8] sm:$0xff] }
 0xe98   : > { %v15457_v38 = vld [vmem:[#allocation2 + $0x10] sm:$0xff]  ;;  %12829 = vmatprep.subr.mxu1 %v13735_v11  ;;  %12853 = vmatprep.subr.msk.mxu0 %vm5562_vm4, %v13719_v3 }
 0xe99   : > { %12814 = vmatprep.mubr.msk.f32.mxu1 %vm5839_vm6, %v15457_v38  ;;  %12824 = vmatprep.mubr.msk.f32.mxu0 %vm5839_vm6, %v15457_v38 }
 0xe9a   : > { %12815 = vmatmul.mubr.msk.f32.gmra.mxu1 %vm5839_vm6, %v15466_v29  ;;  %12825 = vmatmul.mubr.msk.f32.gmra.mxu0 %vm5839_vm6, %v15466_v29 }
 0xe9b   : > { %12831 = vmatprep.mubr.msk.f32.mxu1 %vm5839_vm6, %v15442_v23  ;;  %12830 = vmatpush3.msra.mxu1 %v13735_v11 }
 0xe9c   : > { %12845 = vmatprep.subr.msk.mxu1 %vm5562_vm4, %v13717_v2  ;;  %12839 = vmatprep.mubr.msk.f32.mxu0 %vm5549_vm5, %v9994_v1 }
 0xe9e   : > { %12832 = vmatmul.mubr.msk.f32.vlgmr.msra.gmra.mxu1 %vm5839_vm6, %v15448_v45  ;;  %12840 = vmatmul.mubr.msk.f32.vlgmr.msra.gmra.mxu0 %vm5549_vm5, %v9995_v26 }
 0xe9f   : > { %12834 = vmatprep.mubr.msk.f32.mxu1 %vm5839_vm6, %v15457_v38  ;;  %12846 = vmatpush3.msk.msra.mxu1 %vm5562_vm4, %v13717_v2  ;;  %v9996_v2 = vld [vmem:[%s13706_s8 + $0x10] sm:$0xff] }
 0xea0   : > { %12861 = vmatprep.subr.mxu1 %v13729_v8  ;;  %12854 = vmatpush3.msk.msra.mxu0 %vm5562_vm4, %v13719_v3  ;;  %v12787_v3 = vpop.f32.mrf.mxu0 }
 0xea1   : > { %12871 = vmatprep.subr.mxu0 %v13733_v10  ;;  %12842 = vmatprep.mubr.msk.f32.mxu0 %vm5549_vm5, %v9996_v2 }
 0xea2   : > { %12835 = vmatmul.mubr.msk.f32.gmra.mxu1 %vm5839_vm6, %v15466_v29  ;;  %12843 = vmatmul.mubr.msk.f32.gmra.mxu0 %vm5549_vm5, %v9997_v58 }
 0xea3   : > { %12847 = vmatprep.mubr.msk.f32.mxu1 %vm5549_vm5, %v9994_v1  ;;  %12855 = vmatprep.mubr.msk.f32.mxu0 %vm5549_vm5, %v9994_v1 }
 0xea6   : > { %12848 = vmatmul.mubr.msk.f32.vlgmr.msra.gmra.mxu1 %vm5549_vm5, %v9995_v26  ;;  %12856 = vmatmul.mubr.msk.f32.vlgmr.msra.gmra.mxu0 %vm5549_vm5, %v9995_v26 }
 0xea7   : > { %12862 = vmatpush3.msra.mxu1 %v13729_v8  ;;  %12850 = vmatprep.mubr.msk.f32.mxu1 %vm5549_vm5, %v9996_v2  ;;  %v9449_v8 = vpop.f32.mrf.mxu0 }
 0xea8   : > { %12863 = vmatprep.subr.mxu1 %v13727_v7  ;;  %12858 = vmatprep.mubr.msk.f32.mxu0 %vm5549_vm5, %v9996_v2  ;;  %v9450_v14 = vadd.f32 %v9449_v8, %v14804_v24 }
 0xea9   : > { %12864 = vmatpush3.msra.mxu1 %v13727_v7  ;;  %12872 = vmatpush3.msra.mxu0 %v13733_v10  ;;  %v12790_v56 = vpop.f32.mrf.mxu0  ;;  %v9455_v10 = vadd.f32 %v12787_v3, %v14804_v24 }
 0xeaa   : > { %12851 = vmatmul.mubr.msk.f32.gmra.mxu1 %vm5549_vm5, %v9997_v58  ;;  %12881 = vmatprep.subr.mxu1 %v13737_v12  ;;  %v9465_v31 = vadd.f32 %v12790_v56, %v14804_v24 }
 0xeab   : > { %12873 = vmatprep.subr.mxu0 %v13731_v9  ;;  %12859 = vmatmul.mubr.msk.f32.gmra.mxu0 %vm5549_vm5, %v9997_v58  ;;  %v9459_v43 = vpop.f32.mrf.mxu0 }
 0xeac   : > { %12874 = vmatpush3.msra.mxu0 %v13731_v9  ;;  %v9460_v13 = vadd.f32 %v9459_v43, %v14804_v24 }
 0xead   : > { %v15512_v7 = vpop.f32.mrf.mxu0 }
 0xeae   : > { %v9625_v39 = vadd.f32 %v15512_v7, %v14832_v59 }
 0xeaf   : > { %v15514_v57 = vpop.f32.mrf.mxu0 }
 0xeb1   : > { %v15516_v22 = vpop.f32.mrf.mxu0 }
 0xeb3   : > { %v15519_v35 = vpop.f32.mrf.mxu0 }
 0xf56   : > { %v12813_v9 = vpop.f32.mrf.mxu1  ;;  %v12823_v40 = vpop.f32.mrf.mxu0 }
 0xf57   : > { %v9821_v50 = vadd.f32 %v12813_v9, %v9455_v10  ;;  %v9849_v27 = vadd.f32 %v12823_v40, %v9540_v60 }
 0xf58   : > { %v9716_v47 = vpop.f32.mrf.mxu1  ;;  %v9801_v28 = vpop.f32.mrf.mxu0 }
 0xf59   : > { %v11446_v61 = vmul.f32 -1.442695, %v9821_v50  ;;  %v9820_v32 = vadd.f32 %v9716_v47, %v9450_v14  ;;  %v9848_v36 = vadd.f32 %v9801_v28, %v9535_v4  ;;  %v11450_v41 = vmul.f32 -1.442695, %v9849_v27 }
 0xf5a   : > { %v12816_v62 = vpop.f32.mrf.mxu1  ;;  %v12826_v6 = vpop.f32.mrf.mxu0  ;;  %v9620_v50 = vadd.f32 %v15514_v57, %v14832_v59  ;;  %v9630_v57 = vadd.f32 %v15519_v35, %v14832_v59 }
 0xf5b   : > { %13495 = vpow2.f32 %v11446_v61  ;;  %v11445_v21 = vmul.f32 -1.442695, %v9820_v32  ;;  %v9823_v25 = vadd.f32 %v12816_v62, %v9465_v31  ;;  %v9851_v52 = vadd.f32 %v12826_v6, %v9550_v16 }
 0xf5c   : > { %v9726_v19 = vpop.f32.mrf.mxu1  ;;  %v9811_v49 = vpop.f32.mrf.mxu0  ;;  %v11449_v20 = vmul.f32 -1.442695, %v9848_v36  ;;  %v9635_v62 = vadd.f32 %v15516_v22, %v14832_v59 }
 0xf5d   : > { %13497 = vpow2.f32 %v11445_v21  ;;  %v11448_v51 = vmul.f32 -1.442695, %v9823_v25  ;;  %v9822_v42 = vadd.f32 %v9726_v19, %v9460_v13  ;;  %v9850_v15 = vadd.f32 %v9811_v49, %v9545_v5 }
 0xf5e   : > { %v11452_v46 = vmul.f32 -1.442695, %v9851_v52  ;;  %v12833_v26 = vpop.f32.mrf.mxu1 }
 0xf5f   : > { %13499 = vpow2.f32 %v11448_v51  ;;  %v11447_v34 = vmul.f32 -1.442695, %v9822_v42  ;;  %v11451_v18 = vmul.f32 -1.442695, %v9850_v15  ;;  %v9948_v56 = vadd.f32 %v12833_v26, %v14828_v54 }
 0xf60   : > { %v9942_v58 = vpop.f32.mrf.mxu1 }
 0xf61   : > { %13501 = vpow2.f32 %v11447_v34  ;;  %v9943_v10 = vadd.f32 %v9942_v58, %v14828_v54 }
 0xf62   : > { %13503 = vpow2.f32 %v11450_v41  ;;  %v12836_v3 = vpop.f32.mrf.mxu1 }
 0xf63   : > { %v9958_v40 = vadd.f32 %v12836_v3, %v14828_v54 }
 0xf64   : > { %v9952_v14 = vpop.f32.mrf.mxu1 }
 0xf65   : > { %v9953_v19 = vadd.f32 %v9952_v14, %v14828_v54 }
 0xf66   : > { %v12849_v58 = vpop.f32.mrf.mxu1 }
 0xf68   : > { %v13496_v55 = vpop.eup %13495 }
 0xf69   : > { %v9837_v30 = vadd.f32 1.0, %v13496_v55 }
 0xf6a   : > { %v13498_v37 = vpop.eup %13497 }
 0xf6b   : > { %13505 = vrcp.f32 %v9837_v30  ;;  %v9836_v17 = vadd.f32 1.0, %v13498_v37 }
 0xf6c   : > { %v13500_v53 = vpop.eup %13499  ;;  %13507 = vpow2.f32 %v11449_v20 }
 0xf6d   : > { %13509 = vrcp.f32 %v9836_v17  ;;  %v9839_v48 = vadd.f32 1.0, %v13500_v53 }
 0xf6e   : > { %v13502_v1 = vpop.eup %13501  ;;  %13511 = vpow2.f32 %v11452_v46 }
 0xf6f   : > { %13513 = vrcp.f32 %v9839_v48  ;;  %v9838_v2 = vadd.f32 1.0, %v13502_v1  ;;  %v13504_v8 = vpop.eup %13503 }
 0xf70   : > { %13515 = vpow2.f32 %v11451_v18  ;;  %v9865_v9 = vadd.f32 1.0, %v13504_v8  ;;  %v10165_v8 = vpop.f32.mrf.mxu1 }
 0xf71   : > { %13517 = vrcp.f32 %v9838_v2 }
 0xf78   : > { %v13506_v43 = vpop.eup %13505 }
 0xf79   : > { %v13508_v63 = vpop.eup %13507  ;;  %v9962_v0 = vmul.f32 %v13506_v43, %v9948_v56 }
 0xf7a   : > { %v13510_v33 = vpop.eup %13509  ;;  %v9864_v13 = vadd.f32 1.0, %v13508_v63 }
 0xf7b   : > { %v13512_v31 = vpop.eup %13511  ;;  %v9966_v47 = vadd.f32 %v9962_v0, %v9625_v39  ;;  %v9961_v61 = vmul.f32 %v13510_v33, %v9943_v10 }
 0xf7c   : > { %v13514_v32 = vpop.eup %13513  ;;  %v9867_v51 = vadd.f32 1.0, %v13512_v31 }
 0xf7d   : > { %v13516_v7 = vpop.eup %13515  ;;  %13519 = vtanh.f32 %v9966_v47  ;;  %v9965_v21 = vadd.f32 %v9961_v61, %v9620_v50  ;;  %v9964_v25 = vmul.f32 %v13514_v32, %v9958_v40 }
 0xf7e   : > { %v13518_v28 = vpop.eup %13517  ;;  %13521 = vrcp.f32 %v9865_v9  ;;  %v9866_v60 = vadd.f32 1.0, %v13516_v7 }
 0xf7f   : > { %13523 = vtanh.f32 %v9965_v21  ;;  %v9968_v42 = vadd.f32 %v9964_v25, %v9635_v62  ;;  %v9963_v34 = vmul.f32 %v13518_v28, %v9953_v19 }
 0xf80   : > { %13525 = vrcp.f32 %v9864_v13 }
 0xf81   : > { %13527 = vtanh.f32 %v9968_v42  ;;  %v9967_v22 = vadd.f32 %v9963_v34, %v9630_v57  ;;  %v10166_v42 = vadd.f32 %v10165_v8, %v14818_v44 }
 0xf82   : > { %13529 = vrcp.f32 %v9867_v51  ;;  %v10171_v51 = vadd.f32 %v12849_v58, %v14818_v44 }
 0xf83   : > { %13531 = vtanh.f32 %v9967_v22 }
 0xf84   : > { %13533 = vrcp.f32 %v9866_v60 }
 0xf8a   : > { %v13520_v6 = vpop.eup %13519 }
 0xf8b   : > { %v13522_v4 = vpop.eup %13521  ;;  %v9974_v27 = vsub.f32 %v15448_v45, %v13520_v6 }
 0xf8c   : > { %v13524_v16 = vpop.eup %13523 }
 0xf8d   : > { %v13526_v36 = vpop.eup %13525  ;;  %v9978_v49 = vmul.f32 %v13522_v4, %v9974_v27  ;;  %v9973_v35 = vsub.f32 %v15442_v23, %v13524_v16 }
 0xf8e   : > { %v13528_v5 = vpop.eup %13527 }
 0xf8f   : > { %v13530_v41 = vpop.eup %13529  ;;  %v9982_v52 = vadd.f32 %v13520_v6, %v9978_v49  ;;  %v9977_v55 = vmul.f32 %v13526_v36, %v9973_v35  ;;  %v9976_v20 = vsub.f32 %v15466_v29, %v13528_v5 }
 0xf90   : > { %v13532_v15 = vpop.eup %13531 }
 0xf91   : > { %9986 = vst.msk [vmem:[#allocation2 + $0x8] sm:$0xff] %vm5839_vm6, %v9982_v52  ;;  %11458 = vst.msk [vmem:[%s13712_s13 + $0x28] sm:$0xff] %vm5839_vm6, %v9982_v52  ;;  %v9981_v45 = vadd.f32 %v13524_v16, %v9977_v55  ;;  %v9980_v30 = vmul.f32 %v13530_v41, %v9976_v20  ;;  %v9975_v37 = vsub.f32 %v15457_v38, %v13532_v15  ;;  %v13534_v46 = vpop.eup %13533 }
 0xf93   : > { %9985 = vst.msk [vmem:[#allocation2] sm:$0xff] %vm5839_vm6, %v9981_v45  ;;  %11457 = vst.msk [vmem:[%s13712_s13 + $0x20] sm:$0xff] %vm5839_vm6, %v9981_v45  ;;  %v9984_v23 = vadd.f32 %v13528_v5, %v9980_v30  ;;  %v9979_v17 = vmul.f32 %v13534_v46, %v9975_v37 }
 0xf95   : > { %9988 = vst.msk [vmem:[#allocation2 + $0x18] sm:$0xff] %vm5839_vm6, %v9984_v23  ;;  %11460 = vst.msk [vmem:[%s13712_s13 + $0x38] sm:$0xff] %vm5839_vm6, %v9984_v23  ;;  %v9983_v29 = vadd.f32 %v13532_v15, %v9979_v17 }
 0xf97   : > { %9987 = vst.msk [vmem:[#allocation2 + $0x10] sm:$0xff] %vm5839_vm6, %v9983_v29  ;;  %11459 = vst.msk [vmem:[%s13712_s13 + $0x30] sm:$0xff] %vm5839_vm6, %v9983_v29 }
 0xf98   : > { %v15562_v38 = vld [vmem:[#allocation2 + $0x8] sm:$0xff] }
 0xf9a   : > { %v15556_v53 = vld [vmem:[#allocation2] sm:$0xff] }
 0xf9b   : > { %12865 = vmatprep.mubr.msk.f32.mxu1 %vm5839_vm6, %v15556_v53  ;;  %12875 = vmatprep.mubr.msk.f32.mxu0 %vm5839_vm6, %v15556_v53 }
 0xf9c   : > { %12866 = vmatmul.mubr.msk.f32.vlgmr.msra.gmra.mxu1 %vm5839_vm6, %v15562_v38  ;;  %12876 = vmatmul.mubr.msk.f32.vlgmr.msra.gmra.mxu0 %vm5839_vm6, %v15562_v38  ;;  %v15576_v48 = vld [vmem:[#allocation2 + $0x18] sm:$0xff] }
 0xf9d   : > { %12882 = vmatpush3.msra.mxu1 %v13737_v12  ;;  %v12841_v12 = vpop.f32.mrf.mxu0 }
 0xf9e   : > { %v15569_v18 = vld [vmem:[#allocation2 + $0x10] sm:$0xff]  ;;  %12883 = vmatprep.subr.mxu1 %v13735_v11  ;;  %v10086_v63 = vadd.f32 %v12841_v12, %v14804_v24 }
 0xf9f   : > { %12868 = vmatprep.mubr.msk.f32.mxu1 %vm5839_vm6, %v15569_v18  ;;  %12878 = vmatprep.mubr.msk.f32.mxu0 %vm5839_vm6, %v15569_v18  ;;  %v10080_v1 = vpop.f32.mrf.mxu0 }
 0xfa0   : > { %12869 = vmatmul.mubr.msk.f32.gmra.mxu1 %vm5839_vm6, %v15576_v48  ;;  %12879 = vmatmul.mubr.msk.f32.gmra.mxu0 %vm5839_vm6, %v15576_v48  ;;  %v10081_v33 = vadd.f32 %v10080_v1, %v14804_v24 }
 0xfa1   : > { %12885 = vmatprep.mubr.msk.f32.mxu1 %vm5839_vm6, %v15556_v53  ;;  %12884 = vmatpush3.msra.mxu1 %v13735_v11  ;;  %v12844_v26 = vpop.f32.mrf.mxu0  ;;  %v12852_v11 = vpop.f32.mrf.mxu1 }
 0xfa2   : > { %v10096_v9 = vadd.f32 %v12844_v26, %v14804_v24  ;;  %v10181_v60 = vadd.f32 %v12852_v11, %v14818_v44 }
 0xfa3   : > { %v10090_v2 = vpop.f32.mrf.mxu0  ;;  %v10175_v39 = vpop.f32.mrf.mxu1 }
 0xfa4   : > { %12886 = vmatmul.mubr.msk.f32.vlgmr.msra.gmra.mxu1 %vm5839_vm6, %v15562_v38  ;;  %v10091_v32 = vadd.f32 %v10090_v2, %v14804_v24  ;;  %v10176_v6 = vadd.f32 %v10175_v39, %v14818_v44 }
 0xfa5   : > { %12888 = vmatprep.mubr.msk.f32.mxu1 %vm5839_vm6, %v15569_v18  ;;  %v15591_v3 = vpop.f32.mrf.mxu0 }
 0xfa6   : > { %v10256_v1 = vadd.f32 %v15591_v3, %v14832_v59 }
 0xfa7   : > { %v15593_v56 = vpop.f32.mrf.mxu0 }
 0xfa8   : > { %12889 = vmatmul.mubr.msk.f32.gmra.mxu1 %vm5839_vm6, %v15576_v48  ;;  %v10251_v39 = vadd.f32 %v15593_v56, %v14832_v59 }
 0xfa9   : > { %v15595_v43 = vpop.f32.mrf.mxu0 }
 0xfab   : > { %v15598_v0 = vpop.f32.mrf.mxu0 }
 0xfac   : > { %v10261_v56 = vadd.f32 %v15598_v0, %v14832_v59 }
0x105c   : > { %v12867_v10 = vpop.f32.mrf.mxu1  ;;  %v12877_v47 = vpop.f32.mrf.mxu0 }
0x105d   : > { %v10452_v14 = vadd.f32 %v12867_v10, %v10086_v63  ;;  %v10480_v34 = vadd.f32 %v12877_v47, %v10171_v51 }
0x105e   : > { %v10347_v31 = vpop.f32.mrf.mxu1  ;;  %v10432_v21 = vpop.f32.mrf.mxu0 }
0x105f   : > { %v11485_v50 = vmul.f32 -1.442695, %v10452_v14  ;;  %v10451_v61 = vadd.f32 %v10347_v31, %v10081_v33  ;;  %v10479_v24 = vadd.f32 %v10432_v21, %v10166_v42  ;;  %v11489_v4 = vmul.f32 -1.442695, %v10480_v34 }
0x1060   : > { %v12870_v40 = vpop.f32.mrf.mxu1  ;;  %v12880_v57 = vpop.f32.mrf.mxu0  ;;  %v10266_v31 = vadd.f32 %v15595_v43, %v14832_v59 }
0x1061   : > { %13535 = vpow2.f32 %v11485_v50  ;;  %v11484_v62 = vmul.f32 -1.442695, %v10451_v61  ;;  %v10454_v13 = vadd.f32 %v12870_v40, %v10096_v9  ;;  %v10482_v27 = vadd.f32 %v12880_v57, %v10181_v60 }
0x1062   : > { %v10357_v7 = vpop.f32.mrf.mxu1  ;;  %v10442_v22 = vpop.f32.mrf.mxu0  ;;  %v11488_v36 = vmul.f32 -1.442695, %v10479_v24 }
0x1063   : > { %13537 = vpow2.f32 %v11484_v62  ;;  %v11487_v25 = vmul.f32 -1.442695, %v10454_v13  ;;  %v10453_v19 = vadd.f32 %v10357_v7, %v10091_v32  ;;  %v10481_v49 = vadd.f32 %v10442_v22, %v10176_v6 }
0x1064   : > { %v11491_v41 = vmul.f32 -1.442695, %v10482_v27  ;;  %v12887_v30 = vpop.f32.mrf.mxu1 }
0x1065   : > { %13539 = vpow2.f32 %v11487_v25  ;;  %v11486_v28 = vmul.f32 -1.442695, %v10453_v19  ;;  %v11490_v20 = vmul.f32 -1.442695, %v10481_v49  ;;  %v10579_v17 = vadd.f32 %v12887_v30, %v14828_v54 }
0x1066   : > { %v10573_v37 = vpop.f32.mrf.mxu1 }
0x1067   : > { %13541 = vpow2.f32 %v11486_v28  ;;  %v10574_v2 = vadd.f32 %v10573_v37, %v14828_v54 }
0x1068   : > { %13543 = vpow2.f32 %v11489_v4  ;;  %v12890_v46 = vpop.f32.mrf.mxu1 }
0x1069   : > { %v10589_v9 = vadd.f32 %v12890_v46, %v14828_v54 }
0x106a   : > { %v10583_v11 = vpop.f32.mrf.mxu1 }
0x106b   : > { %v10584_v40 = vadd.f32 %v10583_v11, %v14828_v54 }
0x106e   : > { %v13536_v16 = vpop.eup %13535 }
0x106f   : > { %v10468_v35 = vadd.f32 1.0, %v13536_v16 }
0x1070   : > { %v13538_v5 = vpop.eup %13537 }
0x1071   : > { %13545 = vrcp.f32 %v10468_v35  ;;  %v10467_v52 = vadd.f32 1.0, %v13538_v5 }
0x1072   : > { %v13540_v55 = vpop.eup %13539  ;;  %13547 = vpow2.f32 %v11488_v36 }
0x1073   : > { %13549 = vrcp.f32 %v10467_v52  ;;  %v10470_v15 = vadd.f32 1.0, %v13540_v55 }
0x1074   : > { %v13542_v45 = vpop.eup %13541  ;;  %13551 = vpow2.f32 %v11491_v41 }
0x1075   : > { %13553 = vrcp.f32 %v10470_v15  ;;  %v10469_v44 = vadd.f32 1.0, %v13542_v45  ;;  %v13544_v23 = vpop.eup %13543 }
0x1076   : > { %13555 = vpow2.f32 %v11490_v20  ;;  %v10496_v8 = vadd.f32 1.0, %v13544_v23 }
0x1077   : > { %13557 = vrcp.f32 %v10469_v44 }
0x107e   : > { %v13546_v29 = vpop.eup %13545 }
0x107f   : > { %v13548_v12 = vpop.eup %13547  ;;  %v10593_v26 = vmul.f32 %v13546_v29, %v10579_v17 }
0x1080   : > { %v13550_v58 = vpop.eup %13549  ;;  %v10495_v50 = vadd.f32 1.0, %v13548_v12 }
0x1081   : > { %v13552_v63 = vpop.eup %13551  ;;  %v10597_v10 = vadd.f32 %v10593_v26, %v10256_v1  ;;  %v10592_v33 = vmul.f32 %v13550_v58, %v10574_v2 }
0x1082   : > { %v13554_v14 = vpop.eup %13553  ;;  %v10498_v62 = vadd.f32 1.0, %v13552_v63 }
0x1083   : > { %v13556_v3 = vpop.eup %13555  ;;  %13559 = vtanh.f32 %v10597_v10  ;;  %v10596_v47 = vadd.f32 %v10592_v33, %v10251_v39  ;;  %v10595_v61 = vmul.f32 %v13554_v14, %v10589_v9 }
0x1084   : > { %v13558_v32 = vpop.eup %13557  ;;  %13561 = vrcp.f32 %v10496_v8  ;;  %v10497_v21 = vadd.f32 1.0, %v13556_v3 }
0x1085   : > { %13563 = vtanh.f32 %v10596_v47  ;;  %v10599_v13 = vadd.f32 %v10595_v61, %v10266_v31  ;;  %v10594_v7 = vmul.f32 %v13558_v32, %v10584_v40 }
0x1086   : > { %13565 = vrcp.f32 %v10495_v50 }
0x1087   : > { %13567 = vtanh.f32 %v10599_v13  ;;  %v10598_v43 = vadd.f32 %v10594_v7, %v10261_v56 }
0x1088   : > { %13569 = vrcp.f32 %v10498_v62 }
0x1089   : > { %13571 = vtanh.f32 %v10598_v43 }
0x108a   : > { %13573 = vrcp.f32 %v10497_v21 }
0x1090   : > { %v13560_v25 = vpop.eup %13559 }
0x1091   : > { %v13562_v19 = vpop.eup %13561  ;;  %v10605_v54 = vsub.f32 %v15562_v38, %v13560_v25 }
0x1092   : > { %v13564_v28 = vpop.eup %13563 }
0x1093   : > { %v13566_v51 = vpop.eup %13565  ;;  %v10609_v57 = vmul.f32 %v13562_v19, %v10605_v54  ;;  %v10604_v59 = vsub.f32 %v15556_v53, %v13564_v28 }
0x1094   : > { %v13568_v0 = vpop.eup %13567 }
0x1095   : > { %v13570_v42 = vpop.eup %13569  ;;  %v10613_v34 = vadd.f32 %v13560_v25, %v10609_v57  ;;  %v10608_v60 = vmul.f32 %v13566_v51, %v10604_v59  ;;  %v10607_v24 = vsub.f32 %v15576_v48, %v13568_v0 }
0x1096   : > { %v13572_v22 = vpop.eup %13571 }
0x1097   : > { %10617 = vst.msk [vmem:[#allocation2 + $0x8] sm:$0xff] %vm5839_vm6, %v10613_v34  ;;  %10621 = vst.msk [vmem:[%s13712_s13 + $0x8] sm:$0xff] %vm5839_vm6, %v10613_v34  ;;  %v10612_v38 = vadd.f32 %v13564_v28, %v10608_v60  ;;  %v10611_v6 = vmul.f32 %v13570_v42, %v10607_v24  ;;  %v10606_v4 = vsub.f32 %v15569_v18, %v13572_v22  ;;  %v13574_v27 = vpop.eup %13573 }
0x1099   : > { %10616 = vst.msk [vmem:[#allocation2] sm:$0xff] %vm5839_vm6, %v10612_v38  ;;  %10620 = vst.msk [vmem:[%s13712_s13] sm:$0xff] %vm5839_vm6, %v10612_v38  ;;  %v10615_v53 = vadd.f32 %v13568_v0, %v10611_v6  ;;  %v10610_v16 = vmul.f32 %v13574_v27, %v10606_v4 }
0x109b   : > { %10619 = vst.msk [vmem:[#allocation2 + $0x18] sm:$0xff] %vm5839_vm6, %v10615_v53  ;;  %10623 = vst.msk [vmem:[%s13712_s13 + $0x18] sm:$0xff] %vm5839_vm6, %v10615_v53  ;;  %v10614_v48 = vadd.f32 %v13572_v22, %v10610_v16 }
0x109d   : > { %10618 = vst.msk [vmem:[#allocation2 + $0x10] sm:$0xff] %vm5839_vm6, %v10614_v48  ;;  %10622 = vst.msk [vmem:[%s13712_s13 + $0x10] sm:$0xff] %vm5839_vm6, %v10614_v48 }
0x109e PF: > { %s15_s22 = sadd.s32 1, %s13613_s22   ;;  %s15662_s19 = sld [smem:[#allocation3_spill]] }
0x109f   : > { %p12_p10 = scmp.ge.s32.totalorder %s15_s22, 6   ;;  %s15663_s1 = sld [smem:[#allocation4_spill]] }
0x10a0   : > { %s15664_s21 = sld [smem:[#allocation5_spill]]  ;;  %s15665_s18 = smov %s13605_s20 }
0x10a1   :  { %14 = sbr.rel (!%p12_p10) target bundleno = 3 (0x3), region = 128 }
0x10a5   : > { %s15666_s20 = smov %s15663_s1 }

</bundles_post_ra>
